<compile_context>
chip_gen: v5e
topology: v5e:2x2
jax: 0.10.0
libtpu: 0.0.40
codegen_flags: <defaults>
</compile_context>

<pallas_src>
import functools

import jax
import jax.numpy as jnp
from jax import lax
from jax.experimental import pallas as pl
from jax.experimental.pallas import tpu as pltpu

# ---------------- synthetic model hyper-parameters (small) ----------------
PATCH = 8            # DINO patch size (vits16 uses 16; 8 keeps shapes small)
EMBED = 32           # ViT embedding dim (n_feats)
HEADS = 4
HEAD_DIM = EMBED // HEADS
MLP_HIDDEN = 4 * EMBED
DEPTH = 2            # number of transformer blocks (synthetic backbone)
IMG = 32             # input spatial size (must be divisible by PATCH)
GRID_HW = IMG // PATCH
NPATCH = GRID_HW * GRID_HW       # 16 patch tokens
NTOK = 1 + NPATCH                # CLS + patches
NPAD = 32                        # sublane-aligned padded token count (>= NTOK)
PD = 3 * PATCH * PATCH           # 192: raw im2col depth
SCALE = HEAD_DIM ** -0.5
LN_EPS = 1e-6

assert NTOK <= NPAD and NPAD % 8 == 0 and NPATCH % 8 == 0


# =========================== fused Pallas kernel ===========================

def _ln(x, g, b):
    """Row-wise LayerNorm (DINO eps=1e-6); g, b are (1, C)."""
    mean = jnp.mean(x, axis=-1, keepdims=True)
    xc = x - mean
    var = jnp.mean(xc * xc, axis=-1, keepdims=True)
    return xc * lax.rsqrt(var + LN_EPS) * g + b


def _fused_stego_kernel(
        # inputs (per batch element b)
        patches_ref, patch_w_ref, patch_b_ref, cls_pos_ref, pos_patch_ref,
        ln1_g_ref, ln1_b_ref, qkv_w_ref, qkv_b_ref, proj_w_ref, proj_b_ref,
        ln2_g_ref, ln2_b_ref, fc1_w_ref, fc1_b_ref, fc2_w_ref, fc2_b_ref,
        norm_g_ref, norm_b_ref,
        c1_w_ref, c1_b_ref, c2a_w_ref, c2a_b_ref, c2b_w_ref, c2b_b_ref,
        # output
        o_ref,
        # VMEM scratch
        x_scr, attn_scr,
        *, npatch, ntok):
    # ---- patch embedding: Conv2d(3, E, P, stride=P) as a matmul ----
    patches = patches_ref[0].astype(jnp.float32)                  # (npatch, PD_PAD)
    tok = jnp.dot(patches, patch_w_ref[...],
                  preferred_element_type=jnp.float32) + patch_b_ref[...]

    # Token buffer layout:
    #   rows [0, npatch) : patch tokens (+ positional embedding)
    #   row  npatch      : CLS token (+ pos_embed[0])
    #   rows [ntok,NPAD) : zero padding
    # (Token permutation is exact: every op is row-wise and attention is
    #  permutation-equivariant once each token carries its own pos embedding.)
    x_scr[...] = jnp.zeros_like(x_scr)
    x_scr[pl.ds(0, npatch), :] = tok + pos_patch_ref[...]
    x_scr[pl.ds(npatch, 1), :] = cls_pos_ref[...]
    x = x_scr[...]                                                # (NPAD, E) register value

    # additive key-mask bias: 0 for real key columns, -1e30 for padding columns
    col = lax.broadcasted_iota(jnp.int32, (1, NPAD), 1)
    kbias = jnp.where(col < ntok, 0.0, -1e30).astype(jnp.float32)  # (1, NPAD)

    # ---- transformer blocks (pre-LN ViT), statically unrolled ----
    for d in range(DEPTH):
        h = _ln(x, ln1_g_ref[d], ln1_b_ref[d])
        # q / k / v as three (NPAD,E)@(E,E) matmuls directly off the weight ref
        q = jnp.dot(h, qkv_w_ref[d, :, 0:EMBED],
                    preferred_element_type=jnp.float32) + qkv_b_ref[d, :, 0:EMBED]
        k = jnp.dot(h, qkv_w_ref[d, :, EMBED:2 * EMBED],
                    preferred_element_type=jnp.float32) + qkv_b_ref[d, :, EMBED:2 * EMBED]
        v = jnp.dot(h, qkv_w_ref[d, :, 2 * EMBED:3 * EMBED],
                    preferred_element_type=jnp.float32) + qkv_b_ref[d, :, 2 * EMBED:3 * EMBED]

        for hd in range(HEADS):                                   # static unroll
            lo = hd * HEAD_DIM
            qh = q[:, lo:lo + HEAD_DIM]
            kh = k[:, lo:lo + HEAD_DIM]
            vh = v[:, lo:lo + HEAD_DIM]
            s = lax.dot_general(qh, kh, (((1,), (1,)), ((), ())),
                                preferred_element_type=jnp.float32) * SCALE
            s = s + kbias                                         # mask pad keys
            s = s - jnp.max(s, axis=-1, keepdims=True)
            p = jnp.exp(s)
            p = p * pl.reciprocal(jnp.sum(p, axis=-1, keepdims=True),
                                  approx=True)
            # gather per-head output into a (NPAD, E) buffer at its column slice
            attn_scr[:, pl.ds(lo, HEAD_DIM)] = jnp.dot(
                p, vh, preferred_element_type=jnp.float32)

        # ONE proj matmul over the full E-deep contraction + residual 1
        x = x + jnp.dot(attn_scr[...], proj_w_ref[d],
                        preferred_element_type=jnp.float32) + proj_b_ref[d]

        h = _ln(x, ln2_g_ref[d], ln2_b_ref[d])
        h = jnp.dot(h, fc1_w_ref[d], preferred_element_type=jnp.float32) + fc1_b_ref[d]
        # TODO(synk): PyTorch nn.GELU defaults to exact erf; tanh approximation used.
        h = jax.nn.gelu(h, approximate=True)
        h = jnp.dot(h, fc2_w_ref[d], preferred_element_type=jnp.float32) + fc2_b_ref[d]
        x = x + h                                                 # residual 2

    # ---- final LayerNorm on the patch rows only (CLS & padding dropped) ----
    feat = _ln(x[0:npatch, :], norm_g_ref[...], norm_b_ref[...])
    # Dropout2d(p=0.1) is identity at inference -> skipped.

    # ---- segmentation head: code = cluster1(feat) + cluster2(feat) ----
    # (head weights are lane-padded to 128 so the HBM store is unmasked/lane-dense)
    lin = jnp.dot(feat, c1_w_ref[...], preferred_element_type=jnp.float32) + c1_b_ref[...]
    hh = jnp.dot(feat, c2a_w_ref[...], preferred_element_type=jnp.float32) + c2a_b_ref[...]
    hh = jnp.maximum(hh, 0.0)
    nl = jnp.dot(hh, c2b_w_ref[...], preferred_element_type=jnp.float32) + c2b_b_ref[...]
    o_ref[0] = (lin + nl).astype(o_ref.dtype)                     # (npatch, dim_pad)


# =========================== model forward =================================

def stego_forward(params, x):
    """STEGOmodel.forward: returns the DinoFeaturizer code (B, dim, H/p, W/p)."""
    B, C, H, W = x.shape
    assert H % PATCH == 0 and W % PATCH == 0
    gh, gw = H // PATCH, W // PATCH
    npatch = gh * gw
    ntok = npatch + 1
    assert ntok <= NPAD

    dim = params["c1_w"].shape[1]
    dim_pad = pl.cdiv(dim, 128) * 128          # lane-dense head output width
    pd = C * PATCH * PATCH
    pd_pad = pl.cdiv(pd, 128) * 128            # 128-aligned im2col depth

    # im2col for Conv2d(3, E, P, stride=P): (B, npatch, 3*P*P), zero-padded to
    # a 128-aligned contraction depth.  Only wrapper-side layout op on activations.
    patches = (x.reshape(B, C, gh, PATCH, gw, PATCH)
                .transpose(0, 2, 4, 1, 3, 5)
                .reshape(B, npatch, pd))
    patches = jnp.pad(patches, ((0, 0), (0, 0), (0, pd_pad - pd)))
    patch_w = jnp.pad(params["patch_w"], ((0, pd_pad - pd), (0, 0)))

    # pad the head output dim to 128 lanes (zero weights/bias -> zero columns,
    # sliced off below); makes the output store unmasked & lane-dense.
    c1_w = jnp.pad(params["c1_w"], ((0, 0), (0, dim_pad - dim)))
    c1_b = jnp.pad(params["c1_b"], ((0, 0), (0, dim_pad - dim)))
    c2b_w = jnp.pad(params["c2b_w"], ((0, 0), (0, dim_pad - dim)))
    c2b_b = jnp.pad(params["c2b_b"], ((0, 0), (0, dim_pad - dim)))

    cls_pos = params["cls_token"] + params["pos_embed"][0:1, :]   # (1, E)
    pos_patch = params["pos_embed"][1:, :]                        # (npatch, E)

    inputs = (
        patches, patch_w, params["patch_b"], cls_pos, pos_patch,
        params["ln1_g"], params["ln1_b"], params["qkv_w"], params["qkv_b"],
        params["proj_w"], params["proj_b"], params["ln2_g"], params["ln2_b"],
        params["fc1_w"], params["fc1_b"], params["fc2_w"], params["fc2_b"],
        params["norm_g"], params["norm_b"],
        c1_w, c1_b, params["c2a_w"], params["c2a_b"], c2b_w, c2b_b,
    )

    def bcast_spec(a):
        nd = a.ndim
        return pl.BlockSpec(a.shape, lambda b, _n=nd: (0,) * _n)

    in_specs = [pl.BlockSpec((1, npatch, pd_pad), lambda b: (b, 0, 0))]
    in_specs += [bcast_spec(a) for a in inputs[1:]]

    kernel = functools.partial(_fused_stego_kernel, npatch=npatch, ntok=ntok)

    code = pl.pallas_call(
        kernel,
        out_shape=jax.ShapeDtypeStruct((B, npatch, dim_pad), x.dtype),
        grid=(B,),
        in_specs=in_specs,
        out_specs=pl.BlockSpec((1, npatch, dim_pad), lambda b: (b, 0, 0)),
        scratch_shapes=[
            pltpu.VMEM((NPAD, EMBED), jnp.float32),   # token construction buffer
            pltpu.VMEM((NPAD, EMBED), jnp.float32),   # per-head output gather buffer
        ],
        compiler_params=pltpu.CompilerParams(
            dimension_semantics=("parallel",)),       # megacore on v7x
    )(*inputs)

    # drop lane padding, back to PyTorch NCHW (tiny tensor; single tail transpose)
    code = code[:, :, :dim]
    return code.reshape(B, gh, gw, dim).transpose(0, 3, 1, 2)


# ======================= deterministic parameter init ======================

def init_params(key, opt, n_classes):
    dim = opt["dim"] if opt["continuous"] else n_classes
    keys = iter(jax.random.split(key, 64))

    def nrm(shape, std=0.02):
        return (std * jax.random.normal(next(keys), shape)).astype(jnp.float32)

    p = {
        # patch embed / tokens
        "patch_w": nrm((PD, EMBED)),
        "patch_b": jnp.zeros((1, EMBED), jnp.float32),
        "cls_token": nrm((1, EMBED)),
        "pos_embed": nrm((NTOK, EMBED)),
        # final norm
        "norm_g": jnp.ones((1, EMBED), jnp.float32),
        "norm_b": jnp.zeros((1, EMBED), jnp.float32),
        # transformer blocks, stacked along a leading DEPTH axis
        "ln1_g": jnp.ones((DEPTH, 1, EMBED), jnp.float32),
        "ln1_b": jnp.zeros((DEPTH, 1, EMBED), jnp.float32),
        "qkv_w": nrm((DEPTH, EMBED, 3 * EMBED)),
        "qkv_b": jnp.zeros((DEPTH, 1, 3 * EMBED), jnp.float32),
        "proj_w": nrm((DEPTH, EMBED, EMBED)),
        "proj_b": jnp.zeros((DEPTH, 1, EMBED), jnp.float32),
        "ln2_g": jnp.ones((DEPTH, 1, EMBED), jnp.float32),
        "ln2_b": jnp.zeros((DEPTH, 1, EMBED), jnp.float32),
        "fc1_w": nrm((DEPTH, EMBED, MLP_HIDDEN)),
        "fc1_b": jnp.zeros((DEPTH, 1, MLP_HIDDEN), jnp.float32),
        "fc2_w": nrm((DEPTH, MLP_HIDDEN, EMBED)),
        "fc2_b": jnp.zeros((DEPTH, 1, EMBED), jnp.float32),
        # DinoFeaturizer head (proj_type = "nonlinear"): cluster1, cluster2
        "c1_w": nrm((EMBED, dim)), "c1_b": jnp.zeros((1, dim), jnp.float32),
        "c2a_w": nrm((EMBED, EMBED)), "c2a_b": jnp.zeros((1, EMBED), jnp.float32),
        "c2b_w": nrm((EMBED, dim)), "c2b_b": jnp.zeros((1, dim), jnp.float32),
        # present in STEGOmodel.__init__ but UNUSED by forward():
        "cluster_probe": nrm((n_classes + opt["extra_clusters"], dim)),
        "linear_probe_w": nrm((n_classes, dim, 1, 1)),
        "linear_probe_b": jnp.zeros((n_classes,), jnp.float32),
    }
    return p


# ================================ main ======================================

if __name__ == "__main__":
    opt = {"continuous": True, "dim": 16, "arch": "dino",
           "extra_clusters": 0, "dropout": False}
    n_classes = 5

    key = jax.random.PRNGKey(0)
    pkey, xkey = jax.random.split(key)
    params = init_params(pkey, opt, n_classes)
    x = jax.random.normal(xkey, (2, 3, IMG, IMG), jnp.float32)

    fwd = jax.jit(stego_forward)
    code = jax.block_until_ready(fwd(params, x))

    assert code.shape == (2, opt["dim"], IMG // PATCH, IMG // PATCH), code.shape
    assert code.dtype == jnp.float32
    assert bool(jnp.all(jnp.isfinite(code)))
    print("KERNEL_OK")
</pallas_src>

<mosaic_0001>
module attributes {stable_mosaic.version = 11 : i64} {
  func.func @_fused_stego_kernel(%arg0: i32, %arg1: memref<1x16x256xf32, #tpu.memory_space<vmem>>, %arg2: memref<256x32xf32, #tpu.memory_space<vmem>>, %arg3: memref<1x32xf32, #tpu.memory_space<vmem>>, %arg4: memref<1x32xf32, #tpu.memory_space<vmem>>, %arg5: memref<16x32xf32, #tpu.memory_space<vmem>>, %arg6: memref<2x1x32xf32, #tpu.memory_space<vmem>>, %arg7: memref<2x1x32xf32, #tpu.memory_space<vmem>>, %arg8: memref<2x32x96xf32, #tpu.memory_space<vmem>>, %arg9: memref<2x1x96xf32, #tpu.memory_space<vmem>>, %arg10: memref<2x32x32xf32, #tpu.memory_space<vmem>>, %arg11: memref<2x1x32xf32, #tpu.memory_space<vmem>>, %arg12: memref<2x1x32xf32, #tpu.memory_space<vmem>>, %arg13: memref<2x1x32xf32, #tpu.memory_space<vmem>>, %arg14: memref<2x32x128xf32, #tpu.memory_space<vmem>>, %arg15: memref<2x1x128xf32, #tpu.memory_space<vmem>>, %arg16: memref<2x128x32xf32, #tpu.memory_space<vmem>>, %arg17: memref<2x1x32xf32, #tpu.memory_space<vmem>>, %arg18: memref<1x32xf32, #tpu.memory_space<vmem>>, %arg19: memref<1x32xf32, #tpu.memory_space<vmem>>, %arg20: memref<32x128xf32, #tpu.memory_space<vmem>>, %arg21: memref<1x128xf32, #tpu.memory_space<vmem>>, %arg22: memref<32x32xf32, #tpu.memory_space<vmem>>, %arg23: memref<1x32xf32, #tpu.memory_space<vmem>>, %arg24: memref<32x128xf32, #tpu.memory_space<vmem>>, %arg25: memref<1x128xf32, #tpu.memory_space<vmem>>, %arg26: memref<1x16x128xf32, #tpu.memory_space<vmem>>, %arg27: memref<32x32xf32, #tpu.memory_space<vmem>>, %arg28: memref<32x32xf32, #tpu.memory_space<vmem>>) attributes {dimension_semantics = [#tpu.dimension_semantics<parallel>], iteration_bounds = array<i64: 2>, scalar_prefetch = 0 : i64, scratch_operands = 2 : i64, tpu.core_type = #tpu.core_type<tc>, window_params = [{transform_indices = @transform_0, window_bounds = array<i64: 1, 16, 256>}, {pipeline_mode = #tpu.pipeline_mode<synchronous>, transform_indices = @transform_1, window_bounds = array<i64: 256, 32>}, {pipeline_mode = #tpu.pipeline_mode<synchronous>, transform_indices = @transform_2, window_bounds = array<i64: 1, 32>}, {pipeline_mode = #tpu.pipeline_mode<synchronous>, transform_indices = @transform_3, window_bounds = array<i64: 1, 32>}, {pipeline_mode = #tpu.pipeline_mode<synchronous>, transform_indices = @transform_4, window_bounds = array<i64: 16, 32>}, {pipeline_mode = #tpu.pipeline_mode<synchronous>, transform_indices = @transform_5, window_bounds = array<i64: 2, 1, 32>}, {pipeline_mode = #tpu.pipeline_mode<synchronous>, transform_indices = @transform_6, window_bounds = array<i64: 2, 1, 32>}, {pipeline_mode = #tpu.pipeline_mode<synchronous>, transform_indices = @transform_7, window_bounds = array<i64: 2, 32, 96>}, {pipeline_mode = #tpu.pipeline_mode<synchronous>, transform_indices = @transform_8, window_bounds = array<i64: 2, 1, 96>}, {pipeline_mode = #tpu.pipeline_mode<synchronous>, transform_indices = @transform_9, window_bounds = array<i64: 2, 32, 32>}, {pipeline_mode = #tpu.pipeline_mode<synchronous>, transform_indices = @transform_10, window_bounds = array<i64: 2, 1, 32>}, {pipeline_mode = #tpu.pipeline_mode<synchronous>, transform_indices = @transform_11, window_bounds = array<i64: 2, 1, 32>}, {pipeline_mode = #tpu.pipeline_mode<synchronous>, transform_indices = @transform_12, window_bounds = array<i64: 2, 1, 32>}, {pipeline_mode = #tpu.pipeline_mode<synchronous>, transform_indices = @transform_13, window_bounds = array<i64: 2, 32, 128>}, {pipeline_mode = #tpu.pipeline_mode<synchronous>, transform_indices = @transform_14, window_bounds = array<i64: 2, 1, 128>}, {pipeline_mode = #tpu.pipeline_mode<synchronous>, transform_indices = @transform_15, window_bounds = array<i64: 2, 128, 32>}, {pipeline_mode = #tpu.pipeline_mode<synchronous>, transform_indices = @transform_16, window_bounds = array<i64: 2, 1, 32>}, {pipeline_mode = #tpu.pipeline_mode<synchronous>, transform_indices = @transform_17, window_bounds = array<i64: 1, 32>}, {pipeline_mode = #tpu.pipeline_mode<synchronous>, transform_indices = @transform_18, window_bounds = array<i64: 1, 32>}, {pipeline_mode = #tpu.pipeline_mode<synchronous>, transform_indices = @transform_19, window_bounds = array<i64: 32, 128>}, {pipeline_mode = #tpu.pipeline_mode<synchronous>, transform_indices = @transform_20, window_bounds = array<i64: 1, 128>}, {pipeline_mode = #tpu.pipeline_mode<synchronous>, transform_indices = @transform_21, window_bounds = array<i64: 32, 32>}, {pipeline_mode = #tpu.pipeline_mode<synchronous>, transform_indices = @transform_22, window_bounds = array<i64: 1, 32>}, {pipeline_mode = #tpu.pipeline_mode<synchronous>, transform_indices = @transform_23, window_bounds = array<i64: 32, 128>}, {pipeline_mode = #tpu.pipeline_mode<synchronous>, transform_indices = @transform_24, window_bounds = array<i64: 1, 128>}, {transform_indices = @transform_25, window_bounds = array<i64: 1, 16, 128>}]} {
    %c0 = arith.constant 0 : index
    %c0_0 = arith.constant 0 : index
    %c0_1 = arith.constant 0 : index
    %0 = vector.load %arg1[%c0, %c0_0, %c0_1] : memref<1x16x256xf32, #tpu.memory_space<vmem>>, vector<1x16x256xf32>
    %1 = vector.shape_cast %0 : vector<1x16x256xf32> to vector<16x256xf32>
    %c0_2 = arith.constant 0 : index
    %c0_3 = arith.constant 0 : index
    %2 = vector.load %arg2[%c0_2, %c0_3] : memref<256x32xf32, #tpu.memory_space<vmem>>, vector<256x32xf32>
    %cst = arith.constant dense<0.000000e+00> : vector<16x32xf32>
    %3 = tpu.matmul %1, %2, %cst {dimension_numbers = #tpu.dot_dimension_numbers<[1], [0], [0], [1], [0, 0, 1, 1], [], []>} : vector<16x256xf32>, vector<256x32xf32>, vector<16x32xf32> -> vector<16x32xf32>
    %c0_4 = arith.constant 0 : index
    %c0_5 = arith.constant 0 : index
    %4 = vector.load %arg3[%c0_4, %c0_5] : memref<1x32xf32, #tpu.memory_space<vmem>>, vector<1x32xf32>
    %5 = vector.broadcast %4 : vector<1x32xf32> to vector<16x32xf32>
    %6 = arith.addf %3, %5 : vector<16x32xf32>
    %cst_6 = arith.constant 0.000000e+00 : f32
    %7 = vector.broadcast %cst_6 : f32 to vector<32x32xf32>
    %c0_7 = arith.constant 0 : index
    %c0_8 = arith.constant 0 : index
    %8 = vector.load %arg27[%c0_7, %c0_8] : memref<32x32xf32, #tpu.memory_space<vmem>>, vector<32x32xf32>
    tpu.vector_store %arg27[%c0_7, %c0_8], %7 {strides = array<i32>} : memref<32x32xf32, #tpu.memory_space<vmem>>, vector<32x32xf32>,
    %c0_9 = arith.constant 0 : index
    %c0_10 = arith.constant 0 : index
    %9 = vector.load %arg5[%c0_9, %c0_10] : memref<16x32xf32, #tpu.memory_space<vmem>>, vector<16x32xf32>
    %10 = arith.addf %6, %9 : vector<16x32xf32>
    %c0_11 = arith.constant 0 : index
    %c0_12 = arith.constant 0 : index
    %11 = vector.load %arg27[%c0_11, %c0_12] : memref<32x32xf32, #tpu.memory_space<vmem>>, vector<16x32xf32>
    tpu.vector_store %arg27[%c0_11, %c0_12], %10 {strides = array<i32>} : memref<32x32xf32, #tpu.memory_space<vmem>>, vector<16x32xf32>,
    %c0_13 = arith.constant 0 : index
    %c0_14 = arith.constant 0 : index
    %12 = vector.load %arg4[%c0_13, %c0_14] : memref<1x32xf32, #tpu.memory_space<vmem>>, vector<1x32xf32>
    %c16 = arith.constant 16 : index
    %c0_15 = arith.constant 0 : index
    %13 = vector.load %arg27[%c16, %c0_15] : memref<32x32xf32, #tpu.memory_space<vmem>>, vector<1x32xf32>
    tpu.vector_store %arg27[%c16, %c0_15], %12 {strides = array<i32>} : memref<32x32xf32, #tpu.memory_space<vmem>>, vector<1x32xf32>,
    %c0_16 = arith.constant 0 : index
    %c0_17 = arith.constant 0 : index
    %14 = vector.load %arg27[%c0_16, %c0_17] : memref<32x32xf32, #tpu.memory_space<vmem>>, vector<32x32xf32>
    %15 = tpu.iota {dimensions = array<i32: 1>} : vector<1x32xi32>
    %c17_i32 = arith.constant 17 : i32
    %16 = vector.broadcast %c17_i32 : i32 to vector<1x32xi32>
    %17 = arith.cmpi slt, %15, %16 : vector<1x32xi32>
    %cst_18 = arith.constant 0.000000e+00 : f32
    %cst_19 = arith.constant -1.000000e+30 : f32
    %18 = vector.broadcast %cst_18 : f32 to vector<1x32xf32>
    %19 = vector.broadcast %cst_19 : f32 to vector<1x32xf32>
    %20 = arith.select %17, %18, %19 : vector<1x32xi1>, vector<1x32xf32>
    %c0_20 = arith.constant 0 : index
    %c0_21 = arith.constant 0 : index
    %c0_22 = arith.constant 0 : index
    %21 = vector.load %arg6[%c0_20, %c0_21, %c0_22] : memref<2x1x32xf32, #tpu.memory_space<vmem>>, vector<1x1x32xf32>
    %22 = vector.shape_cast %21 : vector<1x1x32xf32> to vector<1x32xf32>
    %c0_23 = arith.constant 0 : index
    %c0_24 = arith.constant 0 : index
    %c0_25 = arith.constant 0 : index
    %23 = vector.load %arg7[%c0_23, %c0_24, %c0_25] : memref<2x1x32xf32, #tpu.memory_space<vmem>>, vector<1x1x32xf32>
    %24 = vector.shape_cast %23 : vector<1x1x32xf32> to vector<1x32xf32>
    %cst_26 = arith.constant dense<0.000000e+00> : vector<32xf32>
    %25 = vector.multi_reduction <add>, %14, %cst_26 [1] : vector<32x32xf32> to vector<32xf32>
    %26 = vector.shape_cast %25 : vector<32xf32> to vector<32x1xf32>
    %cst_27 = arith.constant 3.200000e+01 : f32
    %27 = vector.broadcast %cst_27 : f32 to vector<32x1xf32>
    %28 = arith.divf %26, %27 : vector<32x1xf32>
    %29 = vector.broadcast %28 : vector<32x1xf32> to vector<32x32xf32>
    %30 = arith.subf %14, %29 : vector<32x32xf32>
    %31 = arith.mulf %30, %30 : vector<32x32xf32>
    %cst_28 = arith.constant dense<0.000000e+00> : vector<32xf32>
    %32 = vector.multi_reduction <add>, %31, %cst_28 [1] : vector<32x32xf32> to vector<32xf32>
    %33 = vector.shape_cast %32 : vector<32xf32> to vector<32x1xf32>
    %cst_29 = arith.constant 3.200000e+01 : f32
    %34 = vector.broadcast %cst_29 : f32 to vector<32x1xf32>
    %35 = arith.divf %33, %34 : vector<32x1xf32>
    %cst_30 = arith.constant 9.99999997E-7 : f32
    %36 = vector.broadcast %cst_30 : f32 to vector<32x1xf32>
    %37 = arith.addf %35, %36 : vector<32x1xf32>
    %38 = math.rsqrt %37 : vector<32x1xf32>
    %39 = vector.broadcast %38 : vector<32x1xf32> to vector<32x32xf32>
    %40 = arith.mulf %30, %39 : vector<32x32xf32>
    %41 = vector.broadcast %22 : vector<1x32xf32> to vector<32x32xf32>
    %42 = arith.mulf %40, %41 : vector<32x32xf32>
    %43 = vector.broadcast %24 : vector<1x32xf32> to vector<32x32xf32>
    %44 = arith.addf %42, %43 : vector<32x32xf32>
    %c0_31 = arith.constant 0 : index
    %c0_32 = arith.constant 0 : index
    %c0_33 = arith.constant 0 : index
    %45 = vector.load %arg8[%c0_31, %c0_32, %c0_33] : memref<2x32x96xf32, #tpu.memory_space<vmem>>, vector<1x32x32xf32>
    %46 = vector.shape_cast %45 : vector<1x32x32xf32> to vector<32x32xf32>
    %cst_34 = arith.constant dense<0.000000e+00> : vector<32x32xf32>
    %47 = tpu.matmul %44, %46, %cst_34 {dimension_numbers = #tpu.dot_dimension_numbers<[1], [0], [0], [1], [0, 0, 1, 1], [], []>} : vector<32x32xf32>, vector<32x32xf32>, vector<32x32xf32> -> vector<32x32xf32>
    %c0_35 = arith.constant 0 : index
    %c0_36 = arith.constant 0 : index
    %c0_37 = arith.constant 0 : index
    %48 = vector.load %arg9[%c0_35, %c0_36, %c0_37] : memref<2x1x96xf32, #tpu.memory_space<vmem>>, vector<1x1x32xf32>
    %49 = vector.shape_cast %48 : vector<1x1x32xf32> to vector<1x32xf32>
    %50 = vector.broadcast %49 : vector<1x32xf32> to vector<32x32xf32>
    %51 = arith.addf %47, %50 : vector<32x32xf32>
    %c0_38 = arith.constant 0 : index
    %c0_39 = arith.constant 0 : index
    %c32 = arith.constant 32 : index
    %52 = vector.load %arg8[%c0_38, %c0_39, %c32] : memref<2x32x96xf32, #tpu.memory_space<vmem>>, vector<1x32x32xf32>
    %53 = vector.shape_cast %52 : vector<1x32x32xf32> to vector<32x32xf32>
    %cst_40 = arith.constant dense<0.000000e+00> : vector<32x32xf32>
    %54 = tpu.matmul %44, %53, %cst_40 {dimension_numbers = #tpu.dot_dimension_numbers<[1], [0], [0], [1], [0, 0, 1, 1], [], []>} : vector<32x32xf32>, vector<32x32xf32>, vector<32x32xf32> -> vector<32x32xf32>
    %c0_41 = arith.constant 0 : index
    %c0_42 = arith.constant 0 : index
    %c32_43 = arith.constant 32 : index
    %55 = vector.load %arg9[%c0_41, %c0_42, %c32_43] : memref<2x1x96xf32, #tpu.memory_space<vmem>>, vector<1x1x32xf32>
    %56 = vector.shape_cast %55 : vector<1x1x32xf32> to vector<1x32xf32>
    %57 = vector.broadcast %56 : vector<1x32xf32> to vector<32x32xf32>
    %58 = arith.addf %54, %57 : vector<32x32xf32>
    %c0_44 = arith.constant 0 : index
    %c0_45 = arith.constant 0 : index
    %c64 = arith.constant 64 : index
    %59 = vector.load %arg8[%c0_44, %c0_45, %c64] : memref<2x32x96xf32, #tpu.memory_space<vmem>>, vector<1x32x32xf32>
    %60 = vector.shape_cast %59 : vector<1x32x32xf32> to vector<32x32xf32>
    %cst_46 = arith.constant dense<0.000000e+00> : vector<32x32xf32>
    %61 = tpu.matmul %44, %60, %cst_46 {dimension_numbers = #tpu.dot_dimension_numbers<[1], [0], [0], [1], [0, 0, 1, 1], [], []>} : vector<32x32xf32>, vector<32x32xf32>, vector<32x32xf32> -> vector<32x32xf32>
    %c0_47 = arith.constant 0 : index
    %c0_48 = arith.constant 0 : index
    %c64_49 = arith.constant 64 : index
    %62 = vector.load %arg9[%c0_47, %c0_48, %c64_49] : memref<2x1x96xf32, #tpu.memory_space<vmem>>, vector<1x1x32xf32>
    %63 = vector.shape_cast %62 : vector<1x1x32xf32> to vector<1x32xf32>
    %64 = vector.broadcast %63 : vector<1x32xf32> to vector<32x32xf32>
    %65 = arith.addf %61, %64 : vector<32x32xf32>
    %66 = vector.extract_strided_slice %51 {offsets = [0, 0], sizes = [32, 8], strides = [1, 1]} : vector<32x32xf32> to vector<32x8xf32>
    %67 = vector.extract_strided_slice %58 {offsets = [0, 0], sizes = [32, 8], strides = [1, 1]} : vector<32x32xf32> to vector<32x8xf32>
    %68 = vector.extract_strided_slice %65 {offsets = [0, 0], sizes = [32, 8], strides = [1, 1]} : vector<32x32xf32> to vector<32x8xf32>
    %cst_50 = arith.constant dense<0.000000e+00> : vector<32x32xf32>
    %69 = tpu.matmul %66, %67, %cst_50 {dimension_numbers = #tpu.dot_dimension_numbers<[1], [1], [0], [0], [0, 0, 1, 0], [], []>} : vector<32x8xf32>, vector<32x8xf32>, vector<32x32xf32> -> vector<32x32xf32>
    %cst_51 = arith.constant 0.353553385 : f32
    %70 = vector.broadcast %cst_51 : f32 to vector<32x32xf32>
    %71 = arith.mulf %69, %70 : vector<32x32xf32>
    %72 = vector.broadcast %20 : vector<1x32xf32> to vector<32x32xf32>
    %73 = arith.addf %71, %72 : vector<32x32xf32>
    %cst_52 = arith.constant dense<0xFF800000> : vector<32xf32>
    %74 = vector.multi_reduction <maximumf>, %73, %cst_52 [1] : vector<32x32xf32> to vector<32xf32>
    %75 = vector.shape_cast %74 : vector<32xf32> to vector<32x1xf32>
    %76 = vector.broadcast %75 : vector<32x1xf32> to vector<32x32xf32>
    %77 = arith.subf %73, %76 : vector<32x32xf32>
    %78 = math.exp %77 : vector<32x32xf32>
    %cst_53 = arith.constant dense<0.000000e+00> : vector<32xf32>
    %79 = vector.multi_reduction <add>, %78, %cst_53 [1] : vector<32x32xf32> to vector<32xf32>
    %80 = vector.shape_cast %79 : vector<32xf32> to vector<32x1xf32>
    %81 = tpu.reciprocal %80 {approx = true} : vector<32x1xf32> -> vector<32x1xf32>
    %82 = vector.broadcast %81 : vector<32x1xf32> to vector<32x32xf32>
    %83 = arith.mulf %78, %82 : vector<32x32xf32>
    %cst_54 = arith.constant dense<0.000000e+00> : vector<32x8xf32>
    %84 = tpu.matmul %83, %68, %cst_54 {dimension_numbers = #tpu.dot_dimension_numbers<[1], [0], [0], [1], [0, 0, 1, 1], [], []>} : vector<32x32xf32>, vector<32x8xf32>, vector<32x8xf32> -> vector<32x8xf32>
    %c0_55 = arith.constant 0 : index
    %c0_56 = arith.constant 0 : index
    %85 = vector.load %arg28[%c0_55, %c0_56] : memref<32x32xf32, #tpu.memory_space<vmem>>, vector<32x8xf32>
    tpu.vector_store %arg28[%c0_55, %c0_56], %84 {strides = array<i32>} : memref<32x32xf32, #tpu.memory_space<vmem>>, vector<32x8xf32>,
    %86 = vector.extract_strided_slice %51 {offsets = [0, 8], sizes = [32, 8], strides = [1, 1]} : vector<32x32xf32> to vector<32x8xf32>
    %87 = vector.extract_strided_slice %58 {offsets = [0, 8], sizes = [32, 8], strides = [1, 1]} : vector<32x32xf32> to vector<32x8xf32>
    %88 = vector.extract_strided_slice %65 {offsets = [0, 8], sizes = [32, 8], strides = [1, 1]} : vector<32x32xf32> to vector<32x8xf32>
    %cst_57 = arith.constant dense<0.000000e+00> : vector<32x32xf32>
    %89 = tpu.matmul %86, %87, %cst_57 {dimension_numbers = #tpu.dot_dimension_numbers<[1], [1], [0], [0], [0, 0, 1, 0], [], []>} : vector<32x8xf32>, vector<32x8xf32>, vector<32x32xf32> -> vector<32x32xf32>
    %cst_58 = arith.constant 0.353553385 : f32
    %90 = vector.broadcast %cst_58 : f32 to vector<32x32xf32>
    %91 = arith.mulf %89, %90 : vector<32x32xf32>
    %92 = vector.broadcast %20 : vector<1x32xf32> to vector<32x32xf32>
    %93 = arith.addf %91, %92 : vector<32x32xf32>
    %cst_59 = arith.constant dense<0xFF800000> : vector<32xf32>
    %94 = vector.multi_reduction <maximumf>, %93, %cst_59 [1] : vector<32x32xf32> to vector<32xf32>
    %95 = vector.shape_cast %94 : vector<32xf32> to vector<32x1xf32>
    %96 = vector.broadcast %95 : vector<32x1xf32> to vector<32x32xf32>
    %97 = arith.subf %93, %96 : vector<32x32xf32>
    %98 = math.exp %97 : vector<32x32xf32>
    %cst_60 = arith.constant dense<0.000000e+00> : vector<32xf32>
    %99 = vector.multi_reduction <add>, %98, %cst_60 [1] : vector<32x32xf32> to vector<32xf32>
    %100 = vector.shape_cast %99 : vector<32xf32> to vector<32x1xf32>
    %101 = tpu.reciprocal %100 {approx = true} : vector<32x1xf32> -> vector<32x1xf32>
    %102 = vector.broadcast %101 : vector<32x1xf32> to vector<32x32xf32>
    %103 = arith.mulf %98, %102 : vector<32x32xf32>
    %cst_61 = arith.constant dense<0.000000e+00> : vector<32x8xf32>
    %104 = tpu.matmul %103, %88, %cst_61 {dimension_numbers = #tpu.dot_dimension_numbers<[1], [0], [0], [1], [0, 0, 1, 1], [], []>} : vector<32x32xf32>, vector<32x8xf32>, vector<32x8xf32> -> vector<32x8xf32>
    %c0_62 = arith.constant 0 : index
    %c8 = arith.constant 8 : index
    %105 = vector.load %arg28[%c0_62, %c8] : memref<32x32xf32, #tpu.memory_space<vmem>>, vector<32x8xf32>
    tpu.vector_store %arg28[%c0_62, %c8], %104 {strides = array<i32>} : memref<32x32xf32, #tpu.memory_space<vmem>>, vector<32x8xf32>,
    %106 = vector.extract_strided_slice %51 {offsets = [0, 16], sizes = [32, 8], strides = [1, 1]} : vector<32x32xf32> to vector<32x8xf32>
    %107 = vector.extract_strided_slice %58 {offsets = [0, 16], sizes = [32, 8], strides = [1, 1]} : vector<32x32xf32> to vector<32x8xf32>
    %108 = vector.extract_strided_slice %65 {offsets = [0, 16], sizes = [32, 8], strides = [1, 1]} : vector<32x32xf32> to vector<32x8xf32>
    %cst_63 = arith.constant dense<0.000000e+00> : vector<32x32xf32>
    %109 = tpu.matmul %106, %107, %cst_63 {dimension_numbers = #tpu.dot_dimension_numbers<[1], [1], [0], [0], [0, 0, 1, 0], [], []>} : vector<32x8xf32>, vector<32x8xf32>, vector<32x32xf32> -> vector<32x32xf32>
    %cst_64 = arith.constant 0.353553385 : f32
    %110 = vector.broadcast %cst_64 : f32 to vector<32x32xf32>
    %111 = arith.mulf %109, %110 : vector<32x32xf32>
    %112 = vector.broadcast %20 : vector<1x32xf32> to vector<32x32xf32>
    %113 = arith.addf %111, %112 : vector<32x32xf32>
    %cst_65 = arith.constant dense<0xFF800000> : vector<32xf32>
    %114 = vector.multi_reduction <maximumf>, %113, %cst_65 [1] : vector<32x32xf32> to vector<32xf32>
    %115 = vector.shape_cast %114 : vector<32xf32> to vector<32x1xf32>
    %116 = vector.broadcast %115 : vector<32x1xf32> to vector<32x32xf32>
    %117 = arith.subf %113, %116 : vector<32x32xf32>
    %118 = math.exp %117 : vector<32x32xf32>
    %cst_66 = arith.constant dense<0.000000e+00> : vector<32xf32>
    %119 = vector.multi_reduction <add>, %118, %cst_66 [1] : vector<32x32xf32> to vector<32xf32>
    %120 = vector.shape_cast %119 : vector<32xf32> to vector<32x1xf32>
    %121 = tpu.reciprocal %120 {approx = true} : vector<32x1xf32> -> vector<32x1xf32>
    %122 = vector.broadcast %121 : vector<32x1xf32> to vector<32x32xf32>
    %123 = arith.mulf %118, %122 : vector<32x32xf32>
    %cst_67 = arith.constant dense<0.000000e+00> : vector<32x8xf32>
    %124 = tpu.matmul %123, %108, %cst_67 {dimension_numbers = #tpu.dot_dimension_numbers<[1], [0], [0], [1], [0, 0, 1, 1], [], []>} : vector<32x32xf32>, vector<32x8xf32>, vector<32x8xf32> -> vector<32x8xf32>
    %c0_68 = arith.constant 0 : index
    %c16_69 = arith.constant 16 : index
    %125 = vector.load %arg28[%c0_68, %c16_69] : memref<32x32xf32, #tpu.memory_space<vmem>>, vector<32x8xf32>
    tpu.vector_store %arg28[%c0_68, %c16_69], %124 {strides = array<i32>} : memref<32x32xf32, #tpu.memory_space<vmem>>, vector<32x8xf32>,
    %126 = vector.extract_strided_slice %51 {offsets = [0, 24], sizes = [32, 8], strides = [1, 1]} : vector<32x32xf32> to vector<32x8xf32>
    %127 = vector.extract_strided_slice %58 {offsets = [0, 24], sizes = [32, 8], strides = [1, 1]} : vector<32x32xf32> to vector<32x8xf32>
    %128 = vector.extract_strided_slice %65 {offsets = [0, 24], sizes = [32, 8], strides = [1, 1]} : vector<32x32xf32> to vector<32x8xf32>
    %cst_70 = arith.constant dense<0.000000e+00> : vector<32x32xf32>
    %129 = tpu.matmul %126, %127, %cst_70 {dimension_numbers = #tpu.dot_dimension_numbers<[1], [1], [0], [0], [0, 0, 1, 0], [], []>} : vector<32x8xf32>, vector<32x8xf32>, vector<32x32xf32> -> vector<32x32xf32>
    %cst_71 = arith.constant 0.353553385 : f32
    %130 = vector.broadcast %cst_71 : f32 to vector<32x32xf32>
    %131 = arith.mulf %129, %130 : vector<32x32xf32>
    %132 = vector.broadcast %20 : vector<1x32xf32> to vector<32x32xf32>
    %133 = arith.addf %131, %132 : vector<32x32xf32>
    %cst_72 = arith.constant dense<0xFF800000> : vector<32xf32>
    %134 = vector.multi_reduction <maximumf>, %133, %cst_72 [1] : vector<32x32xf32> to vector<32xf32>
    %135 = vector.shape_cast %134 : vector<32xf32> to vector<32x1xf32>
    %136 = vector.broadcast %135 : vector<32x1xf32> to vector<32x32xf32>
    %137 = arith.subf %133, %136 : vector<32x32xf32>
    %138 = math.exp %137 : vector<32x32xf32>
    %cst_73 = arith.constant dense<0.000000e+00> : vector<32xf32>
    %139 = vector.multi_reduction <add>, %138, %cst_73 [1] : vector<32x32xf32> to vector<32xf32>
    %140 = vector.shape_cast %139 : vector<32xf32> to vector<32x1xf32>
    %141 = tpu.reciprocal %140 {approx = true} : vector<32x1xf32> -> vector<32x1xf32>
    %142 = vector.broadcast %141 : vector<32x1xf32> to vector<32x32xf32>
    %143 = arith.mulf %138, %142 : vector<32x32xf32>
    %cst_74 = arith.constant dense<0.000000e+00> : vector<32x8xf32>
    %144 = tpu.matmul %143, %128, %cst_74 {dimension_numbers = #tpu.dot_dimension_numbers<[1], [0], [0], [1], [0, 0, 1, 1], [], []>} : vector<32x32xf32>, vector<32x8xf32>, vector<32x8xf32> -> vector<32x8xf32>
    %c0_75 = arith.constant 0 : index
    %c24 = arith.constant 24 : index
    %145 = vector.load %arg28[%c0_75, %c24] : memref<32x32xf32, #tpu.memory_space<vmem>>, vector<32x8xf32>
    tpu.vector_store %arg28[%c0_75, %c24], %144 {strides = array<i32>} : memref<32x32xf32, #tpu.memory_space<vmem>>, vector<32x8xf32>,
    %c0_76 = arith.constant 0 : index
    %c0_77 = arith.constant 0 : index
    %146 = vector.load %arg28[%c0_76, %c0_77] : memref<32x32xf32, #tpu.memory_space<vmem>>, vector<32x32xf32>
    %c0_78 = arith.constant 0 : index
    %c0_79 = arith.constant 0 : index
    %c0_80 = arith.constant 0 : index
    %147 = vector.load %arg10[%c0_78, %c0_79, %c0_80] : memref<2x32x32xf32, #tpu.memory_space<vmem>>, vector<1x32x32xf32>
    %148 = vector.shape_cast %147 : vector<1x32x32xf32> to vector<32x32xf32>
    %cst_81 = arith.constant dense<0.000000e+00> : vector<32x32xf32>
    %149 = tpu.matmul %146, %148, %cst_81 {dimension_numbers = #tpu.dot_dimension_numbers<[1], [0], [0], [1], [0, 0, 1, 1], [], []>} : vector<32x32xf32>, vector<32x32xf32>, vector<32x32xf32> -> vector<32x32xf32>
    %150 = arith.addf %14, %149 : vector<32x32xf32>
    %c0_82 = arith.constant 0 : index
    %c0_83 = arith.constant 0 : index
    %c0_84 = arith.constant 0 : index
    %151 = vector.load %arg11[%c0_82, %c0_83, %c0_84] : memref<2x1x32xf32, #tpu.memory_space<vmem>>, vector<1x1x32xf32>
    %152 = vector.shape_cast %151 : vector<1x1x32xf32> to vector<1x32xf32>
    %153 = vector.broadcast %152 : vector<1x32xf32> to vector<32x32xf32>
    %154 = arith.addf %150, %153 : vector<32x32xf32>
    %c0_85 = arith.constant 0 : index
    %c0_86 = arith.constant 0 : index
    %c0_87 = arith.constant 0 : index
    %155 = vector.load %arg12[%c0_85, %c0_86, %c0_87] : memref<2x1x32xf32, #tpu.memory_space<vmem>>, vector<1x1x32xf32>
    %156 = vector.shape_cast %155 : vector<1x1x32xf32> to vector<1x32xf32>
    %c0_88 = arith.constant 0 : index
    %c0_89 = arith.constant 0 : index
    %c0_90 = arith.constant 0 : index
    %157 = vector.load %arg13[%c0_88, %c0_89, %c0_90] : memref<2x1x32xf32, #tpu.memory_space<vmem>>, vector<1x1x32xf32>
    %158 = vector.shape_cast %157 : vector<1x1x32xf32> to vector<1x32xf32>
    %cst_91 = arith.constant dense<0.000000e+00> : vector<32xf32>
    %159 = vector.multi_reduction <add>, %154, %cst_91 [1] : vector<32x32xf32> to vector<32xf32>
    %160 = vector.shape_cast %159 : vector<32xf32> to vector<32x1xf32>
    %cst_92 = arith.constant 3.200000e+01 : f32
    %161 = vector.broadcast %cst_92 : f32 to vector<32x1xf32>
    %162 = arith.divf %160, %161 : vector<32x1xf32>
    %163 = vector.broadcast %162 : vector<32x1xf32> to vector<32x32xf32>
    %164 = arith.subf %154, %163 : vector<32x32xf32>
    %165 = arith.mulf %164, %164 : vector<32x32xf32>
    %cst_93 = arith.constant dense<0.000000e+00> : vector<32xf32>
    %166 = vector.multi_reduction <add>, %165, %cst_93 [1] : vector<32x32xf32> to vector<32xf32>
    %167 = vector.shape_cast %166 : vector<32xf32> to vector<32x1xf32>
    %cst_94 = arith.constant 3.200000e+01 : f32
    %168 = vector.broadcast %cst_94 : f32 to vector<32x1xf32>
    %169 = arith.divf %167, %168 : vector<32x1xf32>
    %cst_95 = arith.constant 9.99999997E-7 : f32
    %170 = vector.broadcast %cst_95 : f32 to vector<32x1xf32>
    %171 = arith.addf %169, %170 : vector<32x1xf32>
    %172 = math.rsqrt %171 : vector<32x1xf32>
    %173 = vector.broadcast %172 : vector<32x1xf32> to vector<32x32xf32>
    %174 = arith.mulf %164, %173 : vector<32x32xf32>
    %175 = vector.broadcast %156 : vector<1x32xf32> to vector<32x32xf32>
    %176 = arith.mulf %174, %175 : vector<32x32xf32>
    %177 = vector.broadcast %158 : vector<1x32xf32> to vector<32x32xf32>
    %178 = arith.addf %176, %177 : vector<32x32xf32>
    %c0_96 = arith.constant 0 : index
    %c0_97 = arith.constant 0 : index
    %c0_98 = arith.constant 0 : index
    %179 = vector.load %arg14[%c0_96, %c0_97, %c0_98] : memref<2x32x128xf32, #tpu.memory_space<vmem>>, vector<1x32x128xf32>
    %180 = vector.shape_cast %179 : vector<1x32x128xf32> to vector<32x128xf32>
    %cst_99 = arith.constant dense<0.000000e+00> : vector<32x128xf32>
    %181 = tpu.matmul %178, %180, %cst_99 {dimension_numbers = #tpu.dot_dimension_numbers<[1], [0], [0], [1], [0, 0, 1, 1], [], []>} : vector<32x32xf32>, vector<32x128xf32>, vector<32x128xf32> -> vector<32x128xf32>
    %c0_100 = arith.constant 0 : index
    %c0_101 = arith.constant 0 : index
    %c0_102 = arith.constant 0 : index
    %182 = vector.load %arg15[%c0_100, %c0_101, %c0_102] : memref<2x1x128xf32, #tpu.memory_space<vmem>>, vector<1x1x128xf32>
    %183 = vector.shape_cast %182 : vector<1x1x128xf32> to vector<1x128xf32>
    %184 = vector.broadcast %183 : vector<1x128xf32> to vector<32x128xf32>
    %185 = arith.addf %181, %184 : vector<32x128xf32>
    %186 = arith.mulf %185, %185 : vector<32x128xf32>
    %187 = arith.mulf %185, %186 : vector<32x128xf32>
    %cst_103 = arith.constant 4.471500e-02 : f32
    %188 = vector.broadcast %cst_103 : f32 to vector<32x128xf32>
    %189 = arith.mulf %188, %187 : vector<32x128xf32>
    %190 = arith.addf %185, %189 : vector<32x128xf32>
    %cst_104 = arith.constant 0.797884583 : f32
    %191 = vector.broadcast %cst_104 : f32 to vector<32x128xf32>
    %192 = arith.mulf %191, %190 : vector<32x128xf32>
    %193 = math.tanh %192 : vector<32x128xf32>
    %cst_105 = arith.constant 1.000000e+00 : f32
    %194 = vector.broadcast %cst_105 : f32 to vector<32x128xf32>
    %195 = arith.addf %194, %193 : vector<32x128xf32>
    %cst_106 = arith.constant 5.000000e-01 : f32
    %196 = vector.broadcast %cst_106 : f32 to vector<32x128xf32>
    %197 = arith.mulf %196, %195 : vector<32x128xf32>
    %198 = arith.mulf %185, %197 : vector<32x128xf32>
    %c0_107 = arith.constant 0 : index
    %c0_108 = arith.constant 0 : index
    %c0_109 = arith.constant 0 : index
    %199 = vector.load %arg16[%c0_107, %c0_108, %c0_109] : memref<2x128x32xf32, #tpu.memory_space<vmem>>, vector<1x128x32xf32>
    %200 = vector.shape_cast %199 : vector<1x128x32xf32> to vector<128x32xf32>
    %cst_110 = arith.constant dense<0.000000e+00> : vector<32x32xf32>
    %201 = tpu.matmul %198, %200, %cst_110 {dimension_numbers = #tpu.dot_dimension_numbers<[1], [0], [0], [1], [0, 0, 1, 1], [], []>} : vector<32x128xf32>, vector<128x32xf32>, vector<32x32xf32> -> vector<32x32xf32>
    %c0_111 = arith.constant 0 : index
    %c0_112 = arith.constant 0 : index
    %c0_113 = arith.constant 0 : index
    %202 = vector.load %arg17[%c0_111, %c0_112, %c0_113] : memref<2x1x32xf32, #tpu.memory_space<vmem>>, vector<1x1x32xf32>
    %203 = vector.shape_cast %202 : vector<1x1x32xf32> to vector<1x32xf32>
    %204 = vector.broadcast %203 : vector<1x32xf32> to vector<32x32xf32>
    %205 = arith.addf %201, %204 : vector<32x32xf32>
    %206 = arith.addf %154, %205 : vector<32x32xf32>
    %c1 = arith.constant 1 : index
    %c0_114 = arith.constant 0 : index
    %c0_115 = arith.constant 0 : index
    %207 = vector.load %arg6[%c1, %c0_114, %c0_115] : memref<2x1x32xf32, #tpu.memory_space<vmem>>, vector<1x1x32xf32>
    %208 = vector.shape_cast %207 : vector<1x1x32xf32> to vector<1x32xf32>
    %c1_116 = arith.constant 1 : index
    %c0_117 = arith.constant 0 : index
    %c0_118 = arith.constant 0 : index
    %209 = vector.load %arg7[%c1_116, %c0_117, %c0_118] : memref<2x1x32xf32, #tpu.memory_space<vmem>>, vector<1x1x32xf32>
    %210 = vector.shape_cast %209 : vector<1x1x32xf32> to vector<1x32xf32>
    %cst_119 = arith.constant dense<0.000000e+00> : vector<32xf32>
    %211 = vector.multi_reduction <add>, %206, %cst_119 [1] : vector<32x32xf32> to vector<32xf32>
    %212 = vector.shape_cast %211 : vector<32xf32> to vector<32x1xf32>
    %cst_120 = arith.constant 3.200000e+01 : f32
    %213 = vector.broadcast %cst_120 : f32 to vector<32x1xf32>
    %214 = arith.divf %212, %213 : vector<32x1xf32>
    %215 = vector.broadcast %214 : vector<32x1xf32> to vector<32x32xf32>
    %216 = arith.subf %206, %215 : vector<32x32xf32>
    %217 = arith.mulf %216, %216 : vector<32x32xf32>
    %cst_121 = arith.constant dense<0.000000e+00> : vector<32xf32>
    %218 = vector.multi_reduction <add>, %217, %cst_121 [1] : vector<32x32xf32> to vector<32xf32>
    %219 = vector.shape_cast %218 : vector<32xf32> to vector<32x1xf32>
    %cst_122 = arith.constant 3.200000e+01 : f32
    %220 = vector.broadcast %cst_122 : f32 to vector<32x1xf32>
    %221 = arith.divf %219, %220 : vector<32x1xf32>
    %cst_123 = arith.constant 9.99999997E-7 : f32
    %222 = vector.broadcast %cst_123 : f32 to vector<32x1xf32>
    %223 = arith.addf %221, %222 : vector<32x1xf32>
    %224 = math.rsqrt %223 : vector<32x1xf32>
    %225 = vector.broadcast %224 : vector<32x1xf32> to vector<32x32xf32>
    %226 = arith.mulf %216, %225 : vector<32x32xf32>
    %227 = vector.broadcast %208 : vector<1x32xf32> to vector<32x32xf32>
    %228 = arith.mulf %226, %227 : vector<32x32xf32>
    %229 = vector.broadcast %210 : vector<1x32xf32> to vector<32x32xf32>
    %230 = arith.addf %228, %229 : vector<32x32xf32>
    %c1_124 = arith.constant 1 : index
    %c0_125 = arith.constant 0 : index
    %c0_126 = arith.constant 0 : index
    %231 = vector.load %arg8[%c1_124, %c0_125, %c0_126] : memref<2x32x96xf32, #tpu.memory_space<vmem>>, vector<1x32x32xf32>
    %232 = vector.shape_cast %231 : vector<1x32x32xf32> to vector<32x32xf32>
    %cst_127 = arith.constant dense<0.000000e+00> : vector<32x32xf32>
    %233 = tpu.matmul %230, %232, %cst_127 {dimension_numbers = #tpu.dot_dimension_numbers<[1], [0], [0], [1], [0, 0, 1, 1], [], []>} : vector<32x32xf32>, vector<32x32xf32>, vector<32x32xf32> -> vector<32x32xf32>
    %c1_128 = arith.constant 1 : index
    %c0_129 = arith.constant 0 : index
    %c0_130 = arith.constant 0 : index
    %234 = vector.load %arg9[%c1_128, %c0_129, %c0_130] : memref<2x1x96xf32, #tpu.memory_space<vmem>>, vector<1x1x32xf32>
    %235 = vector.shape_cast %234 : vector<1x1x32xf32> to vector<1x32xf32>
    %236 = vector.broadcast %235 : vector<1x32xf32> to vector<32x32xf32>
    %237 = arith.addf %233, %236 : vector<32x32xf32>
    %c1_131 = arith.constant 1 : index
    %c0_132 = arith.constant 0 : index
    %c32_133 = arith.constant 32 : index
    %238 = vector.load %arg8[%c1_131, %c0_132, %c32_133] : memref<2x32x96xf32, #tpu.memory_space<vmem>>, vector<1x32x32xf32>
    %239 = vector.shape_cast %238 : vector<1x32x32xf32> to vector<32x32xf32>
    %cst_134 = arith.constant dense<0.000000e+00> : vector<32x32xf32>
    %240 = tpu.matmul %230, %239, %cst_134 {dimension_numbers = #tpu.dot_dimension_numbers<[1], [0], [0], [1], [0, 0, 1, 1], [], []>} : vector<32x32xf32>, vector<32x32xf32>, vector<32x32xf32> -> vector<32x32xf32>
    %c1_135 = arith.constant 1 : index
    %c0_136 = arith.constant 0 : index
    %c32_137 = arith.constant 32 : index
    %241 = vector.load %arg9[%c1_135, %c0_136, %c32_137] : memref<2x1x96xf32, #tpu.memory_space<vmem>>, vector<1x1x32xf32>
    %242 = vector.shape_cast %241 : vector<1x1x32xf32> to vector<1x32xf32>
    %243 = vector.broadcast %242 : vector<1x32xf32> to vector<32x32xf32>
    %244 = arith.addf %240, %243 : vector<32x32xf32>
    %c1_138 = arith.constant 1 : index
    %c0_139 = arith.constant 0 : index
    %c64_140 = arith.constant 64 : index
    %245 = vector.load %arg8[%c1_138, %c0_139, %c64_140] : memref<2x32x96xf32, #tpu.memory_space<vmem>>, vector<1x32x32xf32>
    %246 = vector.shape_cast %245 : vector<1x32x32xf32> to vector<32x32xf32>
    %cst_141 = arith.constant dense<0.000000e+00> : vector<32x32xf32>
    %247 = tpu.matmul %230, %246, %cst_141 {dimension_numbers = #tpu.dot_dimension_numbers<[1], [0], [0], [1], [0, 0, 1, 1], [], []>} : vector<32x32xf32>, vector<32x32xf32>, vector<32x32xf32> -> vector<32x32xf32>
    %c1_142 = arith.constant 1 : index
    %c0_143 = arith.constant 0 : index
    %c64_144 = arith.constant 64 : index
    %248 = vector.load %arg9[%c1_142, %c0_143, %c64_144] : memref<2x1x96xf32, #tpu.memory_space<vmem>>, vector<1x1x32xf32>
    %249 = vector.shape_cast %248 : vector<1x1x32xf32> to vector<1x32xf32>
    %250 = vector.broadcast %249 : vector<1x32xf32> to vector<32x32xf32>
    %251 = arith.addf %247, %250 : vector<32x32xf32>
    %252 = vector.extract_strided_slice %237 {offsets = [0, 0], sizes = [32, 8], strides = [1, 1]} : vector<32x32xf32> to vector<32x8xf32>
    %253 = vector.extract_strided_slice %244 {offsets = [0, 0], sizes = [32, 8], strides = [1, 1]} : vector<32x32xf32> to vector<32x8xf32>
    %254 = vector.extract_strided_slice %251 {offsets = [0, 0], sizes = [32, 8], strides = [1, 1]} : vector<32x32xf32> to vector<32x8xf32>
    %cst_145 = arith.constant dense<0.000000e+00> : vector<32x32xf32>
    %255 = tpu.matmul %252, %253, %cst_145 {dimension_numbers = #tpu.dot_dimension_numbers<[1], [1], [0], [0], [0, 0, 1, 0], [], []>} : vector<32x8xf32>, vector<32x8xf32>, vector<32x32xf32> -> vector<32x32xf32>
    %cst_146 = arith.constant 0.353553385 : f32
    %256 = vector.broadcast %cst_146 : f32 to vector<32x32xf32>
    %257 = arith.mulf %255, %256 : vector<32x32xf32>
    %258 = vector.broadcast %20 : vector<1x32xf32> to vector<32x32xf32>
    %259 = arith.addf %257, %258 : vector<32x32xf32>
    %cst_147 = arith.constant dense<0xFF800000> : vector<32xf32>
    %260 = vector.multi_reduction <maximumf>, %259, %cst_147 [1] : vector<32x32xf32> to vector<32xf32>
    %261 = vector.shape_cast %260 : vector<32xf32> to vector<32x1xf32>
    %262 = vector.broadcast %261 : vector<32x1xf32> to vector<32x32xf32>
    %263 = arith.subf %259, %262 : vector<32x32xf32>
    %264 = math.exp %263 : vector<32x32xf32>
    %cst_148 = arith.constant dense<0.000000e+00> : vector<32xf32>
    %265 = vector.multi_reduction <add>, %264, %cst_148 [1] : vector<32x32xf32> to vector<32xf32>
    %266 = vector.shape_cast %265 : vector<32xf32> to vector<32x1xf32>
    %267 = tpu.reciprocal %266 {approx = true} : vector<32x1xf32> -> vector<32x1xf32>
    %268 = vector.broadcast %267 : vector<32x1xf32> to vector<32x32xf32>
    %269 = arith.mulf %264, %268 : vector<32x32xf32>
    %cst_149 = arith.constant dense<0.000000e+00> : vector<32x8xf32>
    %270 = tpu.matmul %269, %254, %cst_149 {dimension_numbers = #tpu.dot_dimension_numbers<[1], [0], [0], [1], [0, 0, 1, 1], [], []>} : vector<32x32xf32>, vector<32x8xf32>, vector<32x8xf32> -> vector<32x8xf32>
    %c0_150 = arith.constant 0 : index
    %c0_151 = arith.constant 0 : index
    %271 = vector.load %arg28[%c0_150, %c0_151] : memref<32x32xf32, #tpu.memory_space<vmem>>, vector<32x8xf32>
    tpu.vector_store %arg28[%c0_150, %c0_151], %270 {strides = array<i32>} : memref<32x32xf32, #tpu.memory_space<vmem>>, vector<32x8xf32>,
    %272 = vector.extract_strided_slice %237 {offsets = [0, 8], sizes = [32, 8], strides = [1, 1]} : vector<32x32xf32> to vector<32x8xf32>
    %273 = vector.extract_strided_slice %244 {offsets = [0, 8], sizes = [32, 8], strides = [1, 1]} : vector<32x32xf32> to vector<32x8xf32>
    %274 = vector.extract_strided_slice %251 {offsets = [0, 8], sizes = [32, 8], strides = [1, 1]} : vector<32x32xf32> to vector<32x8xf32>
    %cst_152 = arith.constant dense<0.000000e+00> : vector<32x32xf32>
    %275 = tpu.matmul %272, %273, %cst_152 {dimension_numbers = #tpu.dot_dimension_numbers<[1], [1], [0], [0], [0, 0, 1, 0], [], []>} : vector<32x8xf32>, vector<32x8xf32>, vector<32x32xf32> -> vector<32x32xf32>
    %cst_153 = arith.constant 0.353553385 : f32
    %276 = vector.broadcast %cst_153 : f32 to vector<32x32xf32>
    %277 = arith.mulf %275, %276 : vector<32x32xf32>
    %278 = vector.broadcast %20 : vector<1x32xf32> to vector<32x32xf32>
    %279 = arith.addf %277, %278 : vector<32x32xf32>
    %cst_154 = arith.constant dense<0xFF800000> : vector<32xf32>
    %280 = vector.multi_reduction <maximumf>, %279, %cst_154 [1] : vector<32x32xf32> to vector<32xf32>
    %281 = vector.shape_cast %280 : vector<32xf32> to vector<32x1xf32>
    %282 = vector.broadcast %281 : vector<32x1xf32> to vector<32x32xf32>
    %283 = arith.subf %279, %282 : vector<32x32xf32>
    %284 = math.exp %283 : vector<32x32xf32>
    %cst_155 = arith.constant dense<0.000000e+00> : vector<32xf32>
    %285 = vector.multi_reduction <add>, %284, %cst_155 [1] : vector<32x32xf32> to vector<32xf32>
    %286 = vector.shape_cast %285 : vector<32xf32> to vector<32x1xf32>
    %287 = tpu.reciprocal %286 {approx = true} : vector<32x1xf32> -> vector<32x1xf32>
    %288 = vector.broadcast %287 : vector<32x1xf32> to vector<32x32xf32>
    %289 = arith.mulf %284, %288 : vector<32x32xf32>
    %cst_156 = arith.constant dense<0.000000e+00> : vector<32x8xf32>
    %290 = tpu.matmul %289, %274, %cst_156 {dimension_numbers = #tpu.dot_dimension_numbers<[1], [0], [0], [1], [0, 0, 1, 1], [], []>} : vector<32x32xf32>, vector<32x8xf32>, vector<32x8xf32> -> vector<32x8xf32>
    %c0_157 = arith.constant 0 : index
    %c8_158 = arith.constant 8 : index
    %291 = vector.load %arg28[%c0_157, %c8_158] : memref<32x32xf32, #tpu.memory_space<vmem>>, vector<32x8xf32>
    tpu.vector_store %arg28[%c0_157, %c8_158], %290 {strides = array<i32>} : memref<32x32xf32, #tpu.memory_space<vmem>>, vector<32x8xf32>,
    %292 = vector.extract_strided_slice %237 {offsets = [0, 16], sizes = [32, 8], strides = [1, 1]} : vector<32x32xf32> to vector<32x8xf32>
    %293 = vector.extract_strided_slice %244 {offsets = [0, 16], sizes = [32, 8], strides = [1, 1]} : vector<32x32xf32> to vector<32x8xf32>
    %294 = vector.extract_strided_slice %251 {offsets = [0, 16], sizes = [32, 8], strides = [1, 1]} : vector<32x32xf32> to vector<32x8xf32>
    %cst_159 = arith.constant dense<0.000000e+00> : vector<32x32xf32>
    %295 = tpu.matmul %292, %293, %cst_159 {dimension_numbers = #tpu.dot_dimension_numbers<[1], [1], [0], [0], [0, 0, 1, 0], [], []>} : vector<32x8xf32>, vector<32x8xf32>, vector<32x32xf32> -> vector<32x32xf32>
    %cst_160 = arith.constant 0.353553385 : f32
    %296 = vector.broadcast %cst_160 : f32 to vector<32x32xf32>
    %297 = arith.mulf %295, %296 : vector<32x32xf32>
    %298 = vector.broadcast %20 : vector<1x32xf32> to vector<32x32xf32>
    %299 = arith.addf %297, %298 : vector<32x32xf32>
    %cst_161 = arith.constant dense<0xFF800000> : vector<32xf32>
    %300 = vector.multi_reduction <maximumf>, %299, %cst_161 [1] : vector<32x32xf32> to vector<32xf32>
    %301 = vector.shape_cast %300 : vector<32xf32> to vector<32x1xf32>
    %302 = vector.broadcast %301 : vector<32x1xf32> to vector<32x32xf32>
    %303 = arith.subf %299, %302 : vector<32x32xf32>
    %304 = math.exp %303 : vector<32x32xf32>
    %cst_162 = arith.constant dense<0.000000e+00> : vector<32xf32>
    %305 = vector.multi_reduction <add>, %304, %cst_162 [1] : vector<32x32xf32> to vector<32xf32>
    %306 = vector.shape_cast %305 : vector<32xf32> to vector<32x1xf32>
    %307 = tpu.reciprocal %306 {approx = true} : vector<32x1xf32> -> vector<32x1xf32>
    %308 = vector.broadcast %307 : vector<32x1xf32> to vector<32x32xf32>
    %309 = arith.mulf %304, %308 : vector<32x32xf32>
    %cst_163 = arith.constant dense<0.000000e+00> : vector<32x8xf32>
    %310 = tpu.matmul %309, %294, %cst_163 {dimension_numbers = #tpu.dot_dimension_numbers<[1], [0], [0], [1], [0, 0, 1, 1], [], []>} : vector<32x32xf32>, vector<32x8xf32>, vector<32x8xf32> -> vector<32x8xf32>
    %c0_164 = arith.constant 0 : index
    %c16_165 = arith.constant 16 : index
    %311 = vector.load %arg28[%c0_164, %c16_165] : memref<32x32xf32, #tpu.memory_space<vmem>>, vector<32x8xf32>
    tpu.vector_store %arg28[%c0_164, %c16_165], %310 {strides = array<i32>} : memref<32x32xf32, #tpu.memory_space<vmem>>, vector<32x8xf32>,
    %312 = vector.extract_strided_slice %237 {offsets = [0, 24], sizes = [32, 8], strides = [1, 1]} : vector<32x32xf32> to vector<32x8xf32>
    %313 = vector.extract_strided_slice %244 {offsets = [0, 24], sizes = [32, 8], strides = [1, 1]} : vector<32x32xf32> to vector<32x8xf32>
    %314 = vector.extract_strided_slice %251 {offsets = [0, 24], sizes = [32, 8], strides = [1, 1]} : vector<32x32xf32> to vector<32x8xf32>
    %cst_166 = arith.constant dense<0.000000e+00> : vector<32x32xf32>
    %315 = tpu.matmul %312, %313, %cst_166 {dimension_numbers = #tpu.dot_dimension_numbers<[1], [1], [0], [0], [0, 0, 1, 0], [], []>} : vector<32x8xf32>, vector<32x8xf32>, vector<32x32xf32> -> vector<32x32xf32>
    %cst_167 = arith.constant 0.353553385 : f32
    %316 = vector.broadcast %cst_167 : f32 to vector<32x32xf32>
    %317 = arith.mulf %315, %316 : vector<32x32xf32>
    %318 = vector.broadcast %20 : vector<1x32xf32> to vector<32x32xf32>
    %319 = arith.addf %317, %318 : vector<32x32xf32>
    %cst_168 = arith.constant dense<0xFF800000> : vector<32xf32>
    %320 = vector.multi_reduction <maximumf>, %319, %cst_168 [1] : vector<32x32xf32> to vector<32xf32>
    %321 = vector.shape_cast %320 : vector<32xf32> to vector<32x1xf32>
    %322 = vector.broadcast %321 : vector<32x1xf32> to vector<32x32xf32>
    %323 = arith.subf %319, %322 : vector<32x32xf32>
    %324 = math.exp %323 : vector<32x32xf32>
    %cst_169 = arith.constant dense<0.000000e+00> : vector<32xf32>
    %325 = vector.multi_reduction <add>, %324, %cst_169 [1] : vector<32x32xf32> to vector<32xf32>
    %326 = vector.shape_cast %325 : vector<32xf32> to vector<32x1xf32>
    %327 = tpu.reciprocal %326 {approx = true} : vector<32x1xf32> -> vector<32x1xf32>
    %328 = vector.broadcast %327 : vector<32x1xf32> to vector<32x32xf32>
    %329 = arith.mulf %324, %328 : vector<32x32xf32>
    %cst_170 = arith.constant dense<0.000000e+00> : vector<32x8xf32>
    %330 = tpu.matmul %329, %314, %cst_170 {dimension_numbers = #tpu.dot_dimension_numbers<[1], [0], [0], [1], [0, 0, 1, 1], [], []>} : vector<32x32xf32>, vector<32x8xf32>, vector<32x8xf32> -> vector<32x8xf32>
    %c0_171 = arith.constant 0 : index
    %c24_172 = arith.constant 24 : index
    %331 = vector.load %arg28[%c0_171, %c24_172] : memref<32x32xf32, #tpu.memory_space<vmem>>, vector<32x8xf32>
    tpu.vector_store %arg28[%c0_171, %c24_172], %330 {strides = array<i32>} : memref<32x32xf32, #tpu.memory_space<vmem>>, vector<32x8xf32>,
    %c0_173 = arith.constant 0 : index
    %c0_174 = arith.constant 0 : index
    %332 = vector.load %arg28[%c0_173, %c0_174] : memref<32x32xf32, #tpu.memory_space<vmem>>, vector<32x32xf32>
    %c1_175 = arith.constant 1 : index
    %c0_176 = arith.constant 0 : index
    %c0_177 = arith.constant 0 : index
    %333 = vector.load %arg10[%c1_175, %c0_176, %c0_177] : memref<2x32x32xf32, #tpu.memory_space<vmem>>, vector<1x32x32xf32>
    %334 = vector.shape_cast %333 : vector<1x32x32xf32> to vector<32x32xf32>
    %cst_178 = arith.constant dense<0.000000e+00> : vector<32x32xf32>
    %335 = tpu.matmul %332, %334, %cst_178 {dimension_numbers = #tpu.dot_dimension_numbers<[1], [0], [0], [1], [0, 0, 1, 1], [], []>} : vector<32x32xf32>, vector<32x32xf32>, vector<32x32xf32> -> vector<32x32xf32>
    %336 = arith.addf %206, %335 : vector<32x32xf32>
    %c1_179 = arith.constant 1 : index
    %c0_180 = arith.constant 0 : index
    %c0_181 = arith.constant 0 : index
    %337 = vector.load %arg11[%c1_179, %c0_180, %c0_181] : memref<2x1x32xf32, #tpu.memory_space<vmem>>, vector<1x1x32xf32>
    %338 = vector.shape_cast %337 : vector<1x1x32xf32> to vector<1x32xf32>
    %339 = vector.broadcast %338 : vector<1x32xf32> to vector<32x32xf32>
    %340 = arith.addf %336, %339 : vector<32x32xf32>
    %c1_182 = arith.constant 1 : index
    %c0_183 = arith.constant 0 : index
    %c0_184 = arith.constant 0 : index
    %341 = vector.load %arg12[%c1_182, %c0_183, %c0_184] : memref<2x1x32xf32, #tpu.memory_space<vmem>>, vector<1x1x32xf32>
    %342 = vector.shape_cast %341 : vector<1x1x32xf32> to vector<1x32xf32>
    %c1_185 = arith.constant 1 : index
    %c0_186 = arith.constant 0 : index
    %c0_187 = arith.constant 0 : index
    %343 = vector.load %arg13[%c1_185, %c0_186, %c0_187] : memref<2x1x32xf32, #tpu.memory_space<vmem>>, vector<1x1x32xf32>
    %344 = vector.shape_cast %343 : vector<1x1x32xf32> to vector<1x32xf32>
    %cst_188 = arith.constant dense<0.000000e+00> : vector<32xf32>
    %345 = vector.multi_reduction <add>, %340, %cst_188 [1] : vector<32x32xf32> to vector<32xf32>
    %346 = vector.shape_cast %345 : vector<32xf32> to vector<32x1xf32>
    %cst_189 = arith.constant 3.200000e+01 : f32
    %347 = vector.broadcast %cst_189 : f32 to vector<32x1xf32>
    %348 = arith.divf %346, %347 : vector<32x1xf32>
    %349 = vector.broadcast %348 : vector<32x1xf32> to vector<32x32xf32>
    %350 = arith.subf %340, %349 : vector<32x32xf32>
    %351 = arith.mulf %350, %350 : vector<32x32xf32>
    %cst_190 = arith.constant dense<0.000000e+00> : vector<32xf32>
    %352 = vector.multi_reduction <add>, %351, %cst_190 [1] : vector<32x32xf32> to vector<32xf32>
    %353 = vector.shape_cast %352 : vector<32xf32> to vector<32x1xf32>
    %cst_191 = arith.constant 3.200000e+01 : f32
    %354 = vector.broadcast %cst_191 : f32 to vector<32x1xf32>
    %355 = arith.divf %353, %354 : vector<32x1xf32>
    %cst_192 = arith.constant 9.99999997E-7 : f32
    %356 = vector.broadcast %cst_192 : f32 to vector<32x1xf32>
    %357 = arith.addf %355, %356 : vector<32x1xf32>
    %358 = math.rsqrt %357 : vector<32x1xf32>
    %359 = vector.broadcast %358 : vector<32x1xf32> to vector<32x32xf32>
    %360 = arith.mulf %350, %359 : vector<32x32xf32>
    %361 = vector.broadcast %342 : vector<1x32xf32> to vector<32x32xf32>
    %362 = arith.mulf %360, %361 : vector<32x32xf32>
    %363 = vector.broadcast %344 : vector<1x32xf32> to vector<32x32xf32>
    %364 = arith.addf %362, %363 : vector<32x32xf32>
    %c1_193 = arith.constant 1 : index
    %c0_194 = arith.constant 0 : index
    %c0_195 = arith.constant 0 : index
    %365 = vector.load %arg14[%c1_193, %c0_194, %c0_195] : memref<2x32x128xf32, #tpu.memory_space<vmem>>, vector<1x32x128xf32>
    %366 = vector.shape_cast %365 : vector<1x32x128xf32> to vector<32x128xf32>
    %cst_196 = arith.constant dense<0.000000e+00> : vector<32x128xf32>
    %367 = tpu.matmul %364, %366, %cst_196 {dimension_numbers = #tpu.dot_dimension_numbers<[1], [0], [0], [1], [0, 0, 1, 1], [], []>} : vector<32x32xf32>, vector<32x128xf32>, vector<32x128xf32> -> vector<32x128xf32>
    %c1_197 = arith.constant 1 : index
    %c0_198 = arith.constant 0 : index
    %c0_199 = arith.constant 0 : index
    %368 = vector.load %arg15[%c1_197, %c0_198, %c0_199] : memref<2x1x128xf32, #tpu.memory_space<vmem>>, vector<1x1x128xf32>
    %369 = vector.shape_cast %368 : vector<1x1x128xf32> to vector<1x128xf32>
    %370 = vector.broadcast %369 : vector<1x128xf32> to vector<32x128xf32>
    %371 = arith.addf %367, %370 : vector<32x128xf32>
    %372 = arith.mulf %371, %371 : vector<32x128xf32>
    %373 = arith.mulf %371, %372 : vector<32x128xf32>
    %cst_200 = arith.constant 4.471500e-02 : f32
    %374 = vector.broadcast %cst_200 : f32 to vector<32x128xf32>
    %375 = arith.mulf %374, %373 : vector<32x128xf32>
    %376 = arith.addf %371, %375 : vector<32x128xf32>
    %cst_201 = arith.constant 0.797884583 : f32
    %377 = vector.broadcast %cst_201 : f32 to vector<32x128xf32>
    %378 = arith.mulf %377, %376 : vector<32x128xf32>
    %379 = math.tanh %378 : vector<32x128xf32>
    %cst_202 = arith.constant 1.000000e+00 : f32
    %380 = vector.broadcast %cst_202 : f32 to vector<32x128xf32>
    %381 = arith.addf %380, %379 : vector<32x128xf32>
    %cst_203 = arith.constant 5.000000e-01 : f32
    %382 = vector.broadcast %cst_203 : f32 to vector<32x128xf32>
    %383 = arith.mulf %382, %381 : vector<32x128xf32>
    %384 = arith.mulf %371, %383 : vector<32x128xf32>
    %c1_204 = arith.constant 1 : index
    %c0_205 = arith.constant 0 : index
    %c0_206 = arith.constant 0 : index
    %385 = vector.load %arg16[%c1_204, %c0_205, %c0_206] : memref<2x128x32xf32, #tpu.memory_space<vmem>>, vector<1x128x32xf32>
    %386 = vector.shape_cast %385 : vector<1x128x32xf32> to vector<128x32xf32>
    %cst_207 = arith.constant dense<0.000000e+00> : vector<32x32xf32>
    %387 = tpu.matmul %384, %386, %cst_207 {dimension_numbers = #tpu.dot_dimension_numbers<[1], [0], [0], [1], [0, 0, 1, 1], [], []>} : vector<32x128xf32>, vector<128x32xf32>, vector<32x32xf32> -> vector<32x32xf32>
    %c1_208 = arith.constant 1 : index
    %c0_209 = arith.constant 0 : index
    %c0_210 = arith.constant 0 : index
    %388 = vector.load %arg17[%c1_208, %c0_209, %c0_210] : memref<2x1x32xf32, #tpu.memory_space<vmem>>, vector<1x1x32xf32>
    %389 = vector.shape_cast %388 : vector<1x1x32xf32> to vector<1x32xf32>
    %390 = vector.broadcast %389 : vector<1x32xf32> to vector<32x32xf32>
    %391 = arith.addf %387, %390 : vector<32x32xf32>
    %392 = arith.addf %340, %391 : vector<32x32xf32>
    %393 = vector.extract_strided_slice %392 {offsets = [0, 0], sizes = [16, 32], strides = [1, 1]} : vector<32x32xf32> to vector<16x32xf32>
    %c0_211 = arith.constant 0 : index
    %c0_212 = arith.constant 0 : index
    %394 = vector.load %arg18[%c0_211, %c0_212] : memref<1x32xf32, #tpu.memory_space<vmem>>, vector<1x32xf32>
    %c0_213 = arith.constant 0 : index
    %c0_214 = arith.constant 0 : index
    %395 = vector.load %arg19[%c0_213, %c0_214] : memref<1x32xf32, #tpu.memory_space<vmem>>, vector<1x32xf32>
    %cst_215 = arith.constant dense<0.000000e+00> : vector<16xf32>
    %396 = vector.multi_reduction <add>, %393, %cst_215 [1] : vector<16x32xf32> to vector<16xf32>
    %397 = vector.shape_cast %396 : vector<16xf32> to vector<16x1xf32>
    %cst_216 = arith.constant 3.200000e+01 : f32
    %398 = vector.broadcast %cst_216 : f32 to vector<16x1xf32>
    %399 = arith.divf %397, %398 : vector<16x1xf32>
    %400 = vector.broadcast %399 : vector<16x1xf32> to vector<16x32xf32>
    %401 = arith.subf %393, %400 : vector<16x32xf32>
    %402 = arith.mulf %401, %401 : vector<16x32xf32>
    %cst_217 = arith.constant dense<0.000000e+00> : vector<16xf32>
    %403 = vector.multi_reduction <add>, %402, %cst_217 [1] : vector<16x32xf32> to vector<16xf32>
    %404 = vector.shape_cast %403 : vector<16xf32> to vector<16x1xf32>
    %cst_218 = arith.constant 3.200000e+01 : f32
    %405 = vector.broadcast %cst_218 : f32 to vector<16x1xf32>
    %406 = arith.divf %404, %405 : vector<16x1xf32>
    %cst_219 = arith.constant 9.99999997E-7 : f32
    %407 = vector.broadcast %cst_219 : f32 to vector<16x1xf32>
    %408 = arith.addf %406, %407 : vector<16x1xf32>
    %409 = math.rsqrt %408 : vector<16x1xf32>
    %410 = vector.broadcast %409 : vector<16x1xf32> to vector<16x32xf32>
    %411 = arith.mulf %401, %410 : vector<16x32xf32>
    %412 = vector.broadcast %394 : vector<1x32xf32> to vector<16x32xf32>
    %413 = arith.mulf %411, %412 : vector<16x32xf32>
    %414 = vector.broadcast %395 : vector<1x32xf32> to vector<16x32xf32>
    %415 = arith.addf %413, %414 : vector<16x32xf32>
    %c0_220 = arith.constant 0 : index
    %c0_221 = arith.constant 0 : index
    %416 = vector.load %arg20[%c0_220, %c0_221] : memref<32x128xf32, #tpu.memory_space<vmem>>, vector<32x128xf32>
    %cst_222 = arith.constant dense<0.000000e+00> : vector<16x128xf32>
    %417 = tpu.matmul %415, %416, %cst_222 {dimension_numbers = #tpu.dot_dimension_numbers<[1], [0], [0], [1], [0, 0, 1, 1], [], []>} : vector<16x32xf32>, vector<32x128xf32>, vector<16x128xf32> -> vector<16x128xf32>
    %c0_223 = arith.constant 0 : index
    %c0_224 = arith.constant 0 : index
    %418 = vector.load %arg21[%c0_223, %c0_224] : memref<1x128xf32, #tpu.memory_space<vmem>>, vector<1x128xf32>
    %419 = vector.broadcast %418 : vector<1x128xf32> to vector<16x128xf32>
    %420 = arith.addf %417, %419 : vector<16x128xf32>
    %c0_225 = arith.constant 0 : index
    %c0_226 = arith.constant 0 : index
    %421 = vector.load %arg22[%c0_225, %c0_226] : memref<32x32xf32, #tpu.memory_space<vmem>>, vector<32x32xf32>
    %cst_227 = arith.constant dense<0.000000e+00> : vector<16x32xf32>
    %422 = tpu.matmul %415, %421, %cst_227 {dimension_numbers = #tpu.dot_dimension_numbers<[1], [0], [0], [1], [0, 0, 1, 1], [], []>} : vector<16x32xf32>, vector<32x32xf32>, vector<16x32xf32> -> vector<16x32xf32>
    %c0_228 = arith.constant 0 : index
    %c0_229 = arith.constant 0 : index
    %423 = vector.load %arg23[%c0_228, %c0_229] : memref<1x32xf32, #tpu.memory_space<vmem>>, vector<1x32xf32>
    %424 = vector.broadcast %423 : vector<1x32xf32> to vector<16x32xf32>
    %425 = arith.addf %422, %424 : vector<16x32xf32>
    %cst_230 = arith.constant 0.000000e+00 : f32
    %426 = vector.broadcast %cst_230 : f32 to vector<16x32xf32>
    %427 = arith.maximumf %425, %426 : vector<16x32xf32>
    %c0_231 = arith.constant 0 : index
    %c0_232 = arith.constant 0 : index
    %428 = vector.load %arg24[%c0_231, %c0_232] : memref<32x128xf32, #tpu.memory_space<vmem>>, vector<32x128xf32>
    %cst_233 = arith.constant dense<0.000000e+00> : vector<16x128xf32>
    %429 = tpu.matmul %427, %428, %cst_233 {dimension_numbers = #tpu.dot_dimension_numbers<[1], [0], [0], [1], [0, 0, 1, 1], [], []>} : vector<16x32xf32>, vector<32x128xf32>, vector<16x128xf32> -> vector<16x128xf32>
    %c0_234 = arith.constant 0 : index
    %c0_235 = arith.constant 0 : index
    %430 = vector.load %arg25[%c0_234, %c0_235] : memref<1x128xf32, #tpu.memory_space<vmem>>, vector<1x128xf32>
    %431 = vector.broadcast %430 : vector<1x128xf32> to vector<16x128xf32>
    %432 = arith.addf %429, %431 : vector<16x128xf32>
    %433 = arith.addf %420, %432 : vector<16x128xf32>
    %c0_236 = arith.constant 0 : index
    %c0_237 = arith.constant 0 : index
    %c0_238 = arith.constant 0 : index
    %434 = vector.load %arg26[%c0_236, %c0_237, %c0_238] : memref<1x16x128xf32, #tpu.memory_space<vmem>>, vector<1x16x128xf32>
    %435 = vector.shape_cast %434 : vector<1x16x128xf32> to vector<16x128xf32>
    %436 = vector.shape_cast %433 : vector<16x128xf32> to vector<1x16x128xf32>
    tpu.vector_store %arg26[%c0_236, %c0_237, %c0_238], %436 {strides = array<i32>} : memref<1x16x128xf32, #tpu.memory_space<vmem>>, vector<1x16x128xf32>,
    return
  }
  func.func @transform_0(%arg0: i32) -> (i32, i32, i32) {
    %c0_i32 = arith.constant 0 : i32
    %c0_i32_0 = arith.constant 0 : i32
    %c0_i32_1 = arith.constant 0 : i32
    return %arg0, %c0_i32, %c0_i32_0 : i32, i32, i32
  }
  func.func @transform_1(%arg0: i32) -> (i32, i32) {
    %c0_i32 = arith.constant 0 : i32
    %c0_i32_0 = arith.constant 0 : i32
    %c0_i32_1 = arith.constant 0 : i32
    return %c0_i32, %c0_i32_0 : i32, i32
  }
  func.func @transform_2(%arg0: i32) -> (i32, i32) {
    %c0_i32 = arith.constant 0 : i32
    %c0_i32_0 = arith.constant 0 : i32
    %c0_i32_1 = arith.constant 0 : i32
    return %c0_i32, %c0_i32_0 : i32, i32
  }
  func.func @transform_3(%arg0: i32) -> (i32, i32) {
    %c0_i32 = arith.constant 0 : i32
    %c0_i32_0 = arith.constant 0 : i32
    %c0_i32_1 = arith.constant 0 : i32
    return %c0_i32, %c0_i32_0 : i32, i32
  }
  func.func @transform_4(%arg0: i32) -> (i32, i32) {
    %c0_i32 = arith.constant 0 : i32
    %c0_i32_0 = arith.constant 0 : i32
    %c0_i32_1 = arith.constant 0 : i32
    return %c0_i32, %c0_i32_0 : i32, i32
  }
  func.func @transform_5(%arg0: i32) -> (i32, i32, i32) {
    %c0_i32 = arith.constant 0 : i32
    %c0_i32_0 = arith.constant 0 : i32
    %c0_i32_1 = arith.constant 0 : i32
    %c0_i32_2 = arith.constant 0 : i32
    return %c0_i32, %c0_i32_0, %c0_i32_1 : i32, i32, i32
  }
  func.func @transform_6(%arg0: i32) -> (i32, i32, i32) {
    %c0_i32 = arith.constant 0 : i32
    %c0_i32_0 = arith.constant 0 : i32
    %c0_i32_1 = arith.constant 0 : i32
    %c0_i32_2 = arith.constant 0 : i32
    return %c0_i32, %c0_i32_0, %c0_i32_1 : i32, i32, i32
  }
  func.func @transform_7(%arg0: i32) -> (i32, i32, i32) {
    %c0_i32 = arith.constant 0 : i32
    %c0_i32_0 = arith.constant 0 : i32
    %c0_i32_1 = arith.constant 0 : i32
    %c0_i32_2 = arith.constant 0 : i32
    return %c0_i32, %c0_i32_0, %c0_i32_1 : i32, i32, i32
  }
  func.func @transform_8(%arg0: i32) -> (i32, i32, i32) {
    %c0_i32 = arith.constant 0 : i32
    %c0_i32_0 = arith.constant 0 : i32
    %c0_i32_1 = arith.constant 0 : i32
    %c0_i32_2 = arith.constant 0 : i32
    return %c0_i32, %c0_i32_0, %c0_i32_1 : i32, i32, i32
  }
  func.func @transform_9(%arg0: i32) -> (i32, i32, i32) {
    %c0_i32 = arith.constant 0 : i32
    %c0_i32_0 = arith.constant 0 : i32
    %c0_i32_1 = arith.constant 0 : i32
    %c0_i32_2 = arith.constant 0 : i32
    return %c0_i32, %c0_i32_0, %c0_i32_1 : i32, i32, i32
  }
  func.func @transform_10(%arg0: i32) -> (i32, i32, i32) {
    %c0_i32 = arith.constant 0 : i32
    %c0_i32_0 = arith.constant 0 : i32
    %c0_i32_1 = arith.constant 0 : i32
    %c0_i32_2 = arith.constant 0 : i32
    return %c0_i32, %c0_i32_0, %c0_i32_1 : i32, i32, i32
  }
  func.func @transform_11(%arg0: i32) -> (i32, i32, i32) {
    %c0_i32 = arith.constant 0 : i32
    %c0_i32_0 = arith.constant 0 : i32
    %c0_i32_1 = arith.constant 0 : i32
    %c0_i32_2 = arith.constant 0 : i32
    return %c0_i32, %c0_i32_0, %c0_i32_1 : i32, i32, i32
  }
  func.func @transform_12(%arg0: i32) -> (i32, i32, i32) {
    %c0_i32 = arith.constant 0 : i32
    %c0_i32_0 = arith.constant 0 : i32
    %c0_i32_1 = arith.constant 0 : i32
    %c0_i32_2 = arith.constant 0 : i32
    return %c0_i32, %c0_i32_0, %c0_i32_1 : i32, i32, i32
  }
  func.func @transform_13(%arg0: i32) -> (i32, i32, i32) {
    %c0_i32 = arith.constant 0 : i32
    %c0_i32_0 = arith.constant 0 : i32
    %c0_i32_1 = arith.constant 0 : i32
    %c0_i32_2 = arith.constant 0 : i32
    return %c0_i32, %c0_i32_0, %c0_i32_1 : i32, i32, i32
  }
  func.func @transform_14(%arg0: i32) -> (i32, i32, i32) {
    %c0_i32 = arith.constant 0 : i32
    %c0_i32_0 = arith.constant 0 : i32
    %c0_i32_1 = arith.constant 0 : i32
    %c0_i32_2 = arith.constant 0 : i32
    return %c0_i32, %c0_i32_0, %c0_i32_1 : i32, i32, i32
  }
  func.func @transform_15(%arg0: i32) -> (i32, i32, i32) {
    %c0_i32 = arith.constant 0 : i32
    %c0_i32_0 = arith.constant 0 : i32
    %c0_i32_1 = arith.constant 0 : i32
    %c0_i32_2 = arith.constant 0 : i32
    return %c0_i32, %c0_i32_0, %c0_i32_1 : i32, i32, i32
  }
  func.func @transform_16(%arg0: i32) -> (i32, i32, i32) {
    %c0_i32 = arith.constant 0 : i32
    %c0_i32_0 = arith.constant 0 : i32
    %c0_i32_1 = arith.constant 0 : i32
    %c0_i32_2 = arith.constant 0 : i32
    return %c0_i32, %c0_i32_0, %c0_i32_1 : i32, i32, i32
  }
  func.func @transform_17(%arg0: i32) -> (i32, i32) {
    %c0_i32 = arith.constant 0 : i32
    %c0_i32_0 = arith.constant 0 : i32
    %c0_i32_1 = arith.constant 0 : i32
    return %c0_i32, %c0_i32_0 : i32, i32
  }
  func.func @transform_18(%arg0: i32) -> (i32, i32) {
    %c0_i32 = arith.constant 0 : i32
    %c0_i32_0 = arith.constant 0 : i32
    %c0_i32_1 = arith.constant 0 : i32
    return %c0_i32, %c0_i32_0 : i32, i32
  }
  func.func @transform_19(%arg0: i32) -> (i32, i32) {
    %c0_i32 = arith.constant 0 : i32
    %c0_i32_0 = arith.constant 0 : i32
    %c0_i32_1 = arith.constant 0 : i32
    return %c0_i32, %c0_i32_0 : i32, i32
  }
  func.func @transform_20(%arg0: i32) -> (i32, i32) {
    %c0_i32 = arith.constant 0 : i32
    %c0_i32_0 = arith.constant 0 : i32
    %c0_i32_1 = arith.constant 0 : i32
    return %c0_i32, %c0_i32_0 : i32, i32
  }
  func.func @transform_21(%arg0: i32) -> (i32, i32) {
    %c0_i32 = arith.constant 0 : i32
    %c0_i32_0 = arith.constant 0 : i32
    %c0_i32_1 = arith.constant 0 : i32
    return %c0_i32, %c0_i32_0 : i32, i32
  }
  func.func @transform_22(%arg0: i32) -> (i32, i32) {
    %c0_i32 = arith.constant 0 : i32
    %c0_i32_0 = arith.constant 0 : i32
    %c0_i32_1 = arith.constant 0 : i32
    return %c0_i32, %c0_i32_0 : i32, i32
  }
  func.func @transform_23(%arg0: i32) -> (i32, i32) {
    %c0_i32 = arith.constant 0 : i32
    %c0_i32_0 = arith.constant 0 : i32
    %c0_i32_1 = arith.constant 0 : i32
    return %c0_i32, %c0_i32_0 : i32, i32
  }
  func.func @transform_24(%arg0: i32) -> (i32, i32) {
    %c0_i32 = arith.constant 0 : i32
    %c0_i32_0 = arith.constant 0 : i32
    %c0_i32_1 = arith.constant 0 : i32
    return %c0_i32, %c0_i32_0 : i32, i32
  }
  func.func @transform_25(%arg0: i32) -> (i32, i32, i32) {
    %c0_i32 = arith.constant 0 : i32
    %c0_i32_0 = arith.constant 0 : i32
    %c0_i32_1 = arith.constant 0 : i32
    return %arg0, %c0_i32, %c0_i32_0 : i32, i32, i32
  }
}

</mosaic_0001>

<bundles_post_ra>
// kernel: stego_forward.1
= control target key start
LH: loop header
LB: loop body
LE: loop exit
PB: predicated region body
PF: predicated region fallthrough
CT: control target
= control target key end

     0   :  { %s5845_s0 = inlined_call_operand.vmem [shape: f32[2,16,256], index: 0, kind: input, shape index: {}]   ;;  %s5846_s1 = inlined_call_operand.vmem [shape: f32[256,32], index: 1, kind: input, shape index: {}]   ;;  %s5847_s2 = inlined_call_operand.vmem [shape: f32[1,32], index: 2, kind: input, shape index: {}]   ;;  %s5848_s3 = inlined_call_operand.vmem [shape: f32[1,32], index: 3, kind: input, shape index: {}]   ;;  %s5849_s4 = inlined_call_operand.vmem [shape: f32[16,32], index: 4, kind: input, shape index: {}]   ;;  %s5850_s5 = inlined_call_operand.vmem [shape: f32[2,1,32], index: 5, kind: input, shape index: {}]   ;;  %s5851_s6 = inlined_call_operand.vmem [shape: f32[2,1,32], index: 6, kind: input, shape index: {}]   ;;  %s5852_s7 = inlined_call_operand.vmem [shape: f32[2,32,96], index: 7, kind: input, shape index: {}]   ;;  %s5853_s8 = inlined_call_operand.vmem [shape: f32[2,1,96], index: 8, kind: input, shape index: {}]   ;;  %s5854_s9 = inlined_call_operand.vmem [shape: f32[2,32,32], index: 9, kind: input, shape index: {}]   ;;  %s5855_s10 = inlined_call_operand.vmem [shape: f32[2,1,32], index: 10, kind: input, shape index: {}]   ;;  %s5856_s11 = inlined_call_operand.vmem [shape: f32[2,1,32], index: 11, kind: input, shape index: {}]   ;;  %s5857_s12 = inlined_call_operand.vmem [shape: f32[2,1,32], index: 12, kind: input, shape index: {}]   ;;  %s5858_s13 = inlined_call_operand.vmem [shape: f32[2,32,128], index: 13, kind: input, shape index: {}]   ;;  %s5859_s14 = inlined_call_operand.vmem [shape: f32[2,1,128], index: 14, kind: input, shape index: {}]   ;;  %s5860_s15 = inlined_call_operand.vmem [shape: f32[2,128,32], index: 15, kind: input, shape index: {}]   ;;  %s5861_s16 = inlined_call_operand.vmem [shape: f32[2,1,32], index: 16, kind: input, shape index: {}]   ;;  %s5862_s17 = inlined_call_operand.vmem [shape: f32[1,32], index: 17, kind: input, shape index: {}]   ;;  %s5863_s18 = inlined_call_operand.vmem [shape: f32[1,32], index: 18, kind: input, shape index: {}]   ;;  %s5864_s19 = inlined_call_operand.vmem [shape: f32[32,128], index: 19, kind: input, shape index: {}]   ;;  %s5865_s20 = inlined_call_operand.vmem [shape: f32[1,128], index: 20, kind: input, shape index: {}]   ;;  %s5866_s21 = inlined_call_operand.vmem [shape: f32[32,32], index: 21, kind: input, shape index: {}]   ;;  %s5867_s22 = inlined_call_operand.vmem [shape: f32[1,32], index: 22, kind: input, shape index: {}]   ;;  %s5868_s23 = inlined_call_operand.vmem [shape: f32[32,128], index: 23, kind: input, shape index: {}]   ;;  %s5869_s24 = inlined_call_operand.vmem [shape: f32[1,128], index: 24, kind: input, shape index: {}]   ;;  %s5870_s25 = inlined_call_operand.hbm [shape: f32[2,16,128], index: 25, kind: output, shape index: {}]  }
   0x1   :  { %5907 = sst [smem:[#allocation14_spill]] %s5845_s0 }
   0x2   :  { %5908 = sst [smem:[#allocation15_spill]] %s5846_s1 }
   0x3   :  { %5909 = sst [smem:[#allocation16_spill]] %s5847_s2 }
   0x4   :  { %5910 = sst [smem:[#allocation17_spill]] %s5848_s3 }
   0x5   :  { %5911 = sst [smem:[#allocation18_spill]] %s5849_s4 }
   0x6   :  { %5912 = sst [smem:[#allocation19_spill]] %s5850_s5 }
   0x7   :  { %5913 = sst [smem:[#allocation20_spill]] %s5851_s6 }
   0x8   :  { %5914 = sst [smem:[#allocation21_spill]] %s5852_s7 }
   0x9   :  { %5915 = sst [smem:[#allocation22_spill]] %s5853_s8 }
   0xa   :  { %5916 = sst [smem:[#allocation23_spill]] %s5854_s9 }
   0xb   :  { %5917 = sst [smem:[#allocation24_spill]] %s5855_s10 }
   0xc   :  { %5918 = sst [smem:[#allocation25_spill]] %s5856_s11 }
   0xd   :  { %5919 = sst [smem:[#allocation26_spill]] %s5857_s12 }
   0xe   :  { %5920 = sst [smem:[#allocation27_spill]] %s5858_s13 }
   0xf   :  { %5921 = sst [smem:[#allocation28_spill]] %s5869_s24 }
  0x10   :  { %5922 = sst [smem:[#allocation29_spill]] %s5870_s25 }
  0x11   :  { %30 = vsyncpa [#allocation5], 0 }
  0x12   :  { %32 = vsyncpa [#allocation5 + $0x1], 0  ;;  %s4416_s29 = smov 0   ;;  %s4418_s2 = smov 0  }
  0x13   :  { %s4420_s6 = smov 0   ;;  %s4422_s30 = smov 0  }
  0x14 LB: > { %5923 = sst [smem:[#allocation7_spill]] %s4260_s29  ;;  %s4437_s7 = sadd.s32 4294967295, %s4272_s30   ;;  %s4272_s30 = sphi %s4422_s30, %s5963_s30   ;;  %s4268_s6 = sphi %s4420_s6, %s5965_s6   ;;  %s4264_s2 = sphi %s4418_s2, %s5967_s2   ;;  %s4260_s29 = sphi %s4416_s29, %s5966_s29  }
  0x15   : > { %5924 = sst [smem:[#allocation8_spill]] %s4268_s6  ;;  %s3655_s3 = sadd.s32 4294967294, %s4272_s30  }
  0x16   : > { %5925 = sst [smem:[#allocation9_spill]] %s4272_s30  ;;  %s4441_s26 = sadd.s32 1, %s4272_s30  }
  0x17   : > { %5926 = sst [smem:[#allocation10_spill]] %s4441_s26  ;;  %s575_s1 = sadd.s32 1, %s4268_s6 }
  0x18   : > { %s572_s8 = ssub.s32 %s4272_s30, %s4441_s26  ;;  %p585_p0 = scmp.ne.s32.totalorder %s4268_s6, %s4264_s2 }
  0x19   : > { %p573_p1 = scmp.eq.s32.totalorder %s572_s8, 0  ;;  %p586_p2 = scmp.eq.s32.totalorder %s4437_s7, 1 }
  0x1a   : > { %p591_p3 = scmp.ne.s32.totalorder %s4264_s2, %s4260_s29  ;;  %p592_p4 = scmp.eq.s32.totalorder %s3655_s3, 1 }
  0x1b   : > { %s4452_s27 = scalar_select %p573_p1, %s4268_s6, %s575_s1  }
  0x1c   : > { %p4454_p5 = por %p586_p2, %p585_p0  ;;  %p4458_p6 = por %p592_p4, %p591_p3 }
  0x1d   : > { %5927 = sst [smem:[#allocation11_spill]] %s4452_s27  ;;  %p3658_p7 = scmp.ge.s32.totalorder %s4272_s30, 1 }
  0x1e   : > { %s5928_s4 = scalar_select %p4454_p5, 1, 0 }
  0x1f   : > { %s5930_s28 = scalar_select %p4458_p6, 1, 0 }
  0x20   : > { %5929 = sst [smem:[#allocation12_spill]] %s5928_s4  ;;  %p690_p8 = scmp.lt.s32.totalorder %s4272_s30, 3 }
  0x21   : > { %5931 = sst [smem:[#allocation13_spill]] %s5930_s28 }
  0x22   : > { %p691_p9 = pnand %p3658_p7, %p690_p8 }
  0x23   : > { %s5932_s0 = sld [smem:[#allocation15_spill]] (!%p691_p9)  ;;  %p758_p10 = scmp.lt.s32.totalorder (!%p691_p9), %s4437_s7, 1 }
  0x24   : > { %694 = sbr.rel (%p691_p9) target bundleno = 4864 (0x1300), region = 120  ;;  %s5933_s1 = sld [smem:[#allocation17_spill]] (!%p691_p9) }
  0x25   : > { %s5934_s4 = sld [smem:[#allocation14_spill]] (!%p691_p9)  ;;  %s5895_s3 = smov (!%p691_p9), 120  }
  0x26   : > { %s5935_s5 = sld [smem:[#allocation16_spill]] (!%p691_p9)  ;;  %s5887_s30 = smov (!%p691_p9), 8  }
  0x27   : > { %s5937_s29 = sld [smem:[#allocation21_spill]] (!%p691_p9)  ;;  %s5903_s8 = smov (!%p691_p9), 16  }
  0x28   : > { %s5939_s26 = sld [smem:[#allocation22_spill]] (!%p691_p9)  ;;  %s5953_s24 = smov (!%p691_p9), 64  }
  0x29   : > { %v782_v0 = vld [vmem:[%s5932_s0 + $0x78] sm:$0xff]  ;;  %v781_v1 = vld [vmem:[%s5932_s0 + $0x70] sm:$0xff]  ;;  %v780_v4 = vld [vmem:[%s5932_s0 + $0x68] sm:$0xff]  ;;  %vm849_vm0 = vcmask 261120   ;;  %v4274_v12 = vmov 0.0   ;;  %vm861_vm1 = vcmask 253952  }
  0x2a   : > { %v798_v2 = vld [vmem:[%s5932_s0 + $0xf8] sm:$0xff]  ;;  %803 = vmatpush.msra.mxu0 %v782_v0  ;;  %v797_v3 = vld [vmem:[%s5932_s0 + $0xf0] sm:$0xff]  ;;  %v796_v5 = vld [vmem:[%s5932_s0 + $0xe8] sm:$0xff]  ;;  %852 = vst.msk [vmem:[#allocation2 + $0x10] sm:$0xff] %vm849_vm0, %v4274_v12  ;;  %s4515_s9 = scalar_select %p758_p10, %s4437_s7, 1  ;;  %v4275_v40 = vmov 32.0  }
  0x2b   : > { %826 = vmatpush.msra.mxu1 %v798_v2  ;;  %v779_v6 = vld [vmem:[%s5932_s0 + $0x60] sm:$0xff]  ;;  %v778_v8 = vld [vmem:[%s5932_s0 + $0x58] sm:$0xff]  ;;  %v777_v10 = vld [vmem:[%s5932_s0 + $0x50] sm:$0xff]  ;;  %850 = vst.msk [vmem:[#allocation2] sm:$0xff] %vm849_vm0, %v4274_v12  ;;  %4024 = vrcp.f32 %v4275_v40  ;;  %s5941_s27 = sld [smem:[#allocation20_spill]]  ;;  %vm1123_vm15 = vcmask 64512  }
  0x2c   : > { %804 = vmatpush.msra.mxu0 %v781_v1  ;;  %v795_v7 = vld [vmem:[%s5932_s0 + $0xe0] sm:$0xff]  ;;  %v794_v9 = vld [vmem:[%s5932_s0 + $0xd8] sm:$0xff]  ;;  %v793_v11 = vld [vmem:[%s5932_s0 + $0xd0] sm:$0xff]  ;;  %851 = vst.msk [vmem:[#allocation2 + $0x8] sm:$0xff] %vm849_vm0, %v4274_v12  ;;  %s3845_s6 = sshll.u32 %s4515_s9, 5  ;;  %s5889_s9 = smov 64  }
  0x2d   : > { %827 = vmatpush.msra.mxu1 %v797_v3  ;;  %v776_v13 = vld [vmem:[%s5932_s0 + $0x48] sm:$0xff]  ;;  %v775_v15 = vld [vmem:[%s5932_s0 + $0x40] sm:$0xff]  ;;  %853 = vst.msk [vmem:[#allocation2 + $0x18] sm:$0xff] %vm849_vm0, %v4274_v12  ;;  %v774_v18 = vld [vmem:[%s5932_s0 + $0x38] sm:$0xff]  ;;  %s762_s25 = scalar_lea.vmem %s5934_s4, %s3845_s6  ;;  %s5938_s28 = smov %s5937_s29 }
  0x2e   : > { %805 = vmatpush.msra.mxu0 %v780_v4  ;;  %v792_v14 = vld [vmem:[%s5932_s0 + $0xc8] sm:$0xff]  ;;  %v791_v16 = vld [vmem:[%s5932_s0 + $0xc0] sm:$0xff]  ;;  %v790_v19 = vld [vmem:[%s5932_s0 + $0xb8] sm:$0xff]  ;;  %s5897_s6 = smov 96   ;;  %s5940_s4 = sld [smem:[#allocation19_spill]] }
  0x2f   : > { %828 = vmatpush.msra.mxu1 %v796_v5  ;;  %v860_v17 = vld [vmem:[%s5933_s1] sm:$0x1]  ;;  %v773_v20 = vld [vmem:[%s5932_s0 + $0x30] sm:$0xff]  ;;  %v772_v22 = vld [vmem:[%s5932_s0 + $0x28] sm:$0xff]  ;;  %s5891_s1 = smov 104   ;;  %s5945_s10 = sld [smem:[#allocation24_spill]] }
  0x30   : > { %806 = vmatpush.msra.mxu0 %v779_v6  ;;  %862 = vst.msk [vmem:[#allocation2 + $0x10] sm:$0x1] %vm861_vm1, %v860_v17  ;;  %v789_v21 = vld [vmem:[%s5932_s0 + $0xb0] sm:$0xff]  ;;  %v788_v23 = vld [vmem:[%s5932_s0 + $0xa8] sm:$0xff]  ;;  %v771_v24 = vld [vmem:[%s5932_s0 + $0x20] sm:$0xff]  ;;  %s5946_s13 = sld [smem:[#allocation27_spill]] }
  0x31   : > { %829 = vmatpush.msra.mxu1 %v795_v7  ;;  %v787_v25 = vld [vmem:[%s5932_s0 + $0xa0] sm:$0xff]  ;;  %v770_v28 = vld [vmem:[%s5932_s0 + $0x18] sm:$0xff]  ;;  %v769_v30 = vld [vmem:[%s5932_s0 + $0x10] sm:$0xff]  ;;  %v4025_v43 = vpop.eup %4024  ;;  %s5947_s11 = sld [smem:[#allocation25_spill]] }
  0x32   : > { %807 = vmatpush.msra.mxu0 %v778_v8  ;;  %v786_v29 = vld [vmem:[%s5932_s0 + $0x98] sm:$0xff]  ;;  %v785_v31 = vld [vmem:[%s5932_s0 + $0x90] sm:$0xff]  ;;  %v768_v32 = vld [vmem:[%s5932_s0 + $0x8] sm:$0xff]  ;;  %v886_v45 = vmul.f32 32.0, %v4025_v43  ;;  %vm890_vm2 = vweird.f32 %v4025_v43  ;;  %s5948_s12 = sld [smem:[#allocation26_spill]] }
  0x33   : > { %830 = vmatpush.msra.mxu1 %v794_v9  ;;  %v784_v33 = vld [vmem:[%s5932_s0 + $0x88] sm:$0xff]  ;;  %v767_v34 = vld [vmem:[%s5932_s0] sm:$0xff]  ;;  %v765_v38 = vld [vmem:[%s762_s25 + $0x10] sm:$0xff] }
  0x34   : > { %808 = vmatpush.msra.mxu0 %v777_v10  ;;  %v783_v35 = vld [vmem:[%s5932_s0 + $0x80] sm:$0xff]  ;;  %v764_v37 = vld [vmem:[%s762_s25 + $0x8] sm:$0xff]  ;;  %v766_v39 = vld [vmem:[%s762_s25 + $0x18] sm:$0xff]  ;;  %v887_v50 = vsub.f32 1.0, %v886_v45  ;;  %s5949_s0 = smov 96  }
  0x35   : > { %831 = vmatpush.msra.mxu1 %v793_v11  ;;  %v763_v36 = vld [vmem:[%s762_s25] sm:$0xff]  ;;  %v866_v41 = vld [vmem:[#allocation2 + $0x18] sm:$0xff]  ;;  %s5936_s25 = sld [smem:[#allocation18_spill]]  ;;  %v984_v7 = vld [vmem:[%s5937_s29 + $0x10] sm:$0xff]  ;;  %s5893_s29 = smov 112  }
  0x36   : > { %809 = vmatpush.msra.mxu0 %v776_v13  ;;  %v882_v42 = vsel %vm849_vm0, %v866_v41, 0.0  ;;  %v4002_v44 = vld [vmem:[%s5935_s5] ss:$0 sm:$0xff]  ;;  %v888_v53 = vmul.f32 %v4025_v43, %v887_v50  ;;  %v985_v8 = vld [vmem:[%s5938_s28 + $0x18] sm:$0xff]  ;;  %v983_v11 = vld [vmem:[%s5938_s28 + $0x8] sm:$0xff]  ;;  %s5900_s5 = smov 24  }
  0x37   : > { %832 = vmatpush.msra.mxu1 %v792_v14  ;;  %v4549_v26 = vld [vmem:[#allocation2 + $0x10] sm:$0xff]  ;;  %v4610_v9 = vpack.i.bf16 %v984_v7, %v985_v8  ;;  %1014 = vmatpush.msra.mxu2 %v985_v8  ;;  %v982_v10 = vld [vmem:[%s5938_s28] sm:$0xff] }
  0x38   : > { %810 = vmatpush.msra.mxu0 %v775_v15  ;;  %v879_v27 = vsel %vm849_vm0, %v4549_v26, 0.0  ;;  %v889_v58 = vadd.f32 %v4025_v43, %v888_v53  ;;  %v4620_v12 = vpack.i.bf16 %v982_v10, %v983_v11 }
  0x39   : > { %833 = vmatpush.msra.mxu1 %v791_v16  ;;  %880 = vadd.xlane.f32.xlu1 %v879_v27 }
  0x3a   : > { %811 = vmatpush.msra.mxu0 %v774_v18  ;;  %v4592_v62 = vsel %vm890_vm2, %v4025_v43, %v889_v58  ;;  %1015 = vmatpush.msra.mxu2 %v984_v7  ;;  %v4645_v58 = vld [vmem:[%s5939_s26] ss:$0 sm:$0xff]  ;;  %vm1460_vm2 = vcmask 130112  }
  0x3b   : > { %834 = vmatpush.msra.mxu1 %v790_v19  ;;  %v854_v49 = vld [vmem:[%s5936_s25] sm:$0xff]  ;;  %v855_v57 = vld [vmem:[%s5936_s25 + $0x8] sm:$0xff]  ;;  %s3846_s25 = sshll.u32 %s4437_s7, 4 }
  0x3c   : > { %812 = vmatpush.msra.mxu0 %v773_v20  ;;  %1016 = vmatpush.msra.mxu2 %v983_v11 }
  0x3d   : > { %835 = vmatpush.msra.mxu1 %v789_v21 }
  0x3e   : > { %813 = vmatpush.msra.mxu0 %v772_v22  ;;  %1017 = vmatpush.msra.mxu2 %v982_v10 }
  0x3f   : > { %836 = vmatpush.msra.mxu1 %v788_v23 }
  0x40   : > { %814 = vmatpush.msra.mxu0 %v771_v24 }
  0x41   : > { %837 = vmatpush.msra.mxu1 %v787_v25  ;;  %883 = vadd.xlane.f32.xlu1 %v882_v42 }
  0x42   : > { %815 = vmatpush.msra.mxu0 %v770_v28 }
  0x43   : > { %838 = vmatpush.msra.mxu1 %v786_v29 }
  0x44   : > { %816 = vmatpush.msra.mxu0 %v769_v30 }
  0x45   : > { %839 = vmatpush.msra.mxu1 %v785_v31 }
  0x46   : > { %817 = vmatpush.msra.mxu0 %v768_v32 }
  0x47   : > { %840 = vmatpush.msra.mxu1 %v784_v33 }
  0x48   : > { %818 = vmatpush.msra.mxu0 %v767_v34 }
  0x49   : > { %841 = vmatpush.msra.mxu1 %v783_v35  ;;  %819 = vmatmul.f32.vlgmr.msra.gmra.mxu0 %v763_v36 }
  0x4a   : > { %842 = vmatmul.f32.vlgmr.msra.gmra.mxu1 %v764_v37 }
  0x51   : > { %822 = vmatmul.f32.gmra.mxu0 %v765_v38 }
  0x52   : > { %845 = vmatmul.f32.gmra.mxu1 %v766_v39 }
  0x5a   : > { %3903 = vrot.lane.b32.xlu1 %v4610_v9, %s5897_s6 }
  0xac   : > { %v881_v63 = vpop.xlane.xlu1 %880 }
  0xad   : > { %v894_v1 = vmul.f32 %v4592_v62, %v881_v63  ;;  %v4003_v63 = vld [vmem:[%s5940_s4] ss:$0 sm:$0xff] }
  0xaf   : > { %v4598_v2 = vsub.f32 %v4549_v26, %v894_v1 }
  0xb1   : > { %v902_v5 = vmul.f32 %v4598_v2, %v4598_v2 }
  0xb3   : > { %v910_v6 = vsel %vm849_vm0, %v902_v5, 0.0 }
  0xb4   : > { %v884_v17 = vpop.xlane.xlu1 %883 }
  0xb5   : > { %v895_v21 = vmul.f32 %v4592_v62, %v884_v17 }
  0xb7   : > { %v4630_v23 = vsub.f32 %v866_v41, %v895_v21 }
  0xb9   : > { %v903_v26 = vmul.f32 %v4630_v23, %v4630_v23 }
  0xbb   : > { %v913_v27 = vsel %vm849_vm0, %v903_v26, 0.0 }
  0xc6   : > { %v820_v46 = vpop.f32.mrf.mxu0 }
  0xc7   : > { %v843_v47 = vpop.f32.mrf.mxu1  ;;  %v821_v48 = vadd.f32 %v4002_v44, %v820_v46 }
  0xc9   : > { %v844_v51 = vadd.f32 %v843_v47, %v821_v48 }
  0xcb   : > { %v856_v52 = vadd.f32 %v854_v49, %v844_v51 }
  0xcc   : > { %v3904_v29 = vpop.permute.xlu1 %3903 }
  0xcd   : > { %858 = vst.msk [vmem:[#allocation2] sm:$0xff] %vm849_vm0, %v856_v52  ;;  %v3905_v30 = vunpack.i.l.bf16 %v3904_v29  ;;  %v3906_v31 = vunpack.i.h.bf16 %v3904_v29 }
  0xce   : > { %v823_v54 = vpop.f32.mrf.mxu0 }
  0xcf   : > { %v846_v55 = vpop.f32.mrf.mxu1  ;;  %v824_v56 = vadd.f32 %v4002_v44, %v823_v54  ;;  %1062 = vmatpush.msra.mxu3 %v3905_v30 }
  0xd1   : > { %v847_v59 = vadd.f32 %v846_v55, %v824_v56  ;;  %1063 = vmatpush.msra.mxu3 %v3906_v31 }
  0xd3   : > { %v857_v60 = vadd.f32 %v855_v57, %v847_v59 }
  0xd4   : > { %v863_v61 = vld [vmem:[#allocation2] sm:$0xff] }
  0xd5   : > { %859 = vst.msk [vmem:[#allocation2 + $0x8] sm:$0xff] %vm849_vm0, %v857_v60  ;;  %v873_v0 = vsel %vm849_vm0, %v863_v61, 0.0 }
  0xd6   : > { %874 = vadd.xlane.f32.xlu0 %v873_v0 }
  0xdc   : > { %v864_v3 = vld [vmem:[#allocation2 + $0x8] sm:$0xff] }
  0xdd   : > { %v876_v4 = vsel %vm849_vm0, %v864_v3, 0.0 }
  0xde   : > { %877 = vadd.xlane.f32.xlu0 %v876_v4  ;;  %v4004_v4 = vld [vmem:[%s5941_s27] ss:$0 sm:$0xff] }
  0xe6   : > { %911 = vadd.xlane.f32.xlu0 %v910_v6 }
  0xfa   : > { %3908 = vrot.lane.b32.xlu0 %v4620_v12, %s5897_s6 }
 0x149   : > { %v875_v13 = vpop.xlane.xlu0 %874 }
 0x14a   : > { %v892_v14 = vmul.f32 %v4592_v62, %v875_v13 }
 0x14c   : > { %v896_v15 = vsub.f32 %v863_v61, %v892_v14 }
 0x14e   : > { %v900_v16 = vmul.f32 %v896_v15, %v896_v15 }
 0x150   : > { %v904_v18 = vsel %vm849_vm0, %v900_v16, 0.0 }
 0x151   : > { %905 = vadd.xlane.f32.xlu2 %v904_v18  ;;  %v878_v19 = vpop.xlane.xlu0 %877 }
 0x152   : > { %v893_v20 = vmul.f32 %v4592_v62, %v878_v19 }
 0x154   : > { %v4628_v22 = vsub.f32 %v864_v3, %v893_v20 }
 0x156   : > { %v901_v24 = vmul.f32 %v4628_v22, %v4628_v22 }
 0x158   : > { %v907_v25 = vsel %vm849_vm0, %v901_v24, 0.0 }
 0x159   : > { %908 = vadd.xlane.f32.xlu2 %v907_v25  ;;  %v912_v28 = vpop.xlane.xlu0 %911 }
 0x15a   : > { %v918_v35 = vmul.f32 %v912_v28, %v4592_v62 }
 0x15c   : > { %v922_v36 = vadd.f32 1e-06, %v918_v35 }
 0x15e   : > { %4026 = vrsqrt.f32 %v922_v36  ;;  %vm950_vm6 = vweird.f32 %v922_v36 }
 0x161   : > { %914 = vadd.xlane.f32.xlu2 %v913_v27 }
 0x164   : > { %v4027_v41 = vpop.eup %4026 }
 0x165   : > { %v945_v45 = vmul.f32 %v4027_v41, %v922_v36  ;;  %vm951_vm7 = vweird.f32 %v4027_v41 }
 0x166   : > { %vm4657_vm9 = vmor %vm950_vm6, %vm951_vm7 }
 0x167   : > { %v946_v48 = vmul.f32 %v4027_v41, %v945_v45 }
 0x169   : > { %v947_v55 = vmul.f32 0.5, %v946_v48 }
 0x16b   : > { %v948_v0 = vsub.f32 1.5, %v947_v55 }
 0x16c   : > { %v3909_v32 = vpop.permute.xlu0 %3908 }
 0x16d   : > { %v3910_v33 = vunpack.i.l.bf16 %v3909_v32  ;;  %v3911_v34 = vunpack.i.h.bf16 %v3909_v32  ;;  %v949_v8 = vmul.f32 %v4027_v41, %v948_v0 }
 0x16f   : > { %1064 = vmatpush.msra.mxu3 %v3910_v33  ;;  %v953_v18 = vsel %vm4657_vm9, %v4027_v41, %v949_v8 }
 0x170   : > { %v966_v24 = vmul.f32 %v953_v18, %v4598_v2 }
 0x171   : > { %1065 = vmatpush.msra.mxu3 %v3911_v34 }
 0x179   : > { %1047 = vrot.lane.b32.xlu2 %v4645_v58, %s5897_s6  ;;  %s5951_s6 = smov 112  }
 0x1c4   : > { %v906_v37 = vpop.xlane.xlu2 %905 }
 0x1c5   : > { %v916_v38 = vmul.f32 %v906_v37, %v4592_v62 }
 0x1c7   : > { %v920_v39 = vadd.f32 1e-06, %v916_v38 }
 0x1c9   : > { %4028 = vrsqrt.f32 %v920_v39  ;;  %vm930_vm4 = vweird.f32 %v920_v39 }
 0x1cc   : > { %v909_v40 = vpop.xlane.xlu2 %908 }
 0x1cd   : > { %v917_v42 = vmul.f32 %v909_v40, %v4592_v62 }
 0x1cf   : > { %v4029_v43 = vpop.eup %4028  ;;  %v921_v44 = vadd.f32 1e-06, %v917_v42 }
 0x1d0   : > { %v925_v46 = vmul.f32 %v4029_v43, %v920_v39  ;;  %vm931_vm3 = vweird.f32 %v4029_v43 }
 0x1d1   : > { %4030 = vrsqrt.f32 %v921_v44  ;;  %vm932_vm5 = vmor %vm930_vm4, %vm931_vm3  ;;  %vm940_vm10 = vweird.f32 %v921_v44  ;;  %vm1647_vm3 = vcmask 195712   ;;  %vm1834_vm4 = vcmask 261312  }
 0x1d2   : > { %v926_v47 = vmul.f32 %v4029_v43, %v925_v46 }
 0x1d4   : > { %v927_v49 = vmul.f32 0.5, %v926_v47  ;;  %v915_v50 = vpop.xlane.xlu2 %914 }
 0x1d5   : > { %v919_v51 = vmul.f32 %v915_v50, %v4592_v62 }
 0x1d6   : > { %v928_v52 = vsub.f32 1.5, %v927_v49 }
 0x1d7   : > { %v4031_v53 = vpop.eup %4030  ;;  %v923_v54 = vadd.f32 1e-06, %v919_v51 }
 0x1d8   : > { %v929_v56 = vmul.f32 %v4029_v43, %v928_v52  ;;  %v935_v57 = vmul.f32 %v4031_v53, %v921_v44  ;;  %vm941_vm8 = vweird.f32 %v4031_v53 }
 0x1d9   : > { %4032 = vrsqrt.f32 %v923_v54  ;;  %vm942_vm11 = vmor %vm940_vm10, %vm941_vm8  ;;  %vm960_vm12 = vweird.f32 %v923_v54 }
 0x1da   : > { %v936_v59 = vmul.f32 %v4031_v53, %v935_v57  ;;  %v933_v60 = vsel %vm932_vm5, %v4029_v43, %v929_v56 }
 0x1db   : > { %v964_v61 = vmul.f32 %v933_v60, %v896_v15  ;;  %v867_v60 = vlaneseq }
 0x1dc   : > { %v937_v1 = vmul.f32 0.5, %v936_v59  ;;  %v1048_v32 = vpop.permute.xlu2 %1047 }
 0x1dd   : > { %v971_v3 = vmul.f32 %v4003_v63, %v964_v61  ;;  %v868_v0 = vand.u32 127, %v867_v60 }
 0x1de   : > { %v938_v5 = vsub.f32 1.5, %v937_v1 }
 0x1df   : > { %v4033_v6 = vpop.eup %4032  ;;  %v4655_v7 = vadd.f32 %v4004_v4, %v971_v3  ;;  %vm869_vm1 = vcmp.lt.s32.totalorder %v868_v0, 17 }
 0x1e0   : > { %v939_v11 = vmul.f32 %v4031_v53, %v938_v5  ;;  %v955_v13 = vmul.f32 %v4033_v6, %v923_v54  ;;  %vm961_vm13 = vweird.f32 %v4033_v6 }
 0x1e1   : > { %3662 = vmatmul.msk.f32.vlgmr.msra.gmra.mxu2 %vm849_vm0, %v4655_v7  ;;  %3666 = vmatmul.msk.f32.vlgmr.msra.gmra.mxu3 %vm849_vm0, %v4655_v7  ;;  %vm962_vm14 = vmor %vm960_vm12, %vm961_vm13 }
 0x1e2   : > { %v956_v14 = vmul.f32 %v4033_v6, %v955_v13  ;;  %v943_v15 = vsel %vm942_vm11, %v4031_v53, %v939_v11 }
 0x1e3   : > { %v965_v16 = vmul.f32 %v943_v15, %v4628_v22  ;;  %v973_v22 = vmul.f32 %v4003_v63, %v966_v24 }
 0x1e4   : > { %v957_v17 = vmul.f32 0.5, %v956_v14 }
 0x1e5   : > { %v972_v19 = vmul.f32 %v4003_v63, %v965_v16  ;;  %v4675_v27 = vadd.f32 %v4004_v4, %v973_v22 }
 0x1e6   : > { %v958_v20 = vsub.f32 1.5, %v957_v17 }
 0x1e7   : > { %v4668_v21 = vadd.f32 %v4004_v4, %v972_v19 }
 0x1e8   : > { %v959_v25 = vmul.f32 %v4033_v6, %v958_v20 }
 0x1e9   : > { %3663 = vmatmul.msk.f32.gmra.mxu2 %vm849_vm0, %v4668_v21  ;;  %3667 = vmatmul.msk.f32.gmra.mxu3 %vm849_vm0, %v4668_v21 }
 0x1ea   : > { %v963_v26 = vsel %vm962_vm14, %v4033_v6, %v959_v25 }
 0x1eb   : > { %v967_v28 = vmul.f32 %v963_v26, %v4630_v23 }
 0x1ed   : > { %v974_v2 = vmul.f32 %v4003_v63, %v967_v28 }
 0x1ef   : > { %v4682_v29 = vadd.f32 %v4004_v4, %v974_v2  ;;  %v4281_v4 = vmov -1e+30  }
 0x1f0   : > { %v4745_v5 = vsel %vm869_vm1, 0.0, %v4281_v4 }
 0x1f1   : > { %3664 = vmatmul.msk.f32.gmra.mxu2 %vm849_vm0, %v4675_v27  ;;  %3668 = vmatmul.msk.f32.gmra.mxu3 %vm849_vm0, %v4675_v27 }
 0x1f9   : > { %3665 = vmatmul.msk.f32.gmra.mxu2 %vm849_vm0, %v4682_v29  ;;  %3669 = vmatmul.msk.f32.gmra.mxu3 %vm849_vm0, %v4682_v29 }
 0x264   : > { %v1067_v30 = vpop.f32.mrf.mxu3  ;;  %v1019_v31 = vpop.f32.mrf.mxu2 }
 0x265   : > { %v1020_v40 = vadd.f32 %v4645_v58, %v1019_v31  ;;  %v1068_v41 = vadd.f32 %v1067_v30, %v1048_v32 }
 0x26c   : > { %v1070_v33 = vpop.f32.mrf.mxu3  ;;  %v1022_v34 = vpop.f32.mrf.mxu2 }
 0x26d   : > { %v1071_v23 = vadd.f32 %v1070_v33, %v1048_v32  ;;  %v1023_v36 = vadd.f32 %v4645_v58, %v1022_v34 }
 0x26f   : > { %1284 = vrot.lane.b32.xlu2 %v1071_v23, %s5895_s3 }
 0x274   : > { %v1073_v35 = vpop.f32.mrf.mxu3  ;;  %v1025_v42 = vpop.f32.mrf.mxu2 }
 0x275   : > { %v1074_v37 = vadd.f32 %v1073_v35, %v1048_v32  ;;  %v1026_v43 = vadd.f32 %v4645_v58, %v1025_v42 }
 0x277   : > { %1286 = vrot.lane.b32.xlu0 %v1074_v37, %s5895_s3  ;;  %1276 = vrot.lane.b32.xlu2 %v1023_v36, %s5895_s3 }
 0x27c   : > { %v1076_v38 = vpop.f32.mrf.mxu3 }
 0x27d   : > { %v1077_v39 = vadd.f32 %v1076_v38, %v1048_v32 }
 0x27f   : > { %1288 = vrot.lane.b32.xlu1 %v1077_v39, %s5895_s3  ;;  %3674 = vmatpush.xpose.msk.msrb.mxu3 %vm1123_vm15, %v1077_v39 }
 0x280   : > { %1274 = vrot.lane.b32.xlu0 %v1020_v40, %s5895_s3  ;;  %1664 = vrot.lane.b32.xlu2 %v1074_v37, %s5891_s1 }
 0x283   : > { %3675 = vmatpush.xpose.msk.msrb.mxu3 %vm1123_vm15, %v1074_v37 }
 0x287   : > { %3676 = vmatpush.xpose.msk.msrb.mxu3 %vm1123_vm15, %v1071_v23  ;;  %1282 = vrot.lane.b32.xlu1 %v1068_v41, %s5895_s3 }
 0x288   : > { %3913 = vrot.lane.b32.xlu0 %v4610_v9, %s5889_s9  ;;  %1666 = vrot.lane.b32.xlu2 %v1077_v39, %s5891_s1  ;;  %v1028_v9 = vpop.f32.mrf.mxu2 }
 0x289   : > { %v1029_v44 = vadd.f32 %v4645_v58, %v1028_v9 }
 0x28b   : > { %3677 = vmatpush.xpose.msk.msrb.mxu3 %vm1123_vm15, %v1068_v41 }
 0x28e   : > { %3678 = vmatmul.msk.f32.vlgmr.msrb.gmra.mxu3 %vm1123_vm15, %v1020_v40 }
 0x28f   : > { %1278 = vrot.lane.b32.xlu1 %v1026_v43, %s5895_s3 }
 0x290   : > { %1475 = vrot.lane.b32.xlu0 %v1071_v23, %s5893_s29  ;;  %3918 = vrot.lane.b32.xlu2 %v4620_v12, %s5889_s9 }
 0x296   : > { %3679 = vmatmul.msk.f32.gmra.mxu3 %vm1123_vm15, %v1023_v36 }
 0x297   : > { %1477 = vrot.lane.b32.xlu1 %v1074_v37, %s5893_s29 }
 0x298   : > { %1479 = vrot.lane.b32.xlu0 %v1077_v39, %s5893_s29  ;;  %1660 = vrot.lane.b32.xlu2 %v1068_v41, %s5891_s1 }
 0x29e   : > { %3680 = vmatmul.msk.f32.gmra.mxu3 %vm1123_vm15, %v1026_v43 }
 0x29f   : > { %1662 = vrot.lane.b32.xlu1 %v1071_v23, %s5891_s1 }
 0x2a0   : > { %1467 = vrot.lane.b32.xlu2 %v1023_v36, %s5893_s29  ;;  %1473 = vrot.lane.b32.xlu0 %v1068_v41, %s5893_s29 }
 0x2a6   : > { %3681 = vmatmul.msk.f32.gmra.mxu3 %vm1123_vm15, %v1029_v44 }
 0x2a7   : > { %1280 = vrot.lane.b32.xlu1 %v1029_v44, %s5895_s3 }
 0x2a8   : > { %1656 = vrot.lane.b32.xlu2 %v1026_v43, %s5891_s1  ;;  %1652 = vrot.lane.b32.xlu0 %v1020_v40, %s5891_s1 }
 0x2af   : > { %1465 = vrot.lane.b32.xlu1 %v1020_v40, %s5893_s29 }
 0x2b0   : > { %1469 = vrot.lane.b32.xlu0 %v1026_v43, %s5893_s29 }
 0x2b7   : > { %1654 = vrot.lane.b32.xlu1 %v1023_v36, %s5891_s1 }
 0x2b8   : > { %1658 = vrot.lane.b32.xlu0 %v1029_v44, %s5891_s1 }
 0x2bf   : > { %1471 = vrot.lane.b32.xlu1 %v1029_v44, %s5893_s29 }
 0x2c7   : > { %1091 = vrot.lane.b32.xlu1 %v4645_v58, %s5889_s9  ;;  %s5955_s9 = smov 16  }
 0x2c9   : > { %v1285_v12 = vpop.permute.xlu2 %1284 }
 0x2d1   : > { %v1277_v45 = vpop.permute.xlu2 %1276 }
 0x2da   : > { %v1665_v46 = vpop.permute.xlu2 %1664 }
 0x2e2   : > { %v1667_v49 = vpop.permute.xlu2 %1666 }
 0x2e9   : > { %v1287_v47 = vpop.permute.xlu0 %1286 }
 0x2ea   : > { %v3919_v54 = vpop.permute.xlu2 %3918 }
 0x2eb   : > { %v3920_v56 = vunpack.i.l.bf16 %v3919_v54  ;;  %v3921_v58 = vunpack.i.h.bf16 %v3919_v54 }
 0x2f1   : > { %v1289_v48 = vpop.permute.xlu1 %1288 }
 0x2f2   : > { %v1275_v50 = vpop.permute.xlu0 %1274  ;;  %3686 = vmatpush.xpose.msk.msrb.mxu1 %vm1123_vm15, %v1289_v48  ;;  %v1661_v8 = vpop.permute.xlu2 %1660 }
 0x2f6   : > { %3687 = vmatpush.xpose.msk.msrb.mxu1 %vm1123_vm15, %v1287_v47 }
 0x2f9   : > { %v1283_v51 = vpop.permute.xlu1 %1282 }
 0x2fa   : > { %v3914_v52 = vpop.permute.xlu0 %3913  ;;  %3688 = vmatpush.xpose.msk.msrb.mxu1 %vm1123_vm15, %v1285_v12  ;;  %v1468_v16 = vpop.permute.xlu2 %1467 }
 0x2fb   : > { %v3915_v53 = vunpack.i.l.bf16 %v3914_v52  ;;  %v3916_v55 = vunpack.i.h.bf16 %v3914_v52 }
 0x2fd   : > { %1106 = vmatpush.msrb.mxu2 %v3915_v53 }
 0x2fe   : > { %3689 = vmatpush.xpose.msk.msrb.mxu1 %vm1123_vm15, %v1283_v51 }
 0x2ff   : > { %1107 = vmatpush.msrb.mxu2 %v3916_v55 }
 0x301   : > { %1108 = vmatpush.msrb.mxu2 %v3920_v56  ;;  %3690 = vmatmul.msk.f32.vlgmr.msrb.gmra.mxu1 %vm1123_vm15, %v1275_v50  ;;  %v1279_v57 = vpop.permute.xlu1 %1278 }
 0x302   : > { %3710 = vmatpush.xpose.msk.msra.mxu1 %vm1123_vm15, %v1667_v49  ;;  %v1476_v59 = vpop.permute.xlu0 %1475  ;;  %v1657_v19 = vpop.permute.xlu2 %1656 }
 0x303   : > { %1109 = vmatpush.msrb.mxu2 %v3921_v58 }
 0x304   : > { %3670 = vmatmul.msk.f32.vlgmr.msrb.gmra.mxu2 %vm849_vm0, %v4655_v7 }
 0x306   : > { %3711 = vmatpush.xpose.msk.msra.mxu1 %vm1123_vm15, %v1665_v46 }
 0x309   : > { %3691 = vmatmul.msk.f32.gmra.mxu1 %vm1123_vm15, %v1277_v45  ;;  %v1478_v61 = vpop.permute.xlu1 %1477 }
 0x30a   : > { %v1480_v63 = vpop.permute.xlu0 %1479 }
 0x30b   : > { %3698 = vmatpush.xpose.msk.msra.mxu3 %vm1123_vm15, %v1480_v63 }
 0x30c   : > { %3671 = vmatmul.msk.f32.gmra.mxu2 %vm849_vm0, %v4668_v21 }
 0x30f   : > { %3699 = vmatpush.xpose.msk.msra.mxu3 %vm1123_vm15, %v1478_v61 }
 0x311   : > { %3692 = vmatmul.msk.f32.gmra.mxu1 %vm1123_vm15, %v1279_v57  ;;  %v1663_v1 = vpop.permute.xlu1 %1662  ;;  %v1165_v3 = vpop.f32.mrf.mxu3 }
 0x312   : > { %v1177_v6 = vmul.f32 0.35355338, %v1165_v3  ;;  %3712 = vmatpush.xpose.msk.msra.mxu1 %vm1123_vm15, %v1663_v1  ;;  %v1474_v10 = vpop.permute.xlu0 %1473 }
 0x313   : > { %3700 = vmatpush.xpose.msk.msra.mxu3 %vm1123_vm15, %v1476_v59 }
 0x314   : > { %3672 = vmatmul.msk.f32.gmra.mxu2 %vm849_vm0, %v4675_v27  ;;  %v4752_v7 = vadd.f32 %v1177_v6, %v4745_v5 }
 0x316   : > { %3713 = vmatpush.xpose.msk.msra.mxu1 %vm1123_vm15, %v1661_v8  ;;  %v1185_v11 = vsel %vm849_vm0, %v4752_v7, -inf }
 0x317   : > { %3701 = vmatpush.xpose.msk.msra.mxu3 %vm1123_vm15, %v1474_v10  ;;  %1186 = vmax.xlane.f32.xlu1 %v1185_v11 }
 0x319   : > { %v1281_v13 = vpop.permute.xlu1 %1280  ;;  %v1168_v33 = vpop.f32.mrf.mxu3 }
 0x31a   : > { %3693 = vmatmul.msk.f32.gmra.mxu1 %vm1123_vm15, %v1281_v13  ;;  %v1653_v14 = vpop.permute.xlu0 %1652  ;;  %v1178_v34 = vmul.f32 0.35355338, %v1168_v33 }
 0x31c   : > { %3673 = vmatmul.msk.f32.gmra.mxu2 %vm849_vm0, %v4682_v29  ;;  %v4778_v37 = vadd.f32 %v1178_v34, %v4745_v5 }
 0x31e   : > { %v1188_v39 = vsel %vm849_vm0, %v4778_v37, -inf }
 0x321   : > { %v1466_v15 = vpop.permute.xlu1 %1465  ;;  %v1171_v23 = vpop.f32.mrf.mxu3 }
 0x322   : > { %3702 = vmatmul.msk.f32.vlgmr.msra.gmra.mxu3 %vm1123_vm15, %v1466_v15  ;;  %3714 = vmatmul.msk.f32.vlgmr.msra.gmra.mxu1 %vm1123_vm15, %v1653_v14  ;;  %v1470_v18 = vpop.permute.xlu0 %1469  ;;  %v1179_v38 = vmul.f32 0.35355338, %v1171_v23 }
 0x324   : > { %v4783_v41 = vadd.f32 %v1179_v38, %v4745_v5 }
 0x326   : > { %v1191_v9 = vsel %vm849_vm0, %v4783_v41, -inf }
 0x329   : > { %v1655_v17 = vpop.permute.xlu1 %1654  ;;  %v1174_v35 = vpop.f32.mrf.mxu3 }
 0x32a   : > { %3703 = vmatmul.msk.f32.gmra.mxu3 %vm1123_vm15, %v1468_v16  ;;  %3715 = vmatmul.msk.f32.gmra.mxu1 %vm1123_vm15, %v1655_v17  ;;  %v1659_v20 = vpop.permute.xlu0 %1658  ;;  %v1180_v43 = vmul.f32 0.35355338, %v1174_v35 }
 0x32c   : > { %v4788_v12 = vadd.f32 %v1180_v43, %v4745_v5 }
 0x32e   : > { %v1194_v48 = vsel %vm849_vm0, %v4788_v12, -inf }
 0x331   : > { %v1472_v21 = vpop.permute.xlu1 %1471 }
 0x332   : > { %3704 = vmatmul.msk.f32.gmra.mxu3 %vm1123_vm15, %v1470_v18  ;;  %3716 = vmatmul.msk.f32.gmra.mxu1 %vm1123_vm15, %v1657_v19 }
 0x339   : > { %v1092_v25 = vpop.permute.xlu1 %1091 }
 0x33a   : > { %3705 = vmatmul.msk.f32.gmra.mxu3 %vm1123_vm15, %v1472_v21  ;;  %3717 = vmatmul.msk.f32.gmra.mxu1 %vm1123_vm15, %v1659_v20 }
 0x37e   : > { %v1323_v36 = vpop.f32.mrf.mxu1 }
 0x37f   : > { %v1335_v47 = vmul.f32 0.35355338, %v1323_v36 }
 0x381   : > { %v4798_v53 = vadd.f32 %v1335_v47, %v4745_v5 }
 0x383   : > { %v1343_v57 = vsel %vm849_vm0, %v4798_v53, -inf }
 0x386   : > { %v1326_v42 = vpop.f32.mrf.mxu1 }
 0x387   : > { %v1111_v24 = vpop.f32.mrf.mxu2  ;;  %v1336_v44 = vmul.f32 0.35355338, %v1326_v42 }
 0x388   : > { %v1112_v26 = vadd.f32 %v1111_v24, %v1092_v25 }
 0x389   : > { %v4791_v45 = vadd.f32 %v1336_v44, %v4745_v5 }
 0x38a   : > { %v1187_v52 = vpop.xlane.xlu1 %1186 }
 0x38b   : > { %v1346_v50 = vsel %vm849_vm0, %v4791_v45, -inf  ;;  %v1197_v55 = vsub.f32 %v4752_v7, %v1187_v52 }
 0x38d   : > { %v1201_v60 = vmul.f32 1.442695, %v1197_v55 }
 0x38e   : > { %v1329_v51 = vpop.f32.mrf.mxu1 }
 0x38f   : > { %v1114_v22 = vpop.f32.mrf.mxu2  ;;  %v1337_v58 = vmul.f32 0.35355338, %v1329_v51  ;;  %4034 = vpow2.f32 %v1201_v60 }
 0x390   : > { %v1115_v27 = vadd.f32 %v1114_v22, %v1092_v25 }
 0x391   : > { %v4812_v0 = vadd.f32 %v1337_v58, %v4745_v5 }
 0x392   : > { %v4769_v28 = vpack.i.bf16 %v1112_v26, %v1115_v27 }
 0x393   : > { %v1349_v4 = vsel %vm849_vm0, %v4812_v0, -inf }
 0x394   : > { %3923 = vrot.lane.b32.xlu2 %v4769_v28, %s5895_s3 }
 0x395   : > { %v4818_v6 = vpop.eup %4034 }
 0x396   : > { %v1209_v13 = vsel %vm849_vm0, %v4818_v6, 0.0 }
 0x397   : > { %v1117_v2 = vpop.f32.mrf.mxu2  ;;  %v1332_v61 = vpop.f32.mrf.mxu1 }
 0x398   : > { %v1118_v30 = vadd.f32 %v1117_v2, %v1092_v25  ;;  %v1338_v3 = vmul.f32 0.35355338, %v1332_v61 }
 0x39a   : > { %v4821_v8 = vadd.f32 %v1338_v3, %v4745_v5 }
 0x39c   : > { %v1352_v15 = vsel %vm849_vm0, %v4821_v8, -inf }
 0x39f   : > { %v1120_v29 = vpop.f32.mrf.mxu2  ;;  %v1701_v10 = vpop.f32.mrf.mxu1 }
 0x3a0   : > { %v1121_v31 = vadd.f32 %v1120_v29, %v1092_v25  ;;  %v1713_v14 = vmul.f32 0.35355338, %v1701_v10 }
 0x3a2   : > { %1253 = vmatpush.msrb.mxu0 %v1121_v31  ;;  %v4773_v32 = vpack.i.bf16 %v1118_v30, %v1121_v31  ;;  %v4831_v17 = vadd.f32 %v1713_v14, %v4745_v5 }
 0x3a4   : > { %3928 = vrot.lane.b32.xlu0 %v4773_v32, %s5895_s3  ;;  %1254 = vmatpush.msrb.mxu0 %v1118_v30  ;;  %v1721_v19 = vsel %vm849_vm0, %v4831_v17, -inf  ;;  %s5952_s3 = smov 104  }
 0x3a5   : > { %v1514_v40 = vpop.f32.mrf.mxu3 }
 0x3a6   : > { %1255 = vmatpush.msrb.mxu0 %v1115_v27  ;;  %v1526_v56 = vmul.f32 0.35355338, %v1514_v40 }
 0x3a7   : > { %v1704_v30 = vpop.f32.mrf.mxu1 }
 0x3a8   : > { %1256 = vmatpush.msrb.mxu0 %v1112_v26  ;;  %v4809_v63 = vadd.f32 %v1526_v56, %v4745_v5 }
 0x3aa   : > { %v1534_v1 = vsel %vm849_vm0, %v4809_v63, -inf }
 0x3ad   : > { %v1517_v46 = vpop.f32.mrf.mxu3 }
 0x3ae   : > { %v1527_v49 = vmul.f32 0.35355338, %v1517_v46 }
 0x3b0   : > { %v4801_v54 = vadd.f32 %v1527_v49, %v4745_v5 }
 0x3b2   : > { %v1537_v59 = vsel %vm849_vm0, %v4801_v54, -inf }
 0x3b5   : > { %v1520_v7 = vpop.f32.mrf.mxu3 }
 0x3b6   : > { %v1528_v11 = vmul.f32 0.35355338, %v1520_v7 }
 0x3b8   : > { %v4828_v16 = vadd.f32 %v1528_v11, %v4745_v5 }
 0x3ba   : > { %v1540_v18 = vsel %vm849_vm0, %v4828_v16, -inf }
 0x3bd   : > { %1189 = vmax.xlane.f32.xlu2 %v1188_v39  ;;  %v1523_v33 = vpop.f32.mrf.mxu3  ;;  %v1707_v39 = vpop.f32.mrf.mxu1 }
 0x3be   : > { %v1529_v36 = vmul.f32 0.35355338, %v1523_v33  ;;  %v1715_v44 = vmul.f32 0.35355338, %v1707_v39 }
 0x3c0   : > { %v4857_v52 = vadd.f32 %v1715_v44, %v4745_v5 }
 0x3c2   : > { %v1727_v60 = vsel %vm849_vm0, %v4857_v52, -inf }
 0x3c5   : > { %1192 = vmax.xlane.f32.xlu2 %v1191_v9  ;;  %v1710_v49 = vpop.f32.mrf.mxu1 }
 0x3c6   : > { %v1716_v56 = vmul.f32 0.35355338, %v1710_v49 }
 0x3cd   : > { %1195 = vmax.xlane.f32.xlu2 %v1194_v48 }
 0x3ce   : > { %1347 = vmax.xlane.f32.xlu0 %v1346_v50 }
 0x3d5   : > { %1344 = vmax.xlane.f32.xlu2 %v1343_v57 }
 0x3d6   : > { %1538 = vmax.xlane.f32.xlu0 %v1537_v59 }
 0x3dd   : > { %1535 = vmax.xlane.f32.xlu2 %v1534_v1  ;;  %v4868_v1 = vadd.f32 %v1716_v56, %v4745_v5 }
 0x3de   : > { %1350 = vmax.xlane.f32.xlu0 %v1349_v4 }
 0x3df   : > { %v1730_v10 = vsel %vm849_vm0, %v4868_v1, -inf }
 0x3e5   : > { %1210 = vadd.xlane.f32.xlu2 %v1209_v13 }
 0x3e6   : > { %1353 = vmax.xlane.f32.xlu0 %v1352_v15 }
 0x3ed   : > { %1541 = vmax.xlane.f32.xlu2 %v1540_v18 }
 0x3ee   : > { %1722 = vmax.xlane.f32.xlu0 %v1721_v19  ;;  %v3924_v24 = vpop.permute.xlu2 %3923 }
 0x3ef   : > { %v3925_v22 = vunpack.i.l.bf16 %v3924_v24  ;;  %v3926_v26 = vunpack.i.h.bf16 %v3924_v24 }
 0x416   : > { %v3929_v20 = vpop.permute.xlu0 %3928 }
 0x417   : > { %v3930_v21 = vunpack.i.l.bf16 %v3929_v20  ;;  %v3931_v25 = vunpack.i.h.bf16 %v3929_v20 }
 0x419   : > { %1427 = vmatpush.msra.mxu2 %v3930_v21 }
 0x41b   : > { %1428 = vmatpush.msra.mxu2 %v3931_v25 }
 0x41d   : > { %1429 = vmatpush.msra.mxu2 %v3925_v22 }
 0x41f   : > { %1430 = vmatpush.msra.mxu2 %v3926_v26 }
 0x430   : > { %v1190_v27 = vpop.xlane.xlu2 %1189 }
 0x431   : > { %v1198_v2 = vsub.f32 %v4778_v37, %v1190_v27  ;;  %v4844_v37 = vadd.f32 %v1529_v36, %v4745_v5 }
 0x433   : > { %v1203_v29 = vmul.f32 1.442695, %v1198_v2  ;;  %v1543_v46 = vsel %vm849_vm0, %v4844_v37, -inf }
 0x435   : > { %4036 = vpow2.f32 %v1203_v29 }
 0x438   : > { %v1193_v31 = vpop.xlane.xlu2 %1192 }
 0x439   : > { %v1199_v23 = vsub.f32 %v4783_v41, %v1193_v31  ;;  %v1714_v41 = vmul.f32 0.35355338, %v1704_v30 }
 0x43b   : > { %v4839_v34 = vpop.eup %4036  ;;  %v1205_v35 = vmul.f32 1.442695, %v1199_v23  ;;  %v4854_v51 = vadd.f32 %v1714_v41, %v4745_v5 }
 0x43c   : > { %v1212_v38 = vsel %vm849_vm0, %v4839_v34, 0.0 }
 0x43d   : > { %4038 = vpow2.f32 %v1205_v35  ;;  %1213 = vadd.xlane.f32.xlu1 %v1212_v38  ;;  %v1724_v59 = vsel %vm849_vm0, %v4854_v51, -inf }
 0x440   : > { %v1196_v40 = vpop.xlane.xlu2 %1195 }
 0x441   : > { %v1348_v42 = vpop.xlane.xlu0 %1347  ;;  %v1200_v9 = vsub.f32 %v4788_v12, %v1196_v40 }
 0x442   : > { %v1356_v57 = vsub.f32 %v4791_v45, %v1348_v42 }
 0x443   : > { %v4846_v43 = vpop.eup %4038  ;;  %v1207_v48 = vmul.f32 1.442695, %v1200_v9 }
 0x444   : > { %v1215_v47 = vsel %vm849_vm0, %v4846_v43, 0.0  ;;  %v1361_v61 = vmul.f32 1.442695, %v1356_v57 }
 0x445   : > { %1544 = vmax.xlane.f32.xlu1 %v1543_v46  ;;  %1216 = vadd.xlane.f32.xlu2 %v1215_v47  ;;  %4040 = vpow2.f32 %v1207_v48 }
 0x448   : > { %v1345_v50 = vpop.xlane.xlu2 %1344 }
 0x449   : > { %v1355_v12 = vsub.f32 %v4798_v53, %v1345_v50  ;;  %v4860_v55 = vpop.xlane.xlu0 %1538 }
 0x44b   : > { %v1359_v58 = vmul.f32 1.442695, %v1355_v12  ;;  %v4870_v3 = vpop.eup %4040 }
 0x44c   : > { %v1218_v14 = vsel %vm849_vm0, %v4870_v3, 0.0 }
 0x44d   : > { %4042 = vpow2.f32 %v1359_v58  ;;  %1725 = vmax.xlane.f32.xlu1 %v1724_v59  ;;  %1728 = vmax.xlane.f32.xlu2 %v1727_v60  ;;  %v1547_v59 = vsub.f32 %v4801_v54, %v4860_v55 }
 0x44e   : > { %4044 = vpow2.f32 %v1361_v61 }
 0x450   : > { %v1536_v53 = vpop.xlane.xlu2 %1535 }
 0x451   : > { %v1351_v4 = vpop.xlane.xlu0 %1350  ;;  %v1546_v11 = vsub.f32 %v4809_v63, %v1536_v53 }
 0x452   : > { %v1357_v45 = vsub.f32 %v4812_v0, %v1351_v4 }
 0x453   : > { %v4873_v7 = vpop.eup %4042  ;;  %v1550_v0 = vmul.f32 1.442695, %v1546_v11 }
 0x454   : > { %v1363_v13 = vmul.f32 1.442695, %v1357_v45  ;;  %v1367_v15 = vsel %vm849_vm0, %v4873_v7, 0.0  ;;  %v4882_v19 = vpop.eup %4044 }
 0x455   : > { %1731 = vmax.xlane.f32.xlu2 %v1730_v10  ;;  %1219 = vadd.xlane.f32.xlu1 %v1218_v14  ;;  %v1370_v25 = vsel %vm849_vm0, %v4882_v19, 0.0 }
 0x456   : > { %4046 = vpow2.f32 %v1363_v13  ;;  %1368 = vadd.xlane.f32.xlu0 %v1367_v15  ;;  %v1552_v13 = vmul.f32 1.442695, %v1547_v59 }
 0x458   : > { %v1211_v18 = vpop.xlane.xlu2 %1210 }
 0x459   : > { %4048 = vrcp.f32 %v1211_v18  ;;  %v1354_v20 = vpop.xlane.xlu0 %1353 }
 0x45a   : > { %v1358_v21 = vsub.f32 %v4821_v8, %v1354_v20  ;;  %4050 = vpow2.f32 %v1550_v0 }
 0x45c   : > { %v4885_v63 = vpop.eup %4046  ;;  %v1365_v24 = vmul.f32 1.442695, %v1358_v21 }
 0x45d   : > { %v1373_v22 = vsel %vm849_vm0, %v4885_v63, 0.0 }
 0x45e   : > { %4052 = vpow2.f32 %v1365_v24  ;;  %1371 = vadd.xlane.f32.xlu0 %v1370_v25  ;;  %1374 = vadd.xlane.f32.xlu1 %v1373_v22 }
 0x45f   : > { %v4049_v26 = vpop.eup %4048 }
 0x460   : > { %v1225_v27 = vmul.f32 %v4049_v26, %v4818_v6  ;;  %v4892_v2 = vpop.eup %4050  ;;  %v1542_v36 = vpop.xlane.xlu2 %1541 }
 0x461   : > { %v1558_v29 = vsel %vm849_vm0, %v4892_v2, 0.0  ;;  %v1723_v6 = vpop.xlane.xlu0 %1722 }
 0x462   : > { %3682 = vmatmul.msk.f32.vlgmr.msrb.gmra.mxu0 %vm849_vm0, %v1225_v27  ;;  %v1733_v31 = vsub.f32 %v4831_v17, %v1723_v6 }
 0x464   : > { %v4895_v8 = vpop.eup %4052  ;;  %v1737_v33 = vmul.f32 1.442695, %v1733_v31 }
 0x465   : > { %v1376_v30 = vsel %vm849_vm0, %v4895_v8, 0.0 }
 0x466   : > { %1559 = vadd.xlane.f32.xlu0 %v1558_v29  ;;  %1377 = vadd.xlane.f32.xlu1 %v1376_v30  ;;  %4054 = vpow2.f32 %v1737_v33 }
 0x46c   : > { %v4908_v23 = vpop.eup %4054 }
 0x46d   : > { %3943 = vrot.lane.b32.xlu2 %v4773_v32, %s5893_s29  ;;  %v1745_v35 = vsel %vm849_vm0, %v4908_v23, 0.0 }
 0x47a   : > { %3938 = vrot.lane.b32.xlu0 %v4769_v28, %s5891_s1 }
 0x47f   : > { %3933 = vrot.lane.b32.xlu1 %v4773_v32, %s5891_s1  ;;  %s5944_s1 = sld [smem:[#allocation23_spill]] }
 0x4a4   : > { %1746 = vadd.xlane.f32.xlu0 %v1745_v35 }
 0x4b0   : > { %v1214_v38 = vpop.xlane.xlu1 %1213 }
 0x4b1   : > { %4056 = vrcp.f32 %v1214_v38 }
 0x4b7   : > { %v4057_v39 = vpop.eup %4056 }
 0x4b8   : > { %3948 = vrot.lane.b32.xlu0 %v4769_v28, %s5893_s29  ;;  %v1545_v40 = vpop.xlane.xlu1 %1544  ;;  %v1217_v32 = vpop.xlane.xlu2 %1216  ;;  %v1226_v42 = vmul.f32 %v4057_v39, %v4839_v34  ;;  %v1548_v28 = vsub.f32 %v4828_v16, %v1542_v36  ;;  %s5956_s29 = smov 24  }
 0x4b9   : > { %4058 = vrcp.f32 %v1217_v32  ;;  %v1549_v14 = vsub.f32 %v4844_v37, %v1545_v40 }
 0x4ba   : > { %3683 = vmatmul.msk.f32.gmra.mxu0 %vm849_vm0, %v1226_v42  ;;  %v1554_v34 = vmul.f32 1.442695, %v1548_v28 }
 0x4bf   : > { %v4059_v17 = vpop.eup %4058 }
 0x4c0   : > { %v1726_v9 = vpop.xlane.xlu1 %1725  ;;  %v1729_v41 = vpop.xlane.xlu2 %1728  ;;  %v1227_v44 = vmul.f32 %v4059_v17, %v4846_v43 }
 0x4c1   : > { %v1734_v46 = vsub.f32 %v4854_v51, %v1726_v9  ;;  %v1735_v47 = vsub.f32 %v4857_v52, %v1729_v41 }
 0x4c2   : > { %3684 = vmatmul.msk.f32.gmra.mxu0 %vm849_vm0, %v1227_v44 }
 0x4c3   : > { %v1739_v48 = vmul.f32 1.442695, %v1734_v46  ;;  %v1741_v49 = vmul.f32 1.442695, %v1735_v47 }
 0x4c5   : > { %4060 = vpow2.f32 %v1739_v48 }
 0x4c6   : > { %4062 = vpow2.f32 %v1741_v49 }
 0x4c8   : > { %v1220_v50 = vpop.xlane.xlu1 %1219  ;;  %v1732_v12 = vpop.xlane.xlu2 %1731 }
 0x4c9   : > { %4064 = vrcp.f32 %v1220_v50  ;;  %v1369_v56 = vpop.xlane.xlu0 %1368  ;;  %v1736_v43 = vsub.f32 %v4868_v1, %v1732_v12 }
 0x4ca   : > { %4066 = vrcp.f32 %v1369_v56 }
 0x4cb   : > { %v4921_v57 = vpop.eup %4060  ;;  %4068 = vpow2.f32 %v1554_v34  ;;  %v1743_v60 = vmul.f32 1.442695, %v1736_v43 }
 0x4cc   : > { %v4924_v51 = vpop.eup %4062  ;;  %v1748_v16 = vsel %vm849_vm0, %v4921_v57, 0.0 }
 0x4cd   : > { %1749 = vadd.xlane.f32.xlu1 %v1748_v16  ;;  %v1751_v52 = vsel %vm849_vm0, %v4924_v51, 0.0 }
 0x4ce   : > { %1752 = vadd.xlane.f32.xlu2 %v1751_v52 }
 0x4cf   : > { %v4065_v58 = vpop.eup %4064 }
 0x4d0   : > { %v4067_v61 = vpop.eup %4066  ;;  %v3944_v53 = vpop.permute.xlu2 %3943  ;;  %v1228_v4 = vmul.f32 %v4065_v58, %v4870_v3  ;;  %v1556_v3 = vmul.f32 1.442695, %v1549_v14 }
 0x4d1   : > { %v4933_v1 = vpop.eup %4068  ;;  %v1383_v45 = vmul.f32 %v4067_v61, %v4873_v7  ;;  %v1372_v10 = vpop.xlane.xlu0 %1371  ;;  %v3945_v11 = vunpack.i.l.bf16 %v3944_v53  ;;  %v3946_v15 = vunpack.i.h.bf16 %v3944_v53 }
 0x4d2   : > { %4070 = vrcp.f32 %v1372_v10  ;;  %3685 = vmatmul.msk.f32.gmra.mxu0 %vm849_vm0, %v1228_v4  ;;  %v1375_v54 = vpop.xlane.xlu1 %1374  ;;  %v1564_v55 = vsel %vm849_vm0, %v4933_v1, 0.0 }
 0x4d3   : > { %4072 = vpow2.f32 %v1743_v60  ;;  %3694 = vmatmul.msk.f32.vlgmr.msra.gmra.mxu2 %vm849_vm0, %v1383_v45  ;;  %1614 = vmatpush.msra.mxu0 %v3945_v11 }
 0x4d4   : > { %4074 = vpow2.f32 %v1552_v13 }
 0x4d5   : > { %1565 = vadd.xlane.f32.xlu1 %v1564_v55  ;;  %1615 = vmatpush.msra.mxu0 %v3946_v15  ;;  %4076 = vrcp.f32 %v1375_v54 }
 0x4d6   : > { %4078 = vpow2.f32 %v1556_v3 }
 0x4d8   : > { %v4071_v7 = vpop.eup %4070 }
 0x4d9   : > { %v4941_v0 = vpop.eup %4072  ;;  %v1384_v18 = vmul.f32 %v4071_v7, %v4882_v19  ;;  %v1560_v6 = vpop.xlane.xlu0 %1559 }
 0x4da   : > { %v1754_v37 = vsel %vm849_vm0, %v4941_v0, 0.0  ;;  %v4947_v20 = vpop.eup %4074  ;;  %v1378_v21 = vpop.xlane.xlu1 %1377 }
 0x4db   : > { %3695 = vmatmul.msk.f32.gmra.mxu2 %vm849_vm0, %v1384_v18  ;;  %v4077_v24 = vpop.eup %4076  ;;  %4080 = vrcp.f32 %v1378_v21  ;;  %v1561_v19 = vsel %vm849_vm0, %v4947_v20, 0.0  ;;  %v1846_v18 = vld [vmem:[%s5944_s1 + $0x18] sm:$0xff]  ;;  %v1843_v21 = vld [vmem:[%s5944_s1] sm:$0xff] }
 0x4dc   : > { %v4950_v22 = vpop.eup %4078  ;;  %v1385_v26 = vmul.f32 %v4077_v24, %v4885_v63  ;;  %1871 = vmatpush.msrb.mxu3 %v1846_v18  ;;  %v2004_v18 = vld [vmem:[%s5946_s13] sm:$0xff] }
 0x4dd   : > { %1755 = vadd.xlane.f32.xlu1 %v1754_v37  ;;  %v1567_v27 = vsel %vm849_vm0, %v4950_v22, 0.0  ;;  %v1845_v37 = vld [vmem:[%s5944_s1 + $0x10] sm:$0xff] }
 0x4de   : > { %1872 = vmatpush.msrb.mxu3 %v1845_v37 }
 0x4df   : > { %v1258_v25 = vpop.f32.mrf.mxu0 }
 0x4e0   : > { %1270 = vst.msk [vmem:[#allocation3] sm:$0xff] %vm1123_vm15, %v1258_v25 }
 0x4e1   : > { %v4081_v29 = vpop.eup %4080 }
 0x4e2   : > { %1562 = vadd.xlane.f32.xlu0 %v1561_v19  ;;  %v1386_v30 = vmul.f32 %v4081_v29, %v4895_v8 }
 0x4e3   : > { %3696 = vmatmul.msk.f32.gmra.mxu2 %vm849_vm0, %v1385_v26 }
 0x4e5   : > { %1568 = vadd.xlane.f32.xlu1 %v1567_v27 }
 0x4eb   : > { %3697 = vmatmul.msk.f32.gmra.mxu2 %vm849_vm0, %v1386_v30 }
 0x4ec   : > { %v3939_v35 = vpop.permute.xlu0 %3938 }
 0x4ed   : > { %v3940_v38 = vunpack.i.l.bf16 %v3939_v35  ;;  %v3941_v63 = vunpack.i.h.bf16 %v3939_v35 }
 0x4f1   : > { %v3934_v31 = vpop.permute.xlu1 %3933 }
 0x4f2   : > { %v3935_v33 = vunpack.i.l.bf16 %v3934_v31  ;;  %v3936_v36 = vunpack.i.h.bf16 %v3934_v31 }
 0x4f4   : > { %1801 = vmatpush.msrb.mxu2 %v3935_v33 }
 0x4f6   : > { %1802 = vmatpush.msrb.mxu2 %v3936_v36 }
 0x4f8   : > { %1803 = vmatpush.msrb.mxu2 %v3940_v38 }
 0x4fa   : > { %1804 = vmatpush.msrb.mxu2 %v3941_v63  ;;  %v4006_v63 = vld [vmem:[%s5945_s10] ss:$0 sm:$0xff] }
 0x517   : > { %v1747_v39 = vpop.xlane.xlu0 %1746 }
 0x518   : > { %4082 = vrcp.f32 %v1747_v39 }
 0x519   : > { %4084 = vrcp.f32 %v1560_v6 }
 0x51e   : > { %v4083_v40 = vpop.eup %4082 }
 0x51f   : > { %v1761_v32 = vmul.f32 %v4083_v40, %v4908_v23  ;;  %v4085_v42 = vpop.eup %4084  ;;  %v4206_v40 = vld [vmem:[#allocation2] sm:$0xff] }
 0x520   : > { %v1574_v41 = vmul.f32 %v4085_v42, %v4892_v2 }
 0x521   : > { %3718 = vmatmul.msk.f32.vlgmr.msrb.gmra.mxu2 %vm849_vm0, %v1761_v32 }
 0x52a   : > { %v3949_v8 = vpop.permute.xlu0 %3948 }
 0x52b   : > { %v3950_v17 = vunpack.i.l.bf16 %v3949_v8  ;;  %v3951_v9 = vunpack.i.h.bf16 %v3949_v8 }
 0x52d   : > { %1616 = vmatpush.msra.mxu0 %v3950_v17 }
 0x52f   : > { %1617 = vmatpush.msra.mxu0 %v3951_v9  ;;  %v4207_v9 = vld [vmem:[#allocation2 + $0x8] sm:$0xff] }
 0x530   : > { %3706 = vmatmul.msk.f32.vlgmr.msra.gmra.mxu0 %vm849_vm0, %v1574_v41 }
 0x537   : > { %v1261_v44 = vpop.f32.mrf.mxu0 }
 0x538   : > { %1271 = vst.msk [vmem:[#allocation3 + $0x8] sm:$0xff] %vm1123_vm15, %v1261_v44 }
 0x53f   : > { %v1264_v46 = vpop.f32.mrf.mxu0 }
 0x540   : > { %1272 = vst.msk [vmem:[#allocation3 + $0x10] sm:$0xff] %vm1123_vm15, %v1264_v46  ;;  %v1750_v23 = vpop.xlane.xlu1 %1749 }
 0x541   : > { %4086 = vrcp.f32 %v1750_v23  ;;  %v1753_v47 = vpop.xlane.xlu2 %1752 }
 0x542   : > { %4088 = vrcp.f32 %v1753_v47  ;;  %v4208_v47 = vld [vmem:[#allocation2 + $0x10] sm:$0xff] }
 0x547   : > { %v4087_v28 = vpop.eup %4086 }
 0x548   : > { %v1566_v48 = vpop.xlane.xlu1 %1565  ;;  %v1762_v49 = vmul.f32 %v4087_v28, %v4921_v57  ;;  %v4089_v2 = vpop.eup %4088 }
 0x549   : > { %v1763_v12 = vmul.f32 %v4089_v2, %v4924_v51 }
 0x54a   : > { %3719 = vmatmul.msk.f32.gmra.mxu2 %vm849_vm0, %v1762_v49 }
 0x54f   : > { %v1267_v34 = vpop.f32.mrf.mxu0 }
 0x550   : > { %1273 = vst.msk [vmem:[#allocation3 + $0x18] sm:$0xff] %vm1123_vm15, %v1267_v34  ;;  %v1756_v50 = vpop.xlane.xlu1 %1755  ;;  %v4209_v34 = vld [vmem:[#allocation2 + $0x18] sm:$0xff] }
 0x551   : > { %4090 = vrcp.f32 %v1756_v50 }
 0x552   : > { %3720 = vmatmul.msk.f32.gmra.mxu2 %vm849_vm0, %v1763_v12 }
 0x555   : > { %v1563_v56 = vpop.xlane.xlu0 %1562 }
 0x556   : > { %4092 = vrcp.f32 %v1563_v56  ;;  %v1432_v43 = vpop.f32.mrf.mxu2 }
 0x557   : > { %v4091_v16 = vpop.eup %4090  ;;  %1448 = vrot.lane.b32.xlu0 %v1432_v43, %s5887_s30  ;;  %4094 = vrcp.f32 %v1566_v48 }
 0x558   : > { %v1764_v57 = vmul.f32 %v4091_v16, %v4941_v0  ;;  %v1569_v51 = vpop.xlane.xlu1 %1568 }
 0x559   : > { %4096 = vrcp.f32 %v1569_v51 }
 0x55a   : > { %3721 = vmatmul.msk.f32.gmra.mxu2 %vm849_vm0, %v1764_v57 }
 0x55c   : > { %v4093_v52 = vpop.eup %4092 }
 0x55d   : > { %v1575_v58 = vmul.f32 %v4093_v52, %v4947_v20  ;;  %v4095_v60 = vpop.eup %4094  ;;  %v1844_v20 = vld [vmem:[%s5944_s1 + $0x8] sm:$0xff] }
 0x55e   : > { %v1435_v59 = vpop.f32.mrf.mxu2  ;;  %v1576_v61 = vmul.f32 %v4095_v60, %v4933_v1  ;;  %1873 = vmatpush.msrb.mxu3 %v1844_v20 }
 0x55f   : > { %1450 = vrot.lane.b32.xlu0 %v1435_v59, %s5887_s30  ;;  %3707 = vmatmul.msk.f32.gmra.mxu0 %vm849_vm0, %v1575_v58  ;;  %v4097_v53 = vpop.eup %4096 }
 0x560   : > { %v1577_v4 = vmul.f32 %v4097_v53, %v4950_v22  ;;  %1874 = vmatpush.msrb.mxu3 %v1843_v21 }
 0x566   : > { %v1438_v45 = vpop.f32.mrf.mxu2 }
 0x567   : > { %3708 = vmatmul.msk.f32.gmra.mxu0 %vm849_vm0, %v1576_v61 }
 0x56e   : > { %v1441_v10 = vpop.f32.mrf.mxu2 }
 0x56f   : > { %3709 = vmatmul.msk.f32.gmra.mxu0 %vm849_vm0, %v1577_v4 }
 0x5a4   : > { %v1806_v11 = vpop.f32.mrf.mxu2 }
 0x5a5   : > { %1822 = vrot.lane.b32.xlu1 %v1806_v11, %s5900_s5 }
 0x5ad   : > { %1452 = vrot.lane.b32.xlu1 %v1438_v45, %s5887_s30  ;;  %v1619_v13 = vpop.f32.mrf.mxu0 }
 0x5ae   : > { %1635 = vrot.lane.b32.xlu2 %v1619_v13, %s5903_s8 }
 0x5b5   : > { %1454 = vrot.lane.b32.xlu1 %v1441_v10, %s5887_s30  ;;  %s5957_s30 = sld [smem:[#allocation28_spill]] }
 0x5c9   : > { %v1449_v1 = vpop.permute.xlu0 %1448 }
 0x5ca   : > { %1461 = vst.msk [vmem:[#allocation3] sm:$0xff] %vm1460_vm2, %v1449_v1 }
 0x5cd   : > { %v1809_v14 = vpop.f32.mrf.mxu2 }
 0x5ce   : > { %1824 = vrot.lane.b32.xlu0 %v1809_v14, %s5900_s5 }
 0x5d1   : > { %v1451_v15 = vpop.permute.xlu0 %1450 }
 0x5d2   : > { %1462 = vst.msk [vmem:[#allocation3 + $0x8] sm:$0xff] %vm1460_vm2, %v1451_v15 }
 0x5d5   : > { %v1812_v54 = vpop.f32.mrf.mxu2 }
 0x5d6   : > { %1826 = vrot.lane.b32.xlu0 %v1812_v54, %s5900_s5 }
 0x5dc   : > { %v1622_v55 = vpop.f32.mrf.mxu0 }
 0x5dd   : > { %1637 = vrot.lane.b32.xlu2 %v1622_v55, %s5903_s8  ;;  %v1815_v3 = vpop.f32.mrf.mxu2 }
 0x5de   : > { %1828 = vrot.lane.b32.xlu0 %v1815_v3, %s5900_s5  ;;  %v2007_v3 = vld [vmem:[%s5946_s13 + $0x18] sm:$0xff] }
 0x5df   : > { %2036 = vmatpush.msrb.mxu0 %v2007_v3 }
 0x5e4   : > { %v1625_v7 = vpop.f32.mrf.mxu0 }
 0x5e5   : > { %1639 = vrot.lane.b32.xlu2 %v1625_v7, %s5903_s8  ;;  %v2006_v7 = vld [vmem:[%s5946_s13 + $0x10] sm:$0xff] }
 0x5e6   : > { %2037 = vmatpush.msrb.mxu0 %v2006_v7 }
 0x5ec   : > { %v1628_v0 = vpop.f32.mrf.mxu0 }
 0x5ed   : > { %1641 = vrot.lane.b32.xlu2 %v1628_v0, %s5903_s8  ;;  %v2005_v0 = vld [vmem:[%s5946_s13 + $0x8] sm:$0xff]  ;;  %s5954_s8 = smov 8  }
 0x5ee   : > { %2038 = vmatpush.msrb.mxu0 %v2005_v0 }
 0x5f0   : > { %2039 = vmatpush.msrb.mxu0 %v2004_v18 }
 0x608   : > { %v1636_v24 = vpop.permute.xlu2 %1635 }
 0x609   : > { %1648 = vst.msk [vmem:[#allocation3] sm:$0xff] %vm1647_vm3, %v1636_v24 }
 0x617   : > { %v1823_v25 = vpop.permute.xlu1 %1822 }
 0x618   : > { %1835 = vst.msk [vmem:[#allocation3] sm:$0xff] %vm1834_vm4, %v1823_v25 }
 0x61f   : > { %v1453_v22 = vpop.permute.xlu1 %1452  ;;  %v1839_v19 = vld [vmem:[#allocation3] sm:$0xff] }
 0x620   : > { %1463 = vst.msk [vmem:[#allocation3 + $0x10] sm:$0xff] %vm1460_vm2, %v1453_v22  ;;  %3722 = vmatmul.msk.f32.vlgmr.msrb.gmra.mxu3 %vm849_vm0, %v1839_v19 }
 0x627   : > { %v1455_v26 = vpop.permute.xlu1 %1454 }
 0x628   : > { %1464 = vst.msk [vmem:[#allocation3 + $0x18] sm:$0xff] %vm1460_vm2, %v1455_v26 }
 0x637   : > { %v1638_v27 = vpop.permute.xlu2 %1637 }
 0x638   : > { %1649 = vst.msk [vmem:[#allocation3 + $0x8] sm:$0xff] %vm1647_vm3, %v1638_v27 }
 0x63f   : > { %v1640_v29 = vpop.permute.xlu2 %1639 }
 0x640   : > { %1650 = vst.msk [vmem:[#allocation3 + $0x10] sm:$0xff] %vm1647_vm3, %v1640_v29  ;;  %v1825_v30 = vpop.permute.xlu0 %1824  ;;  %v5078_v29 = vld [vmem:[%s5947_s11] ss:$0 sm:$0xff] }
 0x641   : > { %1836 = vst.msk [vmem:[#allocation3 + $0x8] sm:$0xff] %vm1834_vm4, %v1825_v30 }
 0x647   : > { %v1642_v6 = vpop.permute.xlu2 %1641 }
 0x648   : > { %1651 = vst.msk [vmem:[#allocation3 + $0x18] sm:$0xff] %vm1647_vm3, %v1642_v6  ;;  %v1827_v31 = vpop.permute.xlu0 %1826  ;;  %v1840_v33 = vld [vmem:[#allocation3 + $0x8] sm:$0xff] }
 0x649   : > { %1837 = vst.msk [vmem:[#allocation3 + $0x10] sm:$0xff] %vm1834_vm4, %v1827_v31  ;;  %3723 = vmatmul.msk.f32.gmra.mxu3 %vm849_vm0, %v1840_v33  ;;  %v4008_v31 = vld [vmem:[%s5948_s12] ss:$0 sm:$0xff] }
 0x650   : > { %v1829_v35 = vpop.permute.xlu0 %1828  ;;  %v1841_v36 = vld [vmem:[#allocation3 + $0x10] sm:$0xff] }
 0x651   : > { %1838 = vst.msk [vmem:[#allocation3 + $0x18] sm:$0xff] %vm1834_vm4, %v1829_v35  ;;  %3724 = vmatmul.msk.f32.gmra.mxu3 %vm849_vm0, %v1841_v36 }
 0x658   : > { %v1842_v38 = vld [vmem:[#allocation3 + $0x18] sm:$0xff] }
 0x659   : > { %3725 = vmatmul.msk.f32.gmra.mxu3 %vm849_vm0, %v1842_v38 }
 0x6a3   : > { %v1876_v39 = vpop.f32.mrf.mxu3 }
 0x6a4   : > { %v1888_v32 = vadd.f32 %v4206_v40, %v1876_v39 }
 0x6a6   : > { %v5022_v8 = vadd.f32 %v4006_v63, %v1888_v32 }
 0x6a8   : > { %v1902_v42 = vsel %vm849_vm0, %v5022_v8, 0.0 }
 0x6a9   : > { %1903 = vadd.xlane.f32.xlu1 %v1902_v42 }
 0x6cc   : > { %v1879_v17 = vpop.f32.mrf.mxu3 }
 0x6cd   : > { %v1889_v41 = vadd.f32 %v4207_v9, %v1879_v17  ;;  %v2104_v9 = vld [vmem:[%s5860_s15 + $0x78] sm:$0xff] }
 0x6ce   : > { %2109 = vmatpush.msrb.mxu1 %v2104_v9 }
 0x6cf   : > { %v5026_v44 = vadd.f32 %v4006_v63, %v1889_v41  ;;  %v2103_v41 = vld [vmem:[%s5860_s15 + $0x70] sm:$0xff] }
 0x6d0   : > { %2110 = vmatpush.msrb.mxu1 %v2103_v41 }
 0x6d1   : > { %v1905_v46 = vsel %vm849_vm0, %v5026_v44, 0.0 }
 0x6d2   : > { %1906 = vadd.xlane.f32.xlu2 %v1905_v46 }
 0x6d4   : > { %v1882_v23 = vpop.f32.mrf.mxu3 }
 0x6d5   : > { %v1890_v28 = vadd.f32 %v4208_v47, %v1882_v23  ;;  %v2102_v23 = vld [vmem:[%s5860_s15 + $0x68] sm:$0xff] }
 0x6d6   : > { %2111 = vmatpush.msrb.mxu1 %v2102_v23 }
 0x6d7   : > { %v5030_v48 = vadd.f32 %v4006_v63, %v1890_v28 }
 0x6d9   : > { %v1908_v49 = vsel %vm849_vm0, %v5030_v48, 0.0 }
 0x6da   : > { %1909 = vadd.xlane.f32.xlu0 %v1908_v49 }
 0x6dc   : > { %v1885_v2 = vpop.f32.mrf.mxu3 }
 0x6dd   : > { %v1891_v50 = vadd.f32 %v4209_v34, %v1885_v2 }
 0x6df   : > { %v5034_v12 = vadd.f32 %v4006_v63, %v1891_v50 }
 0x6e1   : > { %v1911_v56 = vsel %vm849_vm0, %v5034_v12, 0.0 }
 0x6e2   : > { %1912 = vadd.xlane.f32.xlu1 %v1911_v56 }
 0x71c   : > { %v1904_v43 = vpop.xlane.xlu1 %1903 }
 0x71d   : > { %v1914_v16 = vmul.f32 %v1904_v43, %v4592_v62 }
 0x71f   : > { %v1918_v57 = vsub.f32 %v5022_v8, %v1914_v16 }
 0x721   : > { %v1922_v52 = vmul.f32 %v1918_v57, %v1918_v57 }
 0x723   : > { %v1926_v58 = vsel %vm849_vm0, %v1922_v52, 0.0 }
 0x724   : > { %1927 = vadd.xlane.f32.xlu2 %v1926_v58 }
 0x745   : > { %v1907_v59 = vpop.xlane.xlu2 %1906 }
 0x746   : > { %v1915_v51 = vmul.f32 %v1907_v59, %v4592_v62 }
 0x748   : > { %v5043_v60 = vsub.f32 %v5026_v44, %v1915_v51 }
 0x74a   : > { %v1923_v61 = vmul.f32 %v5043_v60, %v5043_v60 }
 0x74c   : > { %v1929_v53 = vsel %vm849_vm0, %v1923_v61, 0.0 }
 0x74d   : > { %v1910_v4 = vpop.xlane.xlu0 %1909  ;;  %1930 = vadd.xlane.f32.xlu0 %v1929_v53 }
 0x74e   : > { %v1916_v45 = vmul.f32 %v1910_v4, %v4592_v62 }
 0x750   : > { %v5050_v10 = vsub.f32 %v5030_v48, %v1916_v45 }
 0x752   : > { %v1924_v11 = vmul.f32 %v5050_v10, %v5050_v10 }
 0x754   : > { %v1932_v13 = vsel %vm849_vm0, %v1924_v11, 0.0 }
 0x755   : > { %1933 = vadd.xlane.f32.xlu1 %v1932_v13  ;;  %v1913_v1 = vpop.xlane.xlu1 %1912 }
 0x756   : > { %v1917_v14 = vmul.f32 %v1913_v1, %v4592_v62 }
 0x758   : > { %v5057_v15 = vsub.f32 %v5034_v12, %v1917_v14 }
 0x75a   : > { %v1925_v54 = vmul.f32 %v5057_v15, %v5057_v15 }
 0x75c   : > { %v1935_v55 = vsel %vm849_vm0, %v1925_v54, 0.0 }
 0x75d   : > { %1936 = vadd.xlane.f32.xlu2 %v1935_v55 }
 0x797   : > { %v1928_v37 = vpop.xlane.xlu2 %1927 }
 0x798   : > { %v1938_v20 = vmul.f32 %v1928_v37, %v4592_v62 }
 0x79a   : > { %v1942_v21 = vadd.f32 1e-06, %v1938_v20  ;;  %v2100_v20 = vld [vmem:[%s5860_s15 + $0x58] sm:$0xff] }
 0x79c   : > { %4098 = vrsqrt.f32 %v1942_v21  ;;  %vm1952_vm6 = vweird.f32 %v1942_v21 }
 0x7a2   : > { %v4099_v24 = vpop.eup %4098 }
 0x7a3   : > { %v1947_v25 = vmul.f32 %v4099_v24, %v1942_v21  ;;  %vm1953_vm5 = vweird.f32 %v4099_v24  ;;  %v2099_v21 = vld [vmem:[%s5860_s15 + $0x50] sm:$0xff] }
 0x7a4   : > { %vm1954_vm7 = vmor %vm1952_vm6, %vm1953_vm5 }
 0x7a5   : > { %v1948_v22 = vmul.f32 %v4099_v24, %v1947_v25  ;;  %v2096_v25 = vld [vmem:[%s5860_s15 + $0x38] sm:$0xff] }
 0x7a7   : > { %v1949_v19 = vmul.f32 0.5, %v1948_v22  ;;  %v2095_v22 = vld [vmem:[%s5860_s15 + $0x30] sm:$0xff] }
 0x7a9   : > { %v1950_v26 = vsub.f32 1.5, %v1949_v19  ;;  %v2094_v19 = vld [vmem:[%s5860_s15 + $0x28] sm:$0xff] }
 0x7ab   : > { %v1951_v27 = vmul.f32 %v4099_v24, %v1950_v26  ;;  %v2093_v26 = vld [vmem:[%s5860_s15 + $0x20] sm:$0xff] }
 0x7ad   : > { %v1955_v30 = vsel %vm1954_vm7, %v4099_v24, %v1951_v27  ;;  %v2097_v24 = vld [vmem:[%s5860_s15 + $0x40] sm:$0xff]  ;;  %v2092_v27 = vld [vmem:[%s5860_s15 + $0x18] sm:$0xff] }
 0x7ae   : > { %v1986_v6 = vmul.f32 %v1955_v30, %v1918_v57  ;;  %v2090_v30 = vld [vmem:[%s5860_s15 + $0x8] sm:$0xff] }
 0x7b0   : > { %v1993_v33 = vmul.f32 %v5078_v29, %v1986_v6  ;;  %v2089_v6 = vld [vmem:[%s5860_s15] sm:$0xff] }
 0x7b2   : > { %v2000_v35 = vadd.f32 %v4008_v31, %v1993_v33 }
 0x7b4   : > { %3726 = vmatmul.msk.f32.vlgmr.msrb.gmra.mxu0 %vm849_vm0, %v2000_v35 }
 0x7c0   : > { %v1931_v36 = vpop.xlane.xlu0 %1930 }
 0x7c1   : > { %v1939_v38 = vmul.f32 %v1931_v36, %v4592_v62 }
 0x7c3   : > { %v1943_v63 = vadd.f32 1e-06, %v1939_v38 }
 0x7c5   : > { %4100 = vrsqrt.f32 %v1943_v63  ;;  %vm1962_vm9 = vweird.f32 %v1943_v63 }
 0x7c8   : > { %v1934_v39 = vpop.xlane.xlu1 %1933 }
 0x7c9   : > { %v1940_v40 = vmul.f32 %v1934_v39, %v4592_v62 }
 0x7cb   : > { %v4101_v32 = vpop.eup %4100  ;;  %v1944_v42 = vadd.f32 1e-06, %v1940_v40 }
 0x7cc   : > { %v1957_v17 = vmul.f32 %v4101_v32, %v1943_v63  ;;  %vm1963_vm8 = vweird.f32 %v4101_v32 }
 0x7cd   : > { %4102 = vrsqrt.f32 %v1944_v42  ;;  %vm1964_vm10 = vmor %vm1962_vm9, %vm1963_vm8  ;;  %vm1972_vm12 = vweird.f32 %v1944_v42 }
 0x7ce   : > { %v1958_v46 = vmul.f32 %v4101_v32, %v1957_v17 }
 0x7d0   : > { %v1959_v47 = vmul.f32 0.5, %v1958_v46  ;;  %v1937_v28 = vpop.xlane.xlu2 %1936 }
 0x7d1   : > { %v1941_v49 = vmul.f32 %v1937_v28, %v4592_v62 }
 0x7d2   : > { %v1960_v2 = vsub.f32 1.5, %v1959_v47 }
 0x7d3   : > { %v4103_v34 = vpop.eup %4102  ;;  %v1945_v50 = vadd.f32 1e-06, %v1941_v49 }
 0x7d4   : > { %v1961_v56 = vmul.f32 %v4101_v32, %v1960_v2  ;;  %v1967_v43 = vmul.f32 %v4103_v34, %v1944_v42  ;;  %vm1973_vm11 = vweird.f32 %v4103_v34 }
 0x7d5   : > { %4104 = vrsqrt.f32 %v1945_v50  ;;  %vm1974_vm13 = vmor %vm1972_vm12, %vm1973_vm11  ;;  %vm1982_vm1 = vweird.f32 %v1945_v50 }
 0x7d6   : > { %v1965_v16 = vsel %vm1964_vm10, %v4101_v32, %v1961_v56  ;;  %v1968_v57 = vmul.f32 %v4103_v34, %v1967_v43 }
 0x7d7   : > { %v1987_v52 = vmul.f32 %v1965_v16, %v5043_v60 }
 0x7d8   : > { %v1969_v58 = vmul.f32 0.5, %v1968_v57 }
 0x7d9   : > { %v1994_v59 = vmul.f32 %v5078_v29, %v1987_v52 }
 0x7da   : > { %v1970_v51 = vsub.f32 1.5, %v1969_v58 }
 0x7db   : > { %v4105_v61 = vpop.eup %4104  ;;  %v2001_v53 = vadd.f32 %v4008_v31, %v1994_v59 }
 0x7dc   : > { %v1971_v4 = vmul.f32 %v4103_v34, %v1970_v51  ;;  %v1977_v45 = vmul.f32 %v4105_v61, %v1945_v50  ;;  %vm1983_vm14 = vweird.f32 %v4105_v61 }
 0x7dd   : > { %3727 = vmatmul.msk.f32.gmra.mxu0 %vm849_vm0, %v2001_v53  ;;  %vm1984_vm5 = vmor %vm1982_vm1, %vm1983_vm14 }
 0x7de   : > { %v1975_v11 = vsel %vm1974_vm13, %v4103_v34, %v1971_v4  ;;  %v1978_v13 = vmul.f32 %v4105_v61, %v1977_v45 }
 0x7df   : > { %v1988_v1 = vmul.f32 %v1975_v11, %v5050_v10  ;;  %v2101_v10 = vld [vmem:[%s5860_s15 + $0x60] sm:$0xff] }
 0x7e0   : > { %v1979_v14 = vmul.f32 0.5, %v1978_v13  ;;  %2112 = vmatpush.msrb.mxu1 %v2101_v10  ;;  %v4010_v10 = vld [vmem:[%s5861_s16] ss:$0 sm:$0xff] }
 0x7e1   : > { %v1995_v60 = vmul.f32 %v5078_v29, %v1988_v1 }
 0x7e2   : > { %v1980_v54 = vsub.f32 1.5, %v1979_v14  ;;  %2113 = vmatpush.msrb.mxu1 %v2100_v20 }
 0x7e3   : > { %v2002_v55 = vadd.f32 %v4008_v31, %v1995_v60 }
 0x7e4   : > { %v1981_v3 = vmul.f32 %v4105_v61, %v1980_v54  ;;  %2114 = vmatpush.msrb.mxu1 %v2099_v21 }
 0x7e5   : > { %3728 = vmatmul.msk.f32.gmra.mxu0 %vm849_vm0, %v2002_v55 }
 0x7e6   : > { %v1985_v7 = vsel %vm1984_vm5, %v4105_v61, %v1981_v3 }
 0x7e7   : > { %v1989_v0 = vmul.f32 %v1985_v7, %v5057_v15  ;;  %v2098_v15 = vld [vmem:[%s5860_s15 + $0x48] sm:$0xff] }
 0x7e8   : > { %2115 = vmatpush.msrb.mxu1 %v2098_v15 }
 0x7e9   : > { %v1996_v18 = vmul.f32 %v5078_v29, %v1989_v0  ;;  %v2091_v29 = vld [vmem:[%s5860_s15 + $0x10] sm:$0xff] }
 0x7ea   : > { %2116 = vmatpush.msrb.mxu1 %v2097_v24 }
 0x7eb   : > { %v2003_v37 = vadd.f32 %v4008_v31, %v1996_v18  ;;  %v4009_v31 = vld [vmem:[%s5859_s14] ss:$0 sm:$0xff] }
 0x7ec   : > { %2117 = vmatpush.msrb.mxu1 %v2096_v25 }
 0x7ed   : > { %3729 = vmatmul.msk.f32.gmra.mxu0 %vm849_vm0, %v2003_v37 }
 0x7ee   : > { %2118 = vmatpush.msrb.mxu1 %v2095_v22 }
 0x7f0   : > { %2119 = vmatpush.msrb.mxu1 %v2094_v19 }
 0x7f2   : > { %2120 = vmatpush.msrb.mxu1 %v2093_v26 }
 0x7f4   : > { %2121 = vmatpush.msrb.mxu1 %v2092_v27 }
 0x7f6   : > { %2122 = vmatpush.msrb.mxu1 %v2091_v29 }
 0x7f8   : > { %2123 = vmatpush.msrb.mxu1 %v2090_v30 }
 0x7fa   : > { %2124 = vmatpush.msrb.mxu1 %v2089_v6 }
 0x831   : > { %v2041_v33 = vpop.f32.mrf.mxu0 }
 0x832   : > { %v2042_v35 = vadd.f32 %v4009_v31, %v2041_v33 }
 0x834   : > { %v2053_v36 = vmul.f32 %v2042_v35, %v2042_v35 }
 0x836   : > { %v2057_v38 = vmul.f32 %v2053_v36, %v2042_v35 }
 0x838   : > { %v2061_v63 = vmul.f32 0.044715, %v2057_v38 }
 0x83a   : > { %v2065_v39 = vadd.f32 %v2061_v63, %v2042_v35 }
 0x83c   : > { %v2069_v40 = vmul.f32 0.7978846, %v2065_v39  ;;  %v3734_v39 = vld [vmem:[%s5938_s28 + $0x30] sm:$0xff] }
 0x83e   : > { %4106 = vtanh.f32 %v2069_v40 }
 0x844   : > { %v4107_v32 = vpop.eup %4106 }
 0x845   : > { %v2077_v42 = vadd.f32 1.0, %v4107_v32  ;;  %v3733_v32 = vld [vmem:[%s5938_s28 + $0x28] sm:$0xff] }
 0x847   : > { %v2081_v17 = vmul.f32 0.5, %v2077_v42  ;;  %v3732_v42 = vld [vmem:[%s5938_s28 + $0x20] sm:$0xff] }
 0x849   : > { %v2085_v9 = vmul.f32 %v2081_v17, %v2042_v35 }
 0x84b   : > { %2125 = vmatmul.f32.vlgmr.msrb.gmra.mxu1 %v2085_v9 }
 0x85a   : > { %v2044_v41 = vpop.f32.mrf.mxu0 }
 0x85b   : > { %v2045_v46 = vadd.f32 %v4009_v31, %v2044_v41 }
 0x85d   : > { %v2054_v23 = vmul.f32 %v2045_v46, %v2045_v46 }
 0x85f   : > { %v2058_v47 = vmul.f32 %v2054_v23, %v2045_v46 }
 0x861   : > { %v2062_v28 = vmul.f32 0.044715, %v2058_v47 }
 0x862   : > { %v2047_v49 = vpop.f32.mrf.mxu0 }
 0x863   : > { %v2048_v2 = vadd.f32 %v4009_v31, %v2047_v49  ;;  %v2066_v34 = vadd.f32 %v2062_v28, %v2045_v46 }
 0x865   : > { %v2055_v50 = vmul.f32 %v2048_v2, %v2048_v2  ;;  %v2070_v56 = vmul.f32 0.7978846, %v2066_v34 }
 0x867   : > { %v2059_v43 = vmul.f32 %v2055_v50, %v2048_v2  ;;  %4108 = vtanh.f32 %v2070_v56 }
 0x869   : > { %v2063_v16 = vmul.f32 0.044715, %v2059_v43 }
 0x86a   : > { %v2050_v57 = vpop.f32.mrf.mxu0 }
 0x86b   : > { %v2051_v52 = vadd.f32 %v4009_v31, %v2050_v57  ;;  %v2067_v58 = vadd.f32 %v2063_v16, %v2048_v2 }
 0x86d   : > { %v4109_v59 = vpop.eup %4108  ;;  %v2056_v51 = vmul.f32 %v2051_v52, %v2051_v52  ;;  %v2071_v61 = vmul.f32 0.7978846, %v2067_v58 }
 0x86e   : > { %v2078_v53 = vadd.f32 1.0, %v4109_v59 }
 0x86f   : > { %v2060_v4 = vmul.f32 %v2056_v51, %v2051_v52  ;;  %4110 = vtanh.f32 %v2071_v61 }
 0x870   : > { %v2082_v45 = vmul.f32 0.5, %v2078_v53 }
 0x871   : > { %v2064_v11 = vmul.f32 0.044715, %v2060_v4 }
 0x872   : > { %v2086_v13 = vmul.f32 %v2082_v45, %v2045_v46 }
 0x873   : > { %v2068_v1 = vadd.f32 %v2064_v11, %v2051_v52 }
 0x874   : > { %2128 = vmatmul.f32.gmra.mxu1 %v2086_v13 }
 0x875   : > { %v4111_v14 = vpop.eup %4110  ;;  %v2072_v60 = vmul.f32 0.7978846, %v2068_v1  ;;  %v5219_v1 = vld [vmem:[%s5940_s4 + $0x1] ss:$0 sm:$0xff] }
 0x876   : > { %v2079_v54 = vadd.f32 1.0, %v4111_v14 }
 0x877   : > { %4112 = vtanh.f32 %v2072_v60 }
 0x878   : > { %v2083_v55 = vmul.f32 0.5, %v2079_v54  ;;  %v5224_v54 = vld [vmem:[%s5941_s27 + $0x1] ss:$0 sm:$0xff] }
 0x87a   : > { %v2087_v3 = vmul.f32 %v2083_v55, %v2048_v2 }
 0x87c   : > { %2131 = vmatmul.f32.gmra.mxu1 %v2087_v3 }
 0x87d   : > { %v4113_v7 = vpop.eup %4112 }
 0x87e   : > { %v2080_v0 = vadd.f32 1.0, %v4113_v7 }
 0x880   : > { %v2084_v18 = vmul.f32 0.5, %v2080_v0 }
 0x882   : > { %v2088_v37 = vmul.f32 %v2084_v18, %v2051_v52  ;;  %v5211_v52 = vpack.i.bf16 %v3732_v42, %v3733_v32 }
 0x884   : > { %2134 = vmatmul.f32.gmra.mxu1 %v2088_v37 }
 0x8c8   : > { %v2126_v20 = vpop.f32.mrf.mxu1 }
 0x8c9   : > { %v2127_v21 = vadd.f32 %v4010_v10, %v2126_v20 }
 0x8cb   : > { %v5152_v15 = vadd.f32 %v2127_v21, %v5022_v8 }
 0x8cd   : > { %v2146_v24 = vsel %vm849_vm0, %v5152_v15, 0.0 }
 0x8ce   : > { %2147 = vadd.xlane.f32.xlu0 %v2146_v24 }
 0x8f1   : > { %v2129_v25 = vpop.f32.mrf.mxu1 }
 0x8f2   : > { %v2130_v22 = vadd.f32 %v4010_v10, %v2129_v25 }
 0x8f4   : > { %v5157_v19 = vadd.f32 %v2130_v22, %v5026_v44 }
 0x8f6   : > { %v2149_v26 = vsel %vm849_vm0, %v5157_v19, 0.0 }
 0x8f7   : > { %2150 = vadd.xlane.f32.xlu1 %v2149_v26 }
 0x8f9   : > { %v2132_v27 = vpop.f32.mrf.mxu1 }
 0x8fa   : > { %v2133_v29 = vadd.f32 %v4010_v10, %v2132_v27 }
 0x8fc   : > { %v5162_v30 = vadd.f32 %v2133_v29, %v5030_v48 }
 0x8fe   : > { %v2152_v8 = vsel %vm849_vm0, %v5162_v30, 0.0 }
 0x8ff   : > { %2153 = vadd.xlane.f32.xlu2 %v2152_v8 }
 0x901   : > { %v2135_v6 = vpop.f32.mrf.mxu1 }
 0x902   : > { %v2136_v31 = vadd.f32 %v4010_v10, %v2135_v6 }
 0x904   : > { %v5167_v33 = vadd.f32 %v2136_v31, %v5034_v12  ;;  %v3735_v12 = vld [vmem:[%s5938_s28 + $0x38] sm:$0xff] }
 0x905   : > { %v5180_v40 = vpack.i.bf16 %v3734_v39, %v3735_v12  ;;  %2282 = vmatpush.msra.mxu2 %v3735_v12 }
 0x906   : > { %v2155_v44 = vsel %vm849_vm0, %v5167_v33, 0.0 }
 0x907   : > { %2156 = vadd.xlane.f32.xlu0 %v2155_v44  ;;  %2283 = vmatpush.msra.mxu2 %v3734_v39 }
 0x909   : > { %2284 = vmatpush.msra.mxu2 %v3733_v32 }
 0x90b   : > { %2285 = vmatpush.msra.mxu2 %v3732_v42 }
 0x941   : > { %v2148_v35 = vpop.xlane.xlu0 %2147 }
 0x942   : > { %v2158_v36 = vmul.f32 %v2148_v35, %v4592_v62 }
 0x944   : > { %v2162_v38 = vsub.f32 %v5152_v15, %v2158_v36 }
 0x946   : > { %v2166_v48 = vmul.f32 %v2162_v38, %v2162_v38 }
 0x948   : > { %v2170_v63 = vsel %vm849_vm0, %v2166_v48, 0.0 }
 0x949   : > { %2171 = vadd.xlane.f32.xlu1 %v2170_v63 }
 0x962   : > { %3953 = vrot.lane.b32.xlu1 %v5180_v40, %s5949_s0 }
 0x96a   : > { %v2151_v17 = vpop.xlane.xlu1 %2150 }
 0x96b   : > { %v2159_v9 = vmul.f32 %v2151_v17, %v4592_v62  ;;  %v5240_v17 = vld [vmem:[%s5939_s26 + $0x1] ss:$0 sm:$0xff] }
 0x96d   : > { %v5192_v41 = vsub.f32 %v5157_v19, %v2159_v9 }
 0x96f   : > { %v2167_v46 = vmul.f32 %v5192_v41, %v5192_v41 }
 0x971   : > { %v2173_v23 = vsel %vm849_vm0, %v2167_v46, 0.0 }
 0x972   : > { %2174 = vadd.xlane.f32.xlu2 %v2173_v23  ;;  %v2154_v47 = vpop.xlane.xlu2 %2153 }
 0x973   : > { %v2160_v28 = vmul.f32 %v2154_v47, %v4592_v62 }
 0x975   : > { %v5199_v49 = vsub.f32 %v5162_v30, %v2160_v28 }
 0x977   : > { %v2168_v2 = vmul.f32 %v5199_v49, %v5199_v49 }
 0x979   : > { %v2176_v34 = vsel %vm849_vm0, %v2168_v2, 0.0 }
 0x97a   : > { %v2157_v50 = vpop.xlane.xlu0 %2156  ;;  %2177 = vadd.xlane.f32.xlu0 %v2176_v34 }
 0x97b   : > { %v2161_v56 = vmul.f32 %v2157_v50, %v4592_v62 }
 0x97d   : > { %v5206_v43 = vsub.f32 %v5167_v33, %v2161_v56 }
 0x97f   : > { %v2169_v16 = vmul.f32 %v5206_v43, %v5206_v43 }
 0x981   : > { %v2179_v57 = vsel %vm849_vm0, %v2169_v16, 0.0 }
 0x982   : > { %2180 = vadd.xlane.f32.xlu2 %v2179_v57 }
 0x98e   : > { %3958 = vrot.lane.b32.xlu0 %v5211_v52, %s5949_s0 }
 0x99a   : > { %2315 = vrot.lane.b32.xlu2 %v5240_v17, %s5949_s0  ;;  %s5950_s0 = smov 120  }
 0x9bc   : > { %v2172_v58 = vpop.xlane.xlu1 %2171 }
 0x9bd   : > { %v2182_v59 = vmul.f32 %v2172_v58, %v4592_v62 }
 0x9bf   : > { %v2186_v51 = vadd.f32 1e-06, %v2182_v59 }
 0x9c1   : > { %4114 = vrsqrt.f32 %v2186_v51  ;;  %vm2196_vm7 = vweird.f32 %v2186_v51 }
 0x9c7   : > { %v4115_v61 = vpop.eup %4114 }
 0x9c8   : > { %v2191_v53 = vmul.f32 %v4115_v61, %v2186_v51  ;;  %vm2197_vm6 = vweird.f32 %v4115_v61 }
 0x9c9   : > { %vm2198_vm8 = vmor %vm2196_vm7, %vm2197_vm6 }
 0x9ca   : > { %v2192_v4 = vmul.f32 %v4115_v61, %v2191_v53 }
 0x9cc   : > { %v2193_v45 = vmul.f32 0.5, %v2192_v4 }
 0x9ce   : > { %v2194_v11 = vsub.f32 1.5, %v2193_v45 }
 0x9d0   : > { %v2195_v13 = vmul.f32 %v4115_v61, %v2194_v11 }
 0x9d2   : > { %v2199_v14 = vsel %vm2198_vm8, %v4115_v61, %v2195_v13 }
 0x9d3   : > { %v2230_v60 = vmul.f32 %v2199_v14, %v2162_v38 }
 0x9d4   : > { %v3954_v7 = vpop.permute.xlu1 %3953 }
 0x9d5   : > { %v2237_v55 = vmul.f32 %v5219_v1, %v2230_v60  ;;  %v3955_v0 = vunpack.i.l.bf16 %v3954_v7  ;;  %v3956_v18 = vunpack.i.h.bf16 %v3954_v7 }
 0x9d7   : > { %v5228_v3 = vadd.f32 %v5224_v54, %v2237_v55  ;;  %2330 = vmatpush.msra.mxu3 %v3955_v0 }
 0x9d9   : > { %3737 = vmatmul.msk.f32.vlgmr.msra.gmra.mxu2 %vm849_vm0, %v5228_v3  ;;  %2331 = vmatpush.msra.mxu3 %v3956_v18 }
 0x9e5   : > { %v2175_v37 = vpop.xlane.xlu2 %2174 }
 0x9e6   : > { %v2183_v10 = vmul.f32 %v2175_v37, %v4592_v62 }
 0x9e8   : > { %v2187_v20 = vadd.f32 1e-06, %v2183_v10 }
 0x9ea   : > { %4116 = vrsqrt.f32 %v2187_v20  ;;  %vm2206_vm10 = vweird.f32 %v2187_v20 }
 0x9ed   : > { %v2178_v21 = vpop.xlane.xlu0 %2177 }
 0x9ee   : > { %v2184_v24 = vmul.f32 %v2178_v21, %v4592_v62 }
 0x9f0   : > { %v4117_v25 = vpop.eup %4116  ;;  %v2188_v22 = vadd.f32 1e-06, %v2184_v24 }
 0x9f1   : > { %v2201_v26 = vmul.f32 %v4117_v25, %v2187_v20  ;;  %vm2207_vm9 = vweird.f32 %v4117_v25 }
 0x9f2   : > { %4118 = vrsqrt.f32 %v2188_v22  ;;  %vm2208_vm11 = vmor %vm2206_vm10, %vm2207_vm9  ;;  %vm2216_vm13 = vweird.f32 %v2188_v22 }
 0x9f3   : > { %v2202_v27 = vmul.f32 %v4117_v25, %v2201_v26 }
 0x9f5   : > { %v2203_v29 = vmul.f32 0.5, %v2202_v27  ;;  %v2181_v8 = vpop.xlane.xlu2 %2180 }
 0x9f6   : > { %v2185_v6 = vmul.f32 %v2181_v8, %v4592_v62 }
 0x9f7   : > { %v2204_v31 = vsub.f32 1.5, %v2203_v29 }
 0x9f8   : > { %v4119_v44 = vpop.eup %4118  ;;  %v2189_v35 = vadd.f32 1e-06, %v2185_v6 }
 0x9f9   : > { %v2205_v36 = vmul.f32 %v4117_v25, %v2204_v31  ;;  %v2211_v38 = vmul.f32 %v4119_v44, %v2188_v22  ;;  %vm2217_vm12 = vweird.f32 %v4119_v44 }
 0x9fa   : > { %4120 = vrsqrt.f32 %v2189_v35  ;;  %vm2218_vm14 = vmor %vm2216_vm13, %vm2217_vm12  ;;  %vm2226_vm5 = vweird.f32 %v2189_v35 }
 0x9fb   : > { %v2209_v48 = vsel %vm2208_vm11, %v4117_v25, %v2205_v36  ;;  %v2212_v63 = vmul.f32 %v4119_v44, %v2211_v38 }
 0x9fc   : > { %v2231_v39 = vmul.f32 %v2209_v48, %v5192_v41 }
 0x9fd   : > { %v2213_v12 = vmul.f32 0.5, %v2212_v63 }
 0x9fe   : > { %v2238_v32 = vmul.f32 %v5219_v1, %v2231_v39 }
 0x9ff   : > { %v2214_v42 = vsub.f32 1.5, %v2213_v12 }
 0xa00   : > { %v4121_v9 = vpop.eup %4120  ;;  %v3959_v46 = vpop.permute.xlu0 %3958  ;;  %v5243_v23 = vadd.f32 %v5224_v54, %v2238_v32 }
 0xa01   : > { %v2215_v47 = vmul.f32 %v4119_v44, %v2214_v42  ;;  %v2221_v28 = vmul.f32 %v4121_v9, %v2189_v35  ;;  %v3960_v41 = vunpack.i.l.bf16 %v3959_v46  ;;  %v3961_v50 = vunpack.i.h.bf16 %v3959_v46 }
 0xa02   : > { %3738 = vmatmul.msk.f32.gmra.mxu2 %vm849_vm0, %v5243_v23  ;;  %vm2227_vm1 = vweird.f32 %v4121_v9 }
 0xa03   : > { %v2219_v2 = vsel %vm2218_vm14, %v4119_v44, %v2215_v47  ;;  %v2222_v34 = vmul.f32 %v4121_v9, %v2221_v28  ;;  %2332 = vmatpush.msra.mxu3 %v3960_v41  ;;  %vm2228_vm6 = vmor %vm2226_vm5, %vm2227_vm1 }
 0xa04   : > { %v2232_v56 = vmul.f32 %v2219_v2, %v5199_v49 }
 0xa05   : > { %v2223_v16 = vmul.f32 0.5, %v2222_v34  ;;  %2333 = vmatpush.msra.mxu3 %v3961_v50 }
 0xa06   : > { %v2239_v57 = vmul.f32 %v5219_v1, %v2232_v56  ;;  %3741 = vmatmul.msk.f32.vlgmr.msra.gmra.mxu3 %vm849_vm0, %v5228_v3 }
 0xa07   : > { %v2224_v58 = vsub.f32 1.5, %v2223_v16 }
 0xa08   : > { %v5254_v59 = vadd.f32 %v5224_v54, %v2239_v57 }
 0xa09   : > { %v2225_v51 = vmul.f32 %v4121_v9, %v2224_v58 }
 0xa0a   : > { %3739 = vmatmul.msk.f32.gmra.mxu2 %vm849_vm0, %v5254_v59 }
 0xa0b   : > { %v2229_v61 = vsel %vm2228_vm6, %v4121_v9, %v2225_v51 }
 0xa0c   : > { %v2233_v49 = vmul.f32 %v2229_v61, %v5206_v43  ;;  %v2316_v43 = vpop.permute.xlu2 %2315 }
 0xa0e   : > { %v2240_v53 = vmul.f32 %v5219_v1, %v2233_v49  ;;  %3742 = vmatmul.msk.f32.gmra.mxu3 %vm849_vm0, %v5243_v23 }
 0xa10   : > { %v5263_v4 = vadd.f32 %v5224_v54, %v2240_v53 }
 0xa12   : > { %3740 = vmatmul.msk.f32.gmra.mxu2 %vm849_vm0, %v5263_v4 }
 0xa16   : > { %3743 = vmatmul.msk.f32.gmra.mxu3 %vm849_vm0, %v5254_v59 }
 0xa1e   : > { %3744 = vmatmul.msk.f32.gmra.mxu3 %vm849_vm0, %v5263_v4 }
 0xa5c   : > { %v2287_v45 = vpop.f32.mrf.mxu2 }
 0xa5d   : > { %v2288_v37 = vadd.f32 %v5240_v17, %v2287_v45 }
 0xa85   : > { %v2290_v11 = vpop.f32.mrf.mxu2 }
 0xa86   : > { %v2291_v20 = vadd.f32 %v5240_v17, %v2290_v11 }
 0xa89   : > { %v2335_v13 = vpop.f32.mrf.mxu3 }
 0xa8a   : > { %v2336_v1 = vadd.f32 %v2335_v13, %v2316_v43 }
 0xa8c   : > { %2549 = vrot.lane.b32.xlu2 %v2336_v1, %s5950_s0 }
 0xa8d   : > { %v2293_v14 = vpop.f32.mrf.mxu2 }
 0xa8e   : > { %v5273_v54 = vadd.f32 %v5240_v17, %v2293_v14 }
 0xa91   : > { %v2338_v60 = vpop.f32.mrf.mxu3 }
 0xa92   : > { %v2339_v10 = vadd.f32 %v2338_v60, %v2316_v43 }
 0xa94   : > { %2545 = vrot.lane.b32.xlu2 %v5273_v54, %s5950_s0 }
 0xa95   : > { %v2296_v21 = vpop.f32.mrf.mxu2 }
 0xa96   : > { %v5305_v24 = vadd.f32 %v5240_v17, %v2296_v21 }
 0xa99   : > { %v2341_v55 = vpop.f32.mrf.mxu3 }
 0xa9a   : > { %v2342_v7 = vadd.f32 %v2341_v55, %v2316_v43 }
 0xa9c   : > { %2553 = vrot.lane.b32.xlu1 %v2342_v7, %s5950_s0  ;;  %2743 = vrot.lane.b32.xlu2 %v2342_v7, %s5951_s6 }
 0xaa1   : > { %v2344_v0 = vpop.f32.mrf.mxu3 }
 0xaa2   : > { %v2345_v18 = vadd.f32 %v2344_v0, %v2316_v43 }
 0xaa4   : > { %2555 = vrot.lane.b32.xlu0 %v2345_v18, %s5950_s0  ;;  %3749 = vmatpush.xpose.msk.msra.mxu1 %vm1123_vm15, %v2345_v18 }
 0xaa5   : > { %2541 = vrot.lane.b32.xlu1 %v2288_v37, %s5950_s0  ;;  %2741 = vrot.lane.b32.xlu2 %v2339_v10, %s5951_s6 }
 0xaa8   : > { %3750 = vmatpush.xpose.msk.msra.mxu1 %vm1123_vm15, %v2342_v7 }
 0xaac   : > { %2551 = vrot.lane.b32.xlu0 %v2339_v10, %s5950_s0  ;;  %3751 = vmatpush.xpose.msk.msra.mxu1 %vm1123_vm15, %v2339_v10 }
 0xaad   : > { %2929 = vrot.lane.b32.xlu1 %v2342_v7, %s5952_s3  ;;  %2925 = vrot.lane.b32.xlu2 %v2336_v1, %s5952_s3 }
 0xab0   : > { %3752 = vmatpush.xpose.msk.msra.mxu1 %vm1123_vm15, %v2336_v1 }
 0xab3   : > { %3753 = vmatmul.msk.f32.vlgmr.msra.gmra.mxu1 %vm1123_vm15, %v2288_v37 }
 0xab4   : > { %2543 = vrot.lane.b32.xlu0 %v2291_v20, %s5950_s0 }
 0xab5   : > { %2745 = vrot.lane.b32.xlu1 %v2345_v18, %s5951_s6  ;;  %3963 = vrot.lane.b32.xlu2 %v5180_v40, %s5953_s24 }
 0xabb   : > { %3754 = vmatmul.msk.f32.gmra.mxu1 %vm1123_vm15, %v2291_v20 }
 0xabc   : > { %2739 = vrot.lane.b32.xlu0 %v2336_v1, %s5951_s6 }
 0xabd   : > { %2927 = vrot.lane.b32.xlu1 %v2339_v10, %s5952_s3  ;;  %2919 = vrot.lane.b32.xlu2 %v2291_v20, %s5952_s3 }
 0xac3   : > { %3755 = vmatmul.msk.f32.gmra.mxu1 %vm1123_vm15, %v5273_v54 }
 0xac4   : > { %2931 = vrot.lane.b32.xlu0 %v2345_v18, %s5952_s3 }
 0xac5   : > { %2731 = vrot.lane.b32.xlu1 %v2288_v37, %s5951_s6 }
 0xacb   : > { %3756 = vmatmul.msk.f32.gmra.mxu1 %vm1123_vm15, %v5305_v24 }
 0xacc   : > { %2547 = vrot.lane.b32.xlu0 %v5305_v24, %s5950_s0 }
 0xacd   : > { %3968 = vrot.lane.b32.xlu1 %v5211_v52, %s5953_s24 }
 0xad4   : > { %2917 = vrot.lane.b32.xlu0 %v2288_v37, %s5952_s3 }
 0xad5   : > { %2359 = vrot.lane.b32.xlu1 %v5240_v17, %s5953_s24 }
 0xadc   : > { %2733 = vrot.lane.b32.xlu0 %v2291_v20, %s5951_s6 }
 0xae4   : > { %2921 = vrot.lane.b32.xlu0 %v5273_v54, %s5952_s3 }
 0xae6   : > { %v2550_v40 = vpop.permute.xlu2 %2549 }
 0xaec   : > { %2923 = vrot.lane.b32.xlu0 %v5305_v24, %s5952_s3 }
 0xaee   : > { %v2546_v25 = vpop.permute.xlu2 %2545 }
 0xaf6   : > { %v2744_v22 = vpop.permute.xlu2 %2743 }
 0xaff   : > { %v2742_v26 = vpop.permute.xlu2 %2741 }
 0xb07   : > { %v2926_v27 = vpop.permute.xlu2 %2925 }
 0xb0e   : > { %v2554_v29 = vpop.permute.xlu1 %2553 }
 0xb0f   : > { %v3964_v52 = vpop.permute.xlu2 %3963 }
 0xb10   : > { %v3966_v8 = vunpack.i.h.bf16 %v3964_v52  ;;  %v3965_v6 = vunpack.i.l.bf16 %v3964_v52 }
 0xb12   : > { %2374 = vmatpush.msra.mxu0 %v3965_v6 }
 0xb14   : > { %2375 = vmatpush.msra.mxu0 %v3966_v8 }
 0xb16   : > { %v2556_v31 = vpop.permute.xlu0 %2555 }
 0xb17   : > { %v2542_v44 = vpop.permute.xlu1 %2541  ;;  %3761 = vmatpush.xpose.msk.msrb.mxu3 %vm1123_vm15, %v2556_v31  ;;  %v2920_v13 = vpop.permute.xlu2 %2919 }
 0xb1b   : > { %3762 = vmatpush.xpose.msk.msrb.mxu3 %vm1123_vm15, %v2554_v29 }
 0xb1e   : > { %v2552_v35 = vpop.permute.xlu0 %2551 }
 0xb1f   : > { %v2930_v36 = vpop.permute.xlu1 %2929  ;;  %3763 = vmatpush.xpose.msk.msrb.mxu3 %vm1123_vm15, %v2552_v35 }
 0xb23   : > { %3764 = vmatpush.xpose.msk.msrb.mxu3 %vm1123_vm15, %v2550_v40 }
 0xb26   : > { %v2544_v38 = vpop.permute.xlu0 %2543  ;;  %3765 = vmatmul.msk.f32.vlgmr.msrb.gmra.mxu3 %vm1123_vm15, %v2542_v44 }
 0xb27   : > { %v2746_v48 = vpop.permute.xlu1 %2745 }
 0xb28   : > { %3773 = vmatpush.xpose.msk.msrb.mxu1 %vm1123_vm15, %v2746_v48 }
 0xb2c   : > { %3774 = vmatpush.xpose.msk.msrb.mxu1 %vm1123_vm15, %v2744_v22 }
 0xb2e   : > { %v2740_v63 = vpop.permute.xlu0 %2739  ;;  %3766 = vmatmul.msk.f32.gmra.mxu3 %vm1123_vm15, %v2544_v38 }
 0xb2f   : > { %v2928_v39 = vpop.permute.xlu1 %2927 }
 0xb30   : > { %3775 = vmatpush.xpose.msk.msrb.mxu1 %vm1123_vm15, %v2742_v26  ;;  %v2432_v12 = vpop.f32.mrf.mxu1 }
 0xb31   : > { %v2444_v32 = vmul.f32 0.35355338, %v2432_v12 }
 0xb33   : > { %v5331_v42 = vadd.f32 %v2444_v32, %v4745_v5 }
 0xb34   : > { %3776 = vmatpush.xpose.msk.msrb.mxu1 %vm1123_vm15, %v2740_v63 }
 0xb35   : > { %v2452_v17 = vsel %vm849_vm0, %v5331_v42, -inf }
 0xb36   : > { %v2932_v9 = vpop.permute.xlu0 %2931  ;;  %3767 = vmatmul.msk.f32.gmra.mxu3 %vm1123_vm15, %v2546_v25  ;;  %2453 = vmax.xlane.f32.xlu1 %v2452_v17 }
 0xb37   : > { %v2732_v46 = vpop.permute.xlu1 %2731  ;;  %3785 = vmatpush.xpose.msk.msra.mxu3 %vm1123_vm15, %v2932_v9 }
 0xb38   : > { %3777 = vmatmul.msk.f32.vlgmr.msrb.gmra.mxu1 %vm1123_vm15, %v2732_v46  ;;  %v2435_v47 = vpop.f32.mrf.mxu1 }
 0xb39   : > { %v2445_v28 = vmul.f32 0.35355338, %v2435_v47 }
 0xb3b   : > { %3786 = vmatpush.xpose.msk.msra.mxu3 %vm1123_vm15, %v2930_v36  ;;  %v5341_v41 = vadd.f32 %v2445_v28, %v4745_v5 }
 0xb3d   : > { %v2455_v2 = vsel %vm849_vm0, %v5341_v41, -inf }
 0xb3e   : > { %v2548_v34 = vpop.permute.xlu0 %2547  ;;  %2456 = vmax.xlane.f32.xlu2 %v2455_v2 }
 0xb3f   : > { %v3969_v50 = vpop.permute.xlu1 %3968  ;;  %3768 = vmatmul.msk.f32.gmra.mxu3 %vm1123_vm15, %v2548_v34 }
 0xb40   : > { %v3971_v56 = vunpack.i.h.bf16 %v3969_v50  ;;  %v3970_v16 = vunpack.i.l.bf16 %v3969_v50  ;;  %3787 = vmatpush.xpose.msk.msra.mxu3 %vm1123_vm15, %v2928_v39  ;;  %v2438_v57 = vpop.f32.mrf.mxu1 }
 0xb41   : > { %v2446_v58 = vmul.f32 0.35355338, %v2438_v57 }
 0xb42   : > { %2376 = vmatpush.msra.mxu0 %v3970_v16 }
 0xb43   : > { %v5348_v51 = vadd.f32 %v2446_v58, %v4745_v5 }
 0xb44   : > { %2377 = vmatpush.msra.mxu0 %v3971_v56  ;;  %3788 = vmatpush.xpose.msk.msra.mxu3 %vm1123_vm15, %v2926_v27 }
 0xb45   : > { %3745 = vmatmul.msk.f32.vlgmr.msra.gmra.mxu0 %vm849_vm0, %v5228_v3  ;;  %v2458_v61 = vsel %vm849_vm0, %v5348_v51, -inf }
 0xb46   : > { %v2918_v49 = vpop.permute.xlu0 %2917  ;;  %2459 = vmax.xlane.f32.xlu2 %v2458_v61 }
 0xb47   : > { %3789 = vmatmul.msk.f32.vlgmr.msra.gmra.mxu3 %vm1123_vm15, %v2918_v49  ;;  %v2360_v40 = vpop.permute.xlu1 %2359 }
 0xb48   : > { %v2441_v53 = vpop.f32.mrf.mxu1 }
 0xb49   : > { %v2447_v45 = vmul.f32 0.35355338, %v2441_v53 }
 0xb4b   : > { %v5357_v11 = vadd.f32 %v2447_v45, %v4745_v5 }
 0xb4d   : > { %3746 = vmatmul.msk.f32.gmra.mxu0 %vm849_vm0, %v5243_v23  ;;  %v2461_v43 = vsel %vm849_vm0, %v5357_v11, -inf }
 0xb4e   : > { %v2734_v3 = vpop.permute.xlu0 %2733  ;;  %2462 = vmax.xlane.f32.xlu2 %v2461_v43 }
 0xb4f   : > { %3778 = vmatmul.msk.f32.gmra.mxu1 %vm1123_vm15, %v2734_v3  ;;  %3790 = vmatmul.msk.f32.gmra.mxu3 %vm1123_vm15, %v2920_v13 }
 0xb55   : > { %3747 = vmatmul.msk.f32.gmra.mxu0 %vm849_vm0, %v5254_v59 }
 0xb56   : > { %v2922_v1 = vpop.permute.xlu0 %2921 }
 0xb57   : > { %3791 = vmatmul.msk.f32.gmra.mxu3 %vm1123_vm15, %v2922_v1 }
 0xb5d   : > { %3748 = vmatmul.msk.f32.gmra.mxu0 %vm849_vm0, %v5263_v4 }
 0xb5e   : > { %v2924_v23 = vpop.permute.xlu0 %2923 }
 0xb5f   : > { %3792 = vmatmul.msk.f32.gmra.mxu3 %vm1123_vm15, %v2924_v23 }
 0xba9   : > { %v2590_v14 = vpop.f32.mrf.mxu3  ;;  %v2454_v27 = vpop.xlane.xlu1 %2453 }
 0xbaa   : > { %v2602_v60 = vmul.f32 0.35355338, %v2590_v14  ;;  %v2464_v29 = vsub.f32 %v5331_v42, %v2454_v27 }
 0xbac   : > { %v5372_v55 = vadd.f32 %v2602_v60, %v4745_v5  ;;  %v2468_v44 = vmul.f32 1.442695, %v2464_v29 }
 0xbae   : > { %v2610_v7 = vsel %vm849_vm0, %v5372_v55, -inf  ;;  %4122 = vpow2.f32 %v2468_v44 }
 0xbaf   : > { %2611 = vmax.xlane.f32.xlu0 %v2610_v7 }
 0xbb1   : > { %v2593_v0 = vpop.f32.mrf.mxu3  ;;  %v2457_v38 = vpop.xlane.xlu2 %2456 }
 0xbb2   : > { %v2603_v59 = vmul.f32 0.35355338, %v2593_v0  ;;  %v2465_v42 = vsub.f32 %v5341_v41, %v2457_v38 }
 0xbb4   : > { %v5377_v18 = vadd.f32 %v2603_v59, %v4745_v5  ;;  %v2470_v46 = vmul.f32 1.442695, %v2465_v42  ;;  %v5400_v47 = vpop.eup %4122 }
 0xbb5   : > { %v2780_v37 = vpop.f32.mrf.mxu1  ;;  %v2476_v28 = vsel %vm849_vm0, %v5400_v47, 0.0 }
 0xbb6   : > { %v2792_v10 = vmul.f32 0.35355338, %v2780_v37  ;;  %v2613_v4 = vsel %vm849_vm0, %v5377_v18, -inf  ;;  %4124 = vpow2.f32 %v2470_v46 }
 0xbb7   : > { %2614 = vmax.xlane.f32.xlu1 %v2613_v4 }
 0xbb8   : > { %v5382_v21 = vadd.f32 %v2792_v10, %v4745_v5 }
 0xbb9   : > { %v2596_v20 = vpop.f32.mrf.mxu3  ;;  %v2460_v61 = vpop.xlane.xlu2 %2459 }
 0xbba   : > { %v2800_v25 = vsel %vm849_vm0, %v5382_v21, -inf  ;;  %v2604_v16 = vmul.f32 0.35355338, %v2596_v20  ;;  %v2466_v49 = vsub.f32 %v5348_v51, %v2460_v61 }
 0xbbc   : > { %v5406_v41 = vpop.eup %4124  ;;  %v5415_v58 = vadd.f32 %v2604_v16, %v4745_v5  ;;  %v2472_v43 = vmul.f32 1.442695, %v2466_v49 }
 0xbbd   : > { %v2479_v57 = vsel %vm849_vm0, %v5406_v41, 0.0 }
 0xbbe   : > { %v2616_v45 = vsel %vm849_vm0, %v5415_v58, -inf  ;;  %4126 = vpow2.f32 %v2472_v43 }
 0xbbf   : > { %2801 = vmax.xlane.f32.xlu1 %v2800_v25 }
 0xbc1   : > { %v2463_v23 = vpop.xlane.xlu2 %2462 }
 0xbc2   : > { %v2379_v22 = vpop.f32.mrf.mxu0  ;;  %v2599_v26 = vpop.f32.mrf.mxu3  ;;  %v2467_v14 = vsub.f32 %v5357_v11, %v2463_v23 }
 0xbc3   : > { %v2380_v35 = vadd.f32 %v2379_v22, %v2360_v40  ;;  %v2605_v53 = vmul.f32 0.35355338, %v2599_v26 }
 0xbc4   : > { %v5425_v1 = vpop.eup %4126  ;;  %v2474_v60 = vmul.f32 1.442695, %v2467_v14 }
 0xbc5   : > { %v5421_v13 = vadd.f32 %v2605_v53, %v4745_v5  ;;  %v2482_v51 = vsel %vm849_vm0, %v5425_v1, 0.0 }
 0xbc6   : > { %4128 = vpow2.f32 %v2474_v60 }
 0xbc7   : > { %v2619_v3 = vsel %vm849_vm0, %v5421_v13, -inf }
 0xbca   : > { %v2382_v52 = vpop.f32.mrf.mxu0  ;;  %v2966_v8 = vpop.f32.mrf.mxu3 }
 0xbcb   : > { %v2383_v6 = vadd.f32 %v2382_v52, %v2360_v40  ;;  %v2978_v31 = vmul.f32 0.35355338, %v2966_v8 }
 0xbcc   : > { %v2783_v36 = vpop.f32.mrf.mxu1  ;;  %v5430_v7 = vpop.eup %4128 }
 0xbcd   : > { %v2793_v48 = vmul.f32 0.35355338, %v2783_v36  ;;  %v5388_v63 = vadd.f32 %v2978_v31, %v4745_v5  ;;  %v5390_v39 = vpack.i.bf16 %v2380_v35, %v2383_v6  ;;  %v2485_v0 = vsel %vm849_vm0, %v5430_v7, 0.0 }
 0xbcf   : > { %v2986_v12 = vsel %vm849_vm0, %v5388_v63, -inf  ;;  %v5395_v32 = vadd.f32 %v2793_v48, %v4745_v5 }
 0xbd0   : > { %2987 = vmax.xlane.f32.xlu0 %v2986_v12 }
 0xbd1   : > { %v2803_v17 = vsel %vm849_vm0, %v5395_v32, -inf }
 0xbd2   : > { %v2385_v9 = vpop.f32.mrf.mxu0  ;;  %2804 = vmax.xlane.f32.xlu2 %v2803_v17  ;;  %v2969_v10 = vpop.f32.mrf.mxu3 }
 0xbd3   : > { %v2386_v34 = vadd.f32 %v2385_v9, %v2360_v40  ;;  %v2979_v11 = vmul.f32 0.35355338, %v2969_v10 }
 0xbd5   : > { %v5440_v25 = vadd.f32 %v2979_v11, %v4745_v5 }
 0xbd7   : > { %v2989_v26 = vsel %vm849_vm0, %v5440_v25, -inf }
 0xbda   : > { %v2388_v2 = vpop.f32.mrf.mxu0  ;;  %2477 = vadd.xlane.f32.xlu2 %v2476_v28 }
 0xbdb   : > { %v2389_v50 = vadd.f32 %v2388_v2, %v2360_v40 }
 0xbdd   : > { %2520 = vmatpush.msrb.mxu2 %v2389_v50  ;;  %v5404_v56 = vpack.i.bf16 %v2386_v34, %v2389_v50 }
 0xbdf   : > { %2521 = vmatpush.msrb.mxu2 %v2386_v34  ;;  %3973 = vrot.lane.b32.xlu1 %v5404_v56, %s5950_s0 }
 0xbe1   : > { %2522 = vmatpush.msrb.mxu2 %v2383_v6 }
 0xbe2   : > { %2480 = vadd.xlane.f32.xlu2 %v2479_v57 }
 0xbe3   : > { %2523 = vmatpush.msrb.mxu2 %v2380_v35 }
 0xbe4   : > { %3978 = vrot.lane.b32.xlu0 %v5390_v39, %s5950_s0 }
 0xbea   : > { %2617 = vmax.xlane.f32.xlu2 %v2616_v45 }
 0xbf2   : > { %2620 = vmax.xlane.f32.xlu2 %v2619_v3 }
 0xbfa   : > { %2483 = vadd.xlane.f32.xlu2 %v2482_v51 }
 0xc0e   : > { %2486 = vadd.xlane.f32.xlu0 %v2485_v0 }
 0xc12   : > { %3983 = vrot.lane.b32.xlu2 %v5404_v56, %s5951_s6 }
 0xc1a   : > { %3988 = vrot.lane.b32.xlu2 %v5390_v39, %s5951_s6 }
 0xc22   : > { %v2612_v20 = vpop.xlane.xlu0 %2611 }
 0xc23   : > { %v2622_v22 = vsub.f32 %v5372_v55, %v2612_v20 }
 0xc25   : > { %v2626_v52 = vmul.f32 1.442695, %v2622_v22 }
 0xc2a   : > { %v2615_v59 = vpop.xlane.xlu1 %2614 }
 0xc2b   : > { %v2623_v31 = vsub.f32 %v5377_v18, %v2615_v59 }
 0xc2d   : > { %v2628_v44 = vmul.f32 1.442695, %v2623_v31 }
 0xc32   : > { %v2802_v37 = vpop.xlane.xlu1 %2801 }
 0xc33   : > { %v2812_v4 = vsub.f32 %v5382_v21, %v2802_v37 }
 0xc35   : > { %v2816_v40 = vmul.f32 1.442695, %v2812_v4 }
 0xc37   : > { %4130 = vpow2.f32 %v2816_v40 }
 0xc3d   : > { %v5446_v21 = vpop.eup %4130 }
 0xc3e   : > { %v2824_v55 = vsel %vm849_vm0, %v5446_v21, 0.0 }
 0xc43   : > { %v2988_v27 = vpop.xlane.xlu0 %2987  ;;  %2990 = vmax.xlane.f32.xlu2 %v2989_v26  ;;  %v5492_v26 = vpop.f32.mrf.mxu3 }
 0xc44   : > { %v2998_v29 = vsub.f32 %v5388_v63, %v2988_v27 }
 0xc45   : > { %v2805_v8 = vpop.xlane.xlu2 %2804 }
 0xc46   : > { %v3002_v6 = vmul.f32 1.442695, %v2998_v29  ;;  %v2813_v23 = vsub.f32 %v5395_v32, %v2805_v8 }
 0xc48   : > { %4132 = vpow2.f32 %v3002_v6 }
 0xc49   : > { %4134 = vpow2.f32 %v2626_v52 }
 0xc4b   : > { %2825 = vadd.xlane.f32.xlu2 %v2824_v55  ;;  %v2975_v27 = vpop.f32.mrf.mxu3 }
 0xc4c   : > { %v2981_v29 = vmul.f32 0.35355338, %v2975_v27 }
 0xc4d   : > { %v2478_v35 = vpop.xlane.xlu2 %2477 }
 0xc4e   : > { %v5451_v36 = vpop.eup %4132  ;;  %4136 = vrcp.f32 %v2478_v35  ;;  %v5495_v52 = vadd.f32 %v2981_v29, %v4745_v5 }
 0xc4f   : > { %v5453_v38 = vpop.eup %4134  ;;  %v3010_v48 = vsel %vm849_vm0, %v5451_v36, 0.0  ;;  %4138 = vpow2.f32 %v2628_v44 }
 0xc50   : > { %3011 = vadd.xlane.f32.xlu0 %v3010_v48  ;;  %v2634_v18 = vsel %vm849_vm0, %v5453_v38, 0.0  ;;  %v2995_v8 = vsel %vm849_vm0, %v5495_v52, -inf }
 0xc51   : > { %v3974_v63 = vpop.permute.xlu1 %3973 }
 0xc52   : > { %v3975_v12 = vunpack.i.l.bf16 %v3974_v63  ;;  %v3976_v17 = vunpack.i.h.bf16 %v3974_v63 }
 0xc53   : > { %2635 = vadd.xlane.f32.xlu2 %v2634_v18 }
 0xc54   : > { %v4137_v42 = vpop.eup %4136  ;;  %2694 = vmatpush.msrb.mxu0 %v3975_v12 }
 0xc55   : > { %v2492_v9 = vmul.f32 %v4137_v42, %v5400_v47  ;;  %v2481_v46 = vpop.xlane.xlu2 %2480  ;;  %v5460_v2 = vpop.eup %4138 }
 0xc56   : > { %2695 = vmatpush.msrb.mxu0 %v3976_v17  ;;  %4140 = vrcp.f32 %v2481_v46  ;;  %v3979_v28 = vpop.permute.xlu0 %3978  ;;  %v2637_v16 = vsel %vm849_vm0, %v5460_v2, 0.0 }
 0xc57   : > { %v3980_v34 = vunpack.i.l.bf16 %v3979_v28  ;;  %3757 = vmatmul.msk.f32.vlgmr.msrb.gmra.mxu2 %vm849_vm0, %v2492_v9  ;;  %v3981_v50 = vunpack.i.h.bf16 %v3979_v28 }
 0xc59   : > { %2696 = vmatpush.msrb.mxu0 %v3980_v34 }
 0xc5b   : > { %2697 = vmatpush.msrb.mxu0 %v3981_v50  ;;  %2638 = vadd.xlane.f32.xlu2 %v2637_v16 }
 0xc5c   : > { %v4141_v57 = vpop.eup %4140 }
 0xc5d   : > { %v2618_v61 = vpop.xlane.xlu2 %2617  ;;  %v2493_v47 = vmul.f32 %v4141_v57, %v5406_v41 }
 0xc5e   : > { %v2624_v49 = vsub.f32 %v5415_v58, %v2618_v61  ;;  %v2818_v58 = vmul.f32 1.442695, %v2813_v23 }
 0xc5f   : > { %3758 = vmatmul.msk.f32.gmra.mxu2 %vm849_vm0, %v2493_v47 }
 0xc60   : > { %v2630_v53 = vmul.f32 1.442695, %v2624_v49 }
 0xc62   : > { %4142 = vpow2.f32 %v2630_v53 }
 0xc64   : > { %3998 = vrot.lane.b32.xlu0 %v5390_v39, %s5952_s3 }
 0xc65   : > { %v2621_v45 = vpop.xlane.xlu2 %2620 }
 0xc66   : > { %v2625_v43 = vsub.f32 %v5421_v13, %v2621_v45 }
 0xc68   : > { %v5471_v3 = vpop.eup %4142  ;;  %v2632_v51 = vmul.f32 1.442695, %v2625_v43 }
 0xc69   : > { %v2640_v41 = vsel %vm849_vm0, %v5471_v3, 0.0 }
 0xc6a   : > { %4144 = vpow2.f32 %v2632_v51  ;;  %2641 = vadd.xlane.f32.xlu2 %v2640_v41 }
 0xc6c   : > { %2737 = vrot.lane.b32.xlu0 %v5305_v24, %s5951_s6 }
 0xc6d   : > { %v2484_v14 = vpop.xlane.xlu2 %2483 }
 0xc6e   : > { %4146 = vrcp.f32 %v2484_v14 }
 0xc6f   : > { %4148 = vpow2.f32 %v2818_v58 }
 0xc70   : > { %v5478_v39 = vpop.eup %4144 }
 0xc71   : > { %v2643_v13 = vsel %vm849_vm0, %v5478_v39, 0.0 }
 0xc72   : > { %2644 = vadd.xlane.f32.xlu1 %v2643_v13 }
 0xc74   : > { %v4147_v32 = vpop.eup %4146 }
 0xc75   : > { %v3984_v60 = vpop.permute.xlu2 %3983  ;;  %v2494_v0 = vmul.f32 %v4147_v32, %v5425_v1  ;;  %v5483_v59 = vpop.eup %4148 }
 0xc76   : > { %v3985_v37 = vunpack.i.l.bf16 %v3984_v60  ;;  %v3986_v10 = vunpack.i.h.bf16 %v3984_v60  ;;  %v2827_v24 = vsel %vm849_vm0, %v5483_v59, 0.0 }
 0xc77   : > { %3759 = vmatmul.msk.f32.gmra.mxu2 %vm849_vm0, %v2494_v0 }
 0xc78   : > { %2880 = vmatpush.msra.mxu2 %v3985_v37 }
 0xc7a   : > { %2828 = vadd.xlane.f32.xlu1 %v2827_v24  ;;  %2881 = vmatpush.msra.mxu2 %v3986_v10 }
 0xc7d   : > { %v3989_v4 = vpop.permute.xlu2 %3988 }
 0xc7e   : > { %v3990_v11 = vunpack.i.l.bf16 %v3989_v4  ;;  %v3991_v20 = vunpack.i.h.bf16 %v3989_v4 }
 0xc80   : > { %2882 = vmatpush.msra.mxu2 %v3990_v11 }
 0xc81   : > { %v2487_v40 = vpop.xlane.xlu0 %2486 }
 0xc82   : > { %4150 = vrcp.f32 %v2487_v40  ;;  %3993 = vrot.lane.b32.xlu2 %v5404_v56, %s5952_s3  ;;  %2883 = vmatpush.msra.mxu2 %v3991_v20 }
 0xc88   : > { %v4151_v1 = vpop.eup %4150 }
 0xc89   : > { %v2495_v22 = vmul.f32 %v4151_v1, %v5430_v7 }
 0xc8b   : > { %3760 = vmatmul.msk.f32.gmra.mxu2 %vm849_vm0, %v2495_v22 }
 0xcab   : > { %2996 = vmax.xlane.f32.xlu2 %v2995_v8 }
 0xcb6   : > { %v2991_v6 = vpop.xlane.xlu2 %2990 }
 0xcb7   : > { %v2999_v56 = vsub.f32 %v5440_v25, %v2991_v6 }
 0xcb9   : > { %v3004_v31 = vmul.f32 1.442695, %v2999_v56  ;;  %v3800_v56 = vld [vmem:[%s5944_s1 + $0x38] sm:$0xff] }
 0xcbb   : > { %4152 = vpow2.f32 %v3004_v31  ;;  %v3799_v31 = vld [vmem:[%s5944_s1 + $0x30] sm:$0xff] }
 0xcbe   : > { %v2826_v55 = vpop.xlane.xlu2 %2825 }
 0xcbf   : > { %4154 = vrcp.f32 %v2826_v55  ;;  %v3798_v55 = vld [vmem:[%s5944_s1 + $0x28] sm:$0xff] }
 0xcc1   : > { %v5500_v7 = vpop.eup %4152 }
 0xcc2   : > { %v3013_v44 = vsel %vm849_vm0, %v5500_v7, 0.0 }
 0xcc3   : > { %3014 = vadd.xlane.f32.xlu1 %v3013_v44  ;;  %v3012_v46 = vpop.xlane.xlu0 %3011 }
 0xcc5   : > { %v4155_v35 = vpop.eup %4154 }
 0xcc6   : > { %v2840_v48 = vmul.f32 %v4155_v35, %v5446_v21  ;;  %v2636_v63 = vpop.xlane.xlu2 %2635 }
 0xcc7   : > { %4156 = vrcp.f32 %v2636_v63 }
 0xcc8   : > { %3781 = vmatmul.msk.f32.vlgmr.msra.gmra.mxu2 %vm849_vm0, %v2840_v48 }
 0xccd   : > { %v4157_v12 = vpop.eup %4156 }
 0xcce   : > { %v2650_v25 = vmul.f32 %v4157_v12, %v5453_v38  ;;  %v2639_v18 = vpop.xlane.xlu2 %2638 }
 0xccf   : > { %4158 = vrcp.f32 %v2639_v18 }
 0xcd0   : > { %3769 = vmatmul.msk.f32.vlgmr.msrb.gmra.mxu0 %vm849_vm0, %v2650_v25 }
 0xcd5   : > { %v4159_v42 = vpop.eup %4158 }
 0xcd6   : > { %v2651_v17 = vmul.f32 %v4159_v42, %v5460_v2  ;;  %v3999_v57 = vpop.permute.xlu0 %3998 }
 0xcd7   : > { %v4001_v49 = vunpack.i.h.bf16 %v3999_v57 }
 0xcd8   : > { %3770 = vmatmul.msk.f32.gmra.mxu0 %vm849_vm0, %v2651_v17 }
 0xcda   : > { %v2525_v9 = vpop.f32.mrf.mxu2 }
 0xcdb   : > { %2537 = vst.msk [vmem:[#allocation3] sm:$0xff] %vm1123_vm15, %v2525_v9 }
 0xcdc   : > { %2735 = vrot.lane.b32.xlu1 %v5273_v54, %s5951_s6  ;;  %v4000_v54 = vunpack.i.l.bf16 %v3999_v57  ;;  %v5574_v57 = vld [vmem:[%s5945_s10 + $0x1] ss:$0 sm:$0xff]  ;;  %s5958_s10 = sld [smem:[#allocation29_spill]] }
 0xcdd   : > { %v2642_v21 = vpop.xlane.xlu2 %2641 }
 0xcde   : > { %4160 = vrcp.f32 %v2642_v21  ;;  %v2738_v40 = vpop.permute.xlu0 %2737 }
 0xce2   : > { %v2528_v28 = vpop.f32.mrf.mxu2 }
 0xce3   : > { %2538 = vst.msk [vmem:[#allocation3 + $0x8] sm:$0xff] %vm1123_vm15, %v2528_v28 }
 0xce4   : > { %v4161_v38 = vpop.eup %4160 }
 0xce5   : > { %v2645_v34 = vpop.xlane.xlu1 %2644  ;;  %v3994_v50 = vpop.permute.xlu2 %3993  ;;  %v2652_v16 = vmul.f32 %v4161_v38, %v5471_v3 }
 0xce6   : > { %4162 = vrcp.f32 %v2645_v34  ;;  %v3995_v2 = vunpack.i.l.bf16 %v3994_v50  ;;  %v3996_v61 = vunpack.i.h.bf16 %v3994_v50 }
 0xce7   : > { %3771 = vmatmul.msk.f32.gmra.mxu0 %vm849_vm0, %v2652_v16  ;;  %4164 = vrcp.f32 %v3012_v46 }
 0xce8   : > { %3066 = vmatpush.msra.mxu0 %v3995_v2  ;;  %3847 = vmatpush.msra.mxu1 %v3995_v2 }
 0xcea   : > { %3067 = vmatpush.msra.mxu0 %v3996_v61  ;;  %3848 = vmatpush.msra.mxu1 %v3996_v61 }
 0xcec   : > { %v4163_v47 = vpop.eup %4162  ;;  %3068 = vmatpush.msra.mxu0 %v4000_v54  ;;  %3849 = vmatpush.msra.mxu1 %v4000_v54 }
 0xced   : > { %v2829_v53 = vpop.xlane.xlu1 %2828  ;;  %v2653_v45 = vmul.f32 %v4163_v47, %v5478_v39  ;;  %v4165_v43 = vpop.eup %4164 }
 0xcee   : > { %4166 = vrcp.f32 %v2829_v53  ;;  %3069 = vmatpush.msra.mxu0 %v4001_v49  ;;  %3850 = vmatpush.msra.mxu1 %v4001_v49  ;;  %v3026_v23 = vmul.f32 %v4165_v43, %v5451_v36  ;;  %v2980_v36 = vmul.f32 0.35355338, %v5492_v26 }
 0xcef   : > { %3772 = vmatmul.msk.f32.gmra.mxu0 %vm849_vm0, %v2653_v45 }
 0xcf0   : > { %v5528_v0 = vadd.f32 %v2980_v36, %v4745_v5  ;;  %3136 = vmatpush.msrb.mxu1 %v3800_v56  ;;  %v3811_v56 = vld [vmem:[%s5946_s13 + $0x38] sm:$0xff] }
 0xcf1   : > { %3306 = vmatpush.msrb.mxu2 %v3811_v56 }
 0xcf2   : > { %3137 = vmatpush.msrb.mxu1 %v3799_v31  ;;  %v3810_v31 = vld [vmem:[%s5946_s13 + $0x30] sm:$0xff] }
 0xcf3   : > { %3307 = vmatpush.msrb.mxu2 %v3810_v31 }
 0xcf4   : > { %v4167_v3 = vpop.eup %4166  ;;  %3138 = vmatpush.msrb.mxu1 %v3798_v55 }
 0xcf5   : > { %v2841_v51 = vmul.f32 %v4167_v3, %v5483_v59  ;;  %v2992_v59 = vsel %vm849_vm0, %v5528_v0, -inf }
 0xcf7   : > { %3782 = vmatmul.msk.f32.gmra.mxu2 %vm849_vm0, %v2841_v51  ;;  %3793 = vmatmul.msk.f32.vlgmr.msra.gmra.mxu0 %vm849_vm0, %v3026_v23 }
 0xcfa   : > { %v2531_v41 = vpop.f32.mrf.mxu2 }
 0xcfb   : > { %2539 = vst.msk [vmem:[#allocation3 + $0x10] sm:$0xff] %vm1123_vm15, %v2531_v41 }
 0xd0e   : > { %v2534_v58 = vpop.f32.mrf.mxu2 }
 0xd0f   : > { %2540 = vst.msk [vmem:[#allocation3 + $0x18] sm:$0xff] %vm1123_vm15, %v2534_v58 }
 0xd1e   : > { %v2997_v14 = vpop.xlane.xlu2 %2996 }
 0xd1f   : > { %v3001_v39 = vsub.f32 %v5495_v52, %v2997_v14 }
 0xd21   : > { %v3008_v13 = vmul.f32 1.442695, %v3001_v39 }
 0xd23   : > { %4168 = vpow2.f32 %v3008_v13 }
 0xd29   : > { %v4169_v32 = vpop.eup %4168 }
 0xd2a   : > { %v3019_v60 = vsel %vm849_vm0, %v4169_v32, 0.0 }
 0xd2b   : > { %3020 = vadd.xlane.f32.xlu0 %v3019_v60 }
 0xd33   : > { %2993 = vmax.xlane.f32.xlu0 %v2992_v59 }
 0xd36   : > { %v3015_v37 = vpop.xlane.xlu1 %3014 }
 0xd37   : > { %4170 = vrcp.f32 %v3015_v37 }
 0xd3d   : > { %v4171_v10 = vpop.eup %4170 }
 0xd3e   : > { %v3027_v24 = vmul.f32 %v4171_v10, %v5500_v7  ;;  %v3797_v7 = vld [vmem:[%s5944_s1 + $0x20] sm:$0xff] }
 0xd3f   : > { %3139 = vmatpush.msrb.mxu1 %v3797_v7  ;;  %v3809_v7 = vld [vmem:[%s5946_s13 + $0x28] sm:$0xff] }
 0xd40   : > { %3794 = vmatmul.msk.f32.gmra.mxu0 %vm849_vm0, %v3027_v24  ;;  %3308 = vmatpush.msrb.mxu2 %v3809_v7 }
 0xd4b   : > { %v2885_v20 = vpop.f32.mrf.mxu2 }
 0xd4d   : > { %v2699_v4 = vpop.f32.mrf.mxu0 }
 0xd4e   : > { %v2736_v11 = vpop.permute.xlu1 %2735  ;;  %2715 = vrot.lane.b32.xlu1 %v2699_v4, %s5954_s8 }
 0xd4f   : > { %3779 = vmatmul.msk.f32.gmra.mxu1 %vm1123_vm15, %v2736_v11 }
 0xd55   : > { %v2702_v1 = vpop.f32.mrf.mxu0 }
 0xd56   : > { %2901 = vrot.lane.b32.xlu1 %v2885_v20, %s5955_s9 }
 0xd57   : > { %3780 = vmatmul.msk.f32.gmra.mxu1 %vm1123_vm15, %v2738_v40 }
 0xd5e   : > { %2717 = vrot.lane.b32.xlu1 %v2702_v1, %s5954_s8 }
 0xd64   : > { %v5539_v22 = vpop.f32.mrf.mxu0 }
 0xd6c   : > { %v5541_v26 = vpop.f32.mrf.mxu0 }
 0xd74   : > { %v3071_v27 = vpop.f32.mrf.mxu0 }
 0xd75   : > { %3087 = vrot.lane.b32.xlu2 %v3071_v27, %s5956_s29 }
 0xd7a   : > { %v2888_v29 = vpop.f32.mrf.mxu2 }
 0xd7b   : > { %2903 = vrot.lane.b32.xlu1 %v2888_v29, %s5955_s9 }
 0xd9e   : > { %v3021_v52 = vpop.xlane.xlu0 %3020 }
 0xd9f   : > { %4172 = vrcp.f32 %v3021_v52 }
 0xda5   : > { %v4173_v8 = vpop.eup %4172 }
 0xda6   : > { %v3029_v6 = vmul.f32 %v4173_v8, %v4169_v32 }
 0xda8   : > { %3796 = vmatmul.msk.f32.vlgmr.msra.gmra.mxu1 %vm849_vm0, %v3029_v6 }
 0xdbd   : > { %v3074_v44 = vpop.f32.mrf.mxu0 }
 0xdbe   : > { %3089 = vrot.lane.b32.xlu1 %v3074_v44, %s5956_s29  ;;  %v3808_v44 = vld [vmem:[%s5946_s13 + $0x20] sm:$0xff] }
 0xdbf   : > { %3309 = vmatpush.msrb.mxu2 %v3808_v44 }
 0xdc0   : > { %v2716_v35 = vpop.permute.xlu1 %2715 }
 0xdc1   : > { %2727 = vst.msk [vmem:[#allocation3] sm:$0xff] %vm1460_vm2, %v2716_v35 }
 0xdc8   : > { %v2902_v48 = vpop.permute.xlu1 %2901 }
 0xdc9   : > { %2913 = vst.msk [vmem:[#allocation3] sm:$0xff] %vm1647_vm3, %v2902_v48 }
 0xdcc   : > { %v2786_v63 = vpop.f32.mrf.mxu1 }
 0xdcd   : > { %v2794_v12 = vmul.f32 0.35355338, %v2786_v63 }
 0xdcf   : > { %v2798_v25 = vadd.f32 %v2794_v12, %v4745_v5  ;;  %v3088_v18 = vpop.permute.xlu2 %3087 }
 0xdd0   : > { %3099 = vst.msk [vmem:[#allocation3] sm:$0xff] %vm1834_vm4, %v3088_v18  ;;  %v2718_v42 = vpop.permute.xlu1 %2717 }
 0xdd1   : > { %2728 = vst.msk [vmem:[#allocation3 + $0x8] sm:$0xff] %vm1460_vm2, %v2718_v42  ;;  %v2806_v17 = vsel %vm849_vm0, %v2798_v25, -inf }
 0xdd2   : > { %2807 = vmax.xlane.f32.xlu2 %v2806_v17 }
 0xdd4   : > { %v2789_v21 = vpop.f32.mrf.mxu1 }
 0xdd5   : > { %v2795_v46 = vmul.f32 0.35355338, %v2789_v21 }
 0xdd7   : > { %v3103_v9 = vld [vmem:[#allocation3] sm:$0xff]  ;;  %v2799_v28 = vadd.f32 %v2795_v46, %v4745_v5 }
 0xdd8   : > { %3801 = vmatmul.msk.f32.vlgmr.msrb.gmra.mxu1 %vm849_vm0, %v3103_v9 }
 0xdd9   : > { %v2809_v38 = vsel %vm849_vm0, %v2799_v28, -inf }
 0xde8   : > { %2810 = vmax.xlane.f32.xlu1 %v2809_v38 }
 0xded   : > { %v2904_v34 = vpop.permute.xlu1 %2903 }
 0xdee   : > { %2914 = vst.msk [vmem:[#allocation3 + $0x8] sm:$0xff] %vm1647_vm3, %v2904_v34  ;;  %v5627_v34 = vld [vmem:[%s5947_s11 + $0x1] ss:$0 sm:$0xff]  ;;  %s3589_s11 = scalar_lea.hbm %s5958_s10, %s3846_s25 }
 0xdef   : > { %s3592_s3 = sshll.u32 %s3589_s11, 4  ;;  %s3593_s3 = int_to_ptr.hbm [resolvable:$true] %s3592_s3 }
 0xdf0   : > { %s4224_s4 = sshra.s32 %s3593_s3, 4  ;;  %s4225_s4 = int_to_ptr.hbm [resolvable:$true] %s4224_s4 }
 0xdf1   : > { %p4231_p0 = scmp.lt.s32.totalorder %s4225_s4, %s5958_s10 }
 0xe25   : > { %v3080_v2 = vpop.f32.mrf.mxu1 }
 0xe30   : > { %v3090_v50 = vpop.permute.xlu1 %3089 }
 0xe31   : > { %3100 = vst.msk [vmem:[#allocation3 + $0x8] sm:$0xff] %vm1834_vm4, %v3090_v50 }
 0xe38   : > { %v3104_v16 = vld [vmem:[#allocation3 + $0x8] sm:$0xff] }
 0xe39   : > { %3802 = vmatmul.msk.f32.gmra.mxu1 %vm849_vm0, %v3104_v16  ;;  %v5632_v16 = vld [vmem:[%s5948_s12 + $0x1] ss:$0 sm:$0xff] }
 0xe45   : > { %v2808_v23 = vpop.xlane.xlu2 %2807 }
 0xe46   : > { %v2814_v51 = vsub.f32 %v2798_v25, %v2808_v23  ;;  %v3830_v23 = vld [vmem:[%s5860_s15 + $0xe8] sm:$0xff] }
 0xe48   : > { %v2820_v41 = vmul.f32 1.442695, %v2814_v51 }
 0xe55   : > { %v3141_v61 = vpop.f32.mrf.mxu1 }
 0xe56   : > { %v3153_v5 = vadd.f32 %v3141_v61, %v5152_v15  ;;  %v2994_v15 = vpop.xlane.xlu0 %2993 }
 0xe57   : > { %v3000_v13 = vsub.f32 %v5528_v0, %v2994_v15 }
 0xe58   : > { %v5578_v54 = vadd.f32 %v5574_v57, %v3153_v5 }
 0xe59   : > { %v3006_v36 = vmul.f32 1.442695, %v3000_v13 }
 0xe5a   : > { %v3170_v47 = vsel %vm849_vm0, %v5578_v54, 0.0 }
 0xe5b   : > { %3171 = vadd.xlane.f32.xlu0 %v3170_v47  ;;  %v2811_v49 = vpop.xlane.xlu1 %2810 }
 0xe5c   : > { %v2815_v53 = vsub.f32 %v2799_v28, %v2811_v49 }
 0xe5e   : > { %v2822_v45 = vmul.f32 1.442695, %v2815_v53 }
 0xe60   : > { %4174 = vpow2.f32 %v2822_v45 }
 0xe61   : > { %4176 = vpow2.f32 %v2820_v41 }
 0xe62   : > { %4178 = vpow2.f32 %v3006_v36 }
 0xe66   : > { %v4175_v43 = vpop.eup %4174 }
 0xe67   : > { %v2833_v3 = vsel %vm849_vm0, %v4175_v43, 0.0  ;;  %v4177_v60 = vpop.eup %4176 }
 0xe68   : > { %2834 = vadd.xlane.f32.xlu2 %v2833_v3  ;;  %v2830_v59 = vsel %vm849_vm0, %v4177_v60, 0.0  ;;  %v4179_v37 = vpop.eup %4178  ;;  %v3831_v3 = vld [vmem:[%s5860_s15 + $0xf0] sm:$0xff] }
 0xe69   : > { %v3016_v10 = vsel %vm849_vm0, %v4179_v37, 0.0 }
 0xeb6   : > { %v3144_v58 = vpop.f32.mrf.mxu1 }
 0xeb7   : > { %v3154_v14 = vadd.f32 %v3144_v58, %v5157_v19 }
 0xeb9   : > { %v5585_v39 = vadd.f32 %v5574_v57, %v3154_v14 }
 0xebb   : > { %v3173_v32 = vsel %vm849_vm0, %v5585_v39, 0.0 }
 0xebc   : > { %3174 = vadd.xlane.f32.xlu0 %v3173_v32 }
 0xec4   : > { %2831 = vadd.xlane.f32.xlu0 %v2830_v59 }
 0xecc   : > { %3017 = vadd.xlane.f32.xlu0 %v3016_v10 }
 0xece   : > { %v3172_v19 = vpop.xlane.xlu0 %3171 }
 0xecf   : > { %v3182_v24 = vmul.f32 %v3172_v19, %v4592_v62  ;;  %v3829_v19 = vld [vmem:[%s5860_s15 + $0xe0] sm:$0xff] }
 0xed1   : > { %v3186_v0 = vsub.f32 %v5578_v54, %v3182_v24 }
 0xed3   : > { %v3190_v4 = vmul.f32 %v3186_v0, %v3186_v0 }
 0xed5   : > { %v3194_v11 = vsel %vm849_vm0, %v3190_v4, 0.0  ;;  %v3827_v4 = vld [vmem:[%s5860_s15 + $0xd0] sm:$0xff] }
 0xed6   : > { %3195 = vadd.xlane.f32.xlu0 %v3194_v11  ;;  %v3826_v11 = vld [vmem:[%s5860_s15 + $0xc8] sm:$0xff] }
 0xeea   : > { %2719 = vrot.lane.b32.xlu0 %v5539_v22, %s5954_s8  ;;  %v2835_v22 = vpop.xlane.xlu2 %2834 }
 0xef2   : > { %2721 = vrot.lane.b32.xlu0 %v5541_v26, %s5954_s8 }
 0xefa   : > { %3093 = vrot.lane.b32.xlu0 %v3080_v2, %s5956_s29 }
 0xf2f   : > { %v3175_v20 = vpop.xlane.xlu0 %3174 }
 0xf30   : > { %v3183_v40 = vmul.f32 %v3175_v20, %v4592_v62  ;;  %v3825_v20 = vld [vmem:[%s5860_s15 + $0xc0] sm:$0xff] }
 0xf32   : > { %v5602_v1 = vsub.f32 %v5585_v39, %v3183_v40  ;;  %v3824_v40 = vld [vmem:[%s5860_s15 + $0xb8] sm:$0xff] }
 0xf34   : > { %v3191_v27 = vmul.f32 %v5602_v1, %v5602_v1 }
 0xf36   : > { %v3197_v29 = vsel %vm849_vm0, %v3191_v27, 0.0  ;;  %v3822_v27 = vld [vmem:[%s5860_s15 + $0xa8] sm:$0xff] }
 0xf37   : > { %v2832_v52 = vpop.xlane.xlu0 %2831  ;;  %3198 = vadd.xlane.f32.xlu2 %v3197_v29  ;;  %v3821_v29 = vld [vmem:[%s5860_s15 + $0xa0] sm:$0xff] }
 0xf38   : > { %4180 = vrcp.f32 %v2832_v52  ;;  %v3820_v52 = vld [vmem:[%s5860_s15 + $0x98] sm:$0xff] }
 0xf39   : > { %4182 = vrcp.f32 %v2835_v22  ;;  %v3819_v22 = vld [vmem:[%s5860_s15 + $0x90] sm:$0xff] }
 0xf3e   : > { %v4181_v8 = vpop.eup %4180 }
 0xf3f   : > { %v3018_v26 = vpop.xlane.xlu0 %3017  ;;  %v2842_v6 = vmul.f32 %v4181_v8, %v4177_v60  ;;  %v4183_v55 = vpop.eup %4182  ;;  %v3818_v8 = vld [vmem:[%s5860_s15 + $0x88] sm:$0xff] }
 0xf40   : > { %4184 = vrcp.f32 %v3018_v26  ;;  %v2843_v63 = vmul.f32 %v4183_v55, %v4175_v43  ;;  %v3832_v43 = vld [vmem:[%s5860_s15 + $0xf8] sm:$0xff]  ;;  %v3817_v26 = vld [vmem:[%s5860_s15 + $0x80] sm:$0xff] }
 0xf41   : > { %3783 = vmatmul.msk.f32.gmra.mxu2 %vm849_vm0, %v2842_v6  ;;  %3381 = vmatpush.msrb.mxu3 %v3832_v43  ;;  %v5697_v6 = vld [vmem:[%s5859_s14 + $0x1] ss:$0 sm:$0xff] }
 0xf43   : > { %3382 = vmatpush.msrb.mxu3 %v3831_v3 }
 0xf45   : > { %3383 = vmatpush.msrb.mxu3 %v3830_v23  ;;  %v4018_v23 = vld [vmem:[%s5861_s16 + $0x1] ss:$0 sm:$0xff] }
 0xf46   : > { %v4185_v35 = vpop.eup %4184 }
 0xf47   : > { %v3028_v48 = vmul.f32 %v4185_v35, %v4179_v37  ;;  %3384 = vmatpush.msrb.mxu3 %v3829_v19 }
 0xf49   : > { %3795 = vmatmul.msk.f32.gmra.mxu0 %vm849_vm0, %v3028_v48  ;;  %v3196_v12 = vpop.xlane.xlu0 %3195  ;;  %3784 = vmatmul.msk.f32.gmra.mxu2 %vm849_vm0, %v2843_v63 }
 0xf4a   : > { %v3206_v25 = vmul.f32 %v3196_v12, %v4592_v62 }
 0xf4c   : > { %v3210_v18 = vadd.f32 1e-06, %v3206_v25 }
 0xf4e   : > { %4186 = vrsqrt.f32 %v3210_v18  ;;  %vm3220_vm7 = vweird.f32 %v3210_v18 }
 0xf54   : > { %v4187_v42 = vpop.eup %4186 }
 0xf55   : > { %v3215_v17 = vmul.f32 %v4187_v42, %v3210_v18  ;;  %vm3221_vm15 = vweird.f32 %v4187_v42 }
 0xf56   : > { %vm3222_vm8 = vmor %vm3220_vm7, %vm3221_vm15 }
 0xf57   : > { %v3216_v9 = vmul.f32 %v4187_v42, %v3215_v17 }
 0xf59   : > { %v3217_v21 = vmul.f32 0.5, %v3216_v9 }
 0xf5b   : > { %v3218_v46 = vsub.f32 1.5, %v3217_v21 }
 0xf5c   : > { %v2720_v28 = vpop.permute.xlu0 %2719 }
 0xf5d   : > { %v3219_v38 = vmul.f32 %v4187_v42, %v3218_v46  ;;  %2729 = vst.msk [vmem:[#allocation3 + $0x10] sm:$0xff] %vm1460_vm2, %v2720_v28 }
 0xf5f   : > { %v3223_v50 = vsel %vm3222_vm8, %v4187_v42, %v3219_v38 }
 0xf60   : > { %v3254_v2 = vmul.f32 %v3223_v50, %v3186_v0  ;;  %v3828_v0 = vld [vmem:[%s5860_s15 + $0xd8] sm:$0xff] }
 0xf61   : > { %3385 = vmatpush.msrb.mxu3 %v3828_v0 }
 0xf62   : > { %v3261_v61 = vmul.f32 %v5627_v34, %v3254_v2 }
 0xf63   : > { %3386 = vmatpush.msrb.mxu3 %v3827_v4 }
 0xf64   : > { %v3268_v5 = vadd.f32 %v5632_v16, %v3261_v61  ;;  %v2722_v47 = vpop.permute.xlu0 %2721 }
 0xf65   : > { %2730 = vst.msk [vmem:[#allocation3 + $0x18] sm:$0xff] %vm1460_vm2, %v2722_v47  ;;  %3387 = vmatpush.msrb.mxu3 %v3826_v11 }
 0xf66   : > { %3813 = vmatmul.msk.f32.vlgmr.msrb.gmra.mxu2 %vm849_vm0, %v3268_v5 }
 0xf67   : > { %3388 = vmatpush.msrb.mxu3 %v3825_v20 }
 0xf69   : > { %3389 = vmatpush.msrb.mxu3 %v3824_v40 }
 0xf6c   : > { %v3094_v21 = vpop.permute.xlu0 %3093 }
 0xfaa   : > { %v3199_v49 = vpop.xlane.xlu2 %3198 }
 0xfab   : > { %v3207_v53 = vmul.f32 %v3199_v49, %v4592_v62 }
 0xfad   : > { %v3211_v45 = vadd.f32 1e-06, %v3207_v53 }
 0xfaf   : > { %4188 = vrsqrt.f32 %v3211_v45  ;;  %vm3230_vm9 = vweird.f32 %v3211_v45 }
 0xfb5   : > { %v4189_v51 = vpop.eup %4188 }
 0xfb6   : > { %v3225_v41 = vmul.f32 %v4189_v51, %v3211_v45  ;;  %vm3231_vm2 = vweird.f32 %v4189_v51 }
 0xfb7   : > { %vm3232_vm10 = vmor %vm3230_vm9, %vm3231_vm2 }
 0xfb8   : > { %v3226_v58 = vmul.f32 %v4189_v51, %v3225_v41 }
 0xfba   : > { %v3227_v15 = vmul.f32 0.5, %v3226_v58 }
 0xfbc   : > { %v3228_v14 = vsub.f32 1.5, %v3227_v15 }
 0xfbe   : > { %v3229_v13 = vmul.f32 %v4189_v51, %v3228_v14 }
 0xfc0   : > { %v3233_v32 = vsel %vm3232_vm10, %v4189_v51, %v3229_v13 }
 0xfc1   : > { %v3255_v36 = vmul.f32 %v3233_v32, %v5602_v1  ;;  %v3823_v1 = vld [vmem:[%s5860_s15 + $0xb0] sm:$0xff] }
 0xfc2   : > { %3390 = vmatpush.msrb.mxu3 %v3823_v1 }
 0xfc3   : > { %v3262_v60 = vmul.f32 %v5627_v34, %v3255_v36 }
 0xfc4   : > { %v2891_v59 = vpop.f32.mrf.mxu2  ;;  %3391 = vmatpush.msrb.mxu3 %v3822_v27 }
 0xfc5   : > { %2905 = vrot.lane.b32.xlu1 %v2891_v59, %s5955_s9  ;;  %v3269_v37 = vadd.f32 %v5632_v16, %v3262_v60 }
 0xfc6   : > { %v3077_v10 = vpop.f32.mrf.mxu0  ;;  %3392 = vmatpush.msrb.mxu3 %v3821_v29 }
 0xfc7   : > { %3091 = vrot.lane.b32.xlu2 %v3077_v10, %s5956_s29  ;;  %3814 = vmatmul.msk.f32.gmra.mxu2 %vm849_vm0, %v3269_v37 }
 0xfc8   : > { %3393 = vmatpush.msrb.mxu3 %v3820_v52 }
 0xfca   : > { %3394 = vmatpush.msrb.mxu3 %v3819_v22 }
 0xfcc   : > { %v2894_v24 = vpop.f32.mrf.mxu2  ;;  %3395 = vmatpush.msrb.mxu3 %v3818_v8 }
 0xfcd   : > { %2907 = vrot.lane.b32.xlu1 %v2894_v24, %s5955_s9  ;;  %s755_s9 = sand.u32 1, %s4264_s2  }
 0xfce   : > { %3396 = vmatpush.msrb.mxu3 %v3817_v26  ;;  %s3659_s29 = sshll.u32 %s755_s9, 4  ;;  %s3578_s24 = scalar_lea.sflag [#allocation5], %s755_s9 }
 0xfcf   : > { %s757_s5 = scalar_lea.vmem [#allocation4], %s3659_s29  ;;  %s4230_s29 = scalar_lea.hbm %s5958_s10, 32 }
 0xfd0   : > { %s3590_s6 = sshll.u32 %s757_s5, 4  ;;  %s3591_s6 = int_to_ptr.vmem [resolvable:$true] %s3590_s6 }
 0xfe9   : > { %v3311_v56 = vpop.f32.mrf.mxu2 }
 0xfea   : > { %v3312_v31 = vadd.f32 %v5697_v6, %v3311_v56 }
 0xfec   : > { %v3323_v55 = vmul.f32 %v3312_v31, %v3312_v31 }
 0xfee   : > { %v3327_v7 = vmul.f32 %v3323_v55, %v3312_v31 }
 0xff0   : > { %v3331_v44 = vmul.f32 0.044715, %v3327_v7 }
 0xff2   : > { %v3335_v35 = vadd.f32 %v3331_v44, %v3312_v31 }
 0xff4   : > { %v3339_v48 = vmul.f32 0.7978846, %v3335_v35  ;;  %v3469_v35 = vld [vmem:[%s5864_s19 + $0x18] sm:$0xff] }
 0xff5   : > { %3492 = vmatpush.msrb.mxu0 %v3469_v35 }
 0xff6   : > { %4190 = vtanh.f32 %v3339_v48  ;;  %v3506_v48 = vld [vmem:[%s5866_s21 + $0x18] sm:$0xff] }
 0xff7   : > { %3523 = vmatpush.msra.mxu1 %v3506_v48  ;;  %v3538_v48 = vld [vmem:[%s5868_s23 + $0x10] sm:$0xff] }
 0xffc   : > { %v4191_v63 = vpop.eup %4190 }
 0xffd   : > { %v3347_v12 = vadd.f32 1.0, %v4191_v63  ;;  %v3468_v63 = vld [vmem:[%s5864_s19 + $0x10] sm:$0xff] }
 0xffe   : > { %3493 = vmatpush.msrb.mxu0 %v3468_v63  ;;  %v3537_v63 = vld [vmem:[%s5868_s23 + $0x8] sm:$0xff] }
 0xfff   : > { %v3351_v25 = vmul.f32 0.5, %v3347_v12  ;;  %v3505_v12 = vld [vmem:[%s5866_s21 + $0x10] sm:$0xff] }
0x1000   : > { %3524 = vmatpush.msra.mxu1 %v3505_v12  ;;  %v3536_v12 = vld [vmem:[%s5868_s23] sm:$0xff] }
0x1001   : > { %v3355_v18 = vmul.f32 %v3351_v25, %v3312_v31  ;;  %v3467_v25 = vld [vmem:[%s5864_s19 + $0x8] sm:$0xff] }
0x1002   : > { %3494 = vmatpush.msrb.mxu0 %v3467_v25 }
0x1003   : > { %3397 = vmatmul.f32.vlgmr.msrb.gmra.mxu3 %v3355_v18  ;;  %v3504_v18 = vld [vmem:[%s5866_s21 + $0x8] sm:$0xff] }
0x1004   : > { %3525 = vmatpush.msra.mxu1 %v3504_v18 }
0x1021   : > { %v3092_v17 = vpop.permute.xlu2 %3091 }
0x1037   : > { %v2906_v42 = vpop.permute.xlu1 %2905 }
0x1038   : > { %2915 = vst.msk [vmem:[#allocation3 + $0x10] sm:$0xff] %vm1647_vm3, %v2906_v42  ;;  %v3466_v42 = vld [vmem:[%s5864_s19] sm:$0xff] }
0x1039   : > { %3101 = vst.msk [vmem:[#allocation3 + $0x10] sm:$0xff] %vm1834_vm4, %v3092_v17  ;;  %v3503_v17 = vld [vmem:[%s5866_s21] sm:$0xff]  ;;  %3495 = vmatpush.msrb.mxu0 %v3466_v42 }
0x103a   : > { %3526 = vmatpush.msra.mxu1 %v3503_v17 }
0x103f   : > { %v2908_v9 = vpop.permute.xlu1 %2907 }
0x1040   : > { %2916 = vst.msk [vmem:[#allocation3 + $0x18] sm:$0xff] %vm1647_vm3, %v2908_v9  ;;  %v3105_v46 = vld [vmem:[#allocation3 + $0x10] sm:$0xff] }
0x1041   : > { %3102 = vst.msk [vmem:[#allocation3 + $0x18] sm:$0xff] %vm1834_vm4, %v3094_v21  ;;  %3803 = vmatmul.msk.f32.gmra.mxu1 %vm849_vm0, %v3105_v46 }
0x1048   : > { %v3106_v28 = vld [vmem:[#allocation3 + $0x18] sm:$0xff] }
0x1049   : > { %3804 = vmatmul.msk.f32.gmra.mxu1 %vm849_vm0, %v3106_v28 }
0x104a   : > { %v3314_v38 = vpop.f32.mrf.mxu2 }
0x104b   : > { %v3315_v50 = vadd.f32 %v5697_v6, %v3314_v38 }
0x104d   : > { %v3324_v2 = vmul.f32 %v3315_v50, %v3315_v50 }
0x104f   : > { %v3328_v61 = vmul.f32 %v3324_v2, %v3315_v50 }
0x1051   : > { %v3332_v5 = vmul.f32 0.044715, %v3328_v61 }
0x1053   : > { %v3336_v47 = vadd.f32 %v3332_v5, %v3315_v50 }
0x1055   : > { %v3340_v49 = vmul.f32 0.7978846, %v3336_v47  ;;  %v4019_v47 = vld [vmem:[%s5862_s17] ss:$0 sm:$0xff] }
0x1057   : > { %4192 = vtanh.f32 %v3340_v49 }
0x105d   : > { %v4193_v53 = vpop.eup %4192 }
0x105e   : > { %v3348_v45 = vadd.f32 1.0, %v4193_v53  ;;  %v4020_v53 = vld [vmem:[%s5863_s18] ss:$0 sm:$0xff] }
0x1060   : > { %v3352_v43 = vmul.f32 0.5, %v3348_v45 }
0x1062   : > { %v3356_v3 = vmul.f32 %v3352_v43, %v3315_v50 }
0x1064   : > { %3400 = vmatmul.f32.gmra.mxu3 %v3356_v3 }
0x1086   : > { %v3398_v51 = vpop.f32.mrf.mxu3 }
0x1087   : > { %v3399_v41 = vadd.f32 %v4018_v23, %v3398_v51 }
0x1089   : > { %v3408_v58 = vadd.f32 %v3399_v41, %v5578_v54 }
0x108b   : > { %v3412_v15 = vsel %vm849_vm0, %v3408_v58, 0.0 }
0x108c   : > { %3413 = vadd.xlane.f32.xlu0 %v3412_v15 }
0x10be   : > { %v3147_v14 = vpop.f32.mrf.mxu1 }
0x10bf   : > { %v3155_v13 = vadd.f32 %v3147_v14, %v5162_v30 }
0x10c1   : > { %v3164_v32 = vadd.f32 %v5574_v57, %v3155_v13 }
0x10c3   : > { %v3176_v36 = vsel %vm849_vm0, %v3164_v32, 0.0 }
0x10c4   : > { %3177 = vadd.xlane.f32.xlu2 %v3176_v36 }
0x10c6   : > { %v3150_v60 = vpop.f32.mrf.mxu1 }
0x10c7   : > { %v3156_v59 = vadd.f32 %v3150_v60, %v5167_v33 }
0x10c9   : > { %v3165_v37 = vadd.f32 %v5574_v57, %v3156_v59 }
0x10cb   : > { %v3179_v10 = vsel %vm849_vm0, %v3165_v37, 0.0 }
0x10cc   : > { %3180 = vadd.xlane.f32.xlu1 %v3179_v10 }
0x10e7   : > { %v3401_v54 = vpop.f32.mrf.mxu3 }
0x10e8   : > { %v3402_v19 = vadd.f32 %v4018_v23, %v3401_v54 }
0x10ea   : > { %v3409_v24 = vadd.f32 %v3402_v19, %v5585_v39 }
0x10ec   : > { %v3415_v0 = vsel %vm849_vm0, %v3409_v24, 0.0 }
0x10ed   : > { %3416 = vadd.xlane.f32.xlu2 %v3415_v0 }
0x10ff   : > { %v3414_v30 = vpop.xlane.xlu0 %3413 }
0x1100   : > { %v3418_v4 = vmul.f32 %v3414_v30, %v4592_v62 }
0x1102   : > { %v3420_v11 = vsub.f32 %v3408_v58, %v3418_v4 }
0x1104   : > { %v3422_v20 = vmul.f32 %v3420_v11, %v3420_v11 }
0x1106   : > { %v3424_v40 = vsel %vm849_vm0, %v3422_v20, 0.0 }
0x1107   : > { %3425 = vadd.xlane.f32.xlu2 %v3424_v40 }
0x1137   : > { %v3178_v33 = vpop.xlane.xlu2 %3177 }
0x1138   : > { %v3184_v57 = vmul.f32 %v3178_v33, %v4592_v62 }
0x113a   : > { %v5723_v1 = vsub.f32 %v3164_v32, %v3184_v57 }
0x113c   : > { %v3192_v27 = vmul.f32 %v5723_v1, %v5723_v1 }
0x113e   : > { %v3200_v39 = vsel %vm849_vm0, %v3192_v27, 0.0 }
0x113f   : > { %3201 = vadd.xlane.f32.xlu1 %v3200_v39  ;;  %v3181_v29 = vpop.xlane.xlu1 %3180 }
0x1140   : > { %v3185_v52 = vmul.f32 %v3181_v29, %v4592_v62 }
0x1142   : > { %v5729_v22 = vsub.f32 %v3165_v37, %v3185_v52 }
0x1144   : > { %v3193_v8 = vmul.f32 %v5729_v22, %v5729_v22 }
0x1146   : > { %v3203_v26 = vsel %vm849_vm0, %v3193_v8, 0.0 }
0x1147   : > { %3204 = vadd.xlane.f32.xlu0 %v3203_v26 }
0x1160   : > { %v3417_v56 = vpop.xlane.xlu2 %3416 }
0x1161   : > { %v3419_v31 = vmul.f32 %v3417_v56, %v4592_v62 }
0x1163   : > { %v5735_v55 = vsub.f32 %v3409_v24, %v3419_v31 }
0x1165   : > { %v3423_v7 = vmul.f32 %v5735_v55, %v5735_v55 }
0x1167   : > { %v3427_v44 = vsel %vm849_vm0, %v3423_v7, 0.0 }
0x1168   : > { %3428 = vadd.xlane.f32.xlu1 %v3427_v44 }
0x117a   : > { %v3426_v9 = vpop.xlane.xlu2 %3425 }
0x117b   : > { %v3430_v21 = vmul.f32 %v3426_v9, %v4592_v62 }
0x117d   : > { %v3432_v46 = vadd.f32 1e-06, %v3430_v21 }
0x117f   : > { %4194 = vrsqrt.f32 %v3432_v46  ;;  %vm3440_vm4 = vweird.f32 %v3432_v46 }
0x1185   : > { %v4195_v28 = vpop.eup %4194 }
0x1186   : > { %v3435_v38 = vmul.f32 %v4195_v28, %v3432_v46  ;;  %vm3441_vm3 = vweird.f32 %v4195_v28 }
0x1187   : > { %vm3442_vm11 = vmor %vm3440_vm4, %vm3441_vm3 }
0x1188   : > { %v3436_v50 = vmul.f32 %v4195_v28, %v3435_v38 }
0x118a   : > { %v3437_v2 = vmul.f32 0.5, %v3436_v50 }
0x118c   : > { %v3438_v61 = vsub.f32 1.5, %v3437_v2 }
0x118e   : > { %v3439_v5 = vmul.f32 %v4195_v28, %v3438_v61 }
0x1190   : > { %v3443_v49 = vsel %vm3442_vm11, %v4195_v28, %v3439_v5 }
0x1191   : > { %v3454_v45 = vmul.f32 %v3443_v49, %v3420_v11 }
0x1193   : > { %v3459_v43 = vmul.f32 %v4019_v47, %v3454_v45 }
0x1195   : > { %v3464_v3 = vadd.f32 %v4020_v53, %v3459_v43 }
0x1197   : > { %3834 = vmatmul.msk.f32.vlgmr.msrb.gmra.mxu0 %vm849_vm0, %v3464_v3  ;;  %3836 = vmatmul.msk.f32.vlgmr.msra.gmra.mxu1 %vm849_vm0, %v3464_v3 }
0x11b2   : > { %v3202_v23 = vpop.xlane.xlu1 %3201 }
0x11b3   : > { %v3208_v51 = vmul.f32 %v3202_v23, %v4592_v62 }
0x11b5   : > { %v3212_v41 = vadd.f32 1e-06, %v3208_v51 }
0x11b7   : > { %4196 = vrsqrt.f32 %v3212_v41  ;;  %vm3240_vm13 = vweird.f32 %v3212_v41 }
0x11ba   : > { %v3205_v58 = vpop.xlane.xlu0 %3204 }
0x11bb   : > { %v3209_v15 = vmul.f32 %v3205_v58, %v4592_v62 }
0x11bd   : > { %v4197_v14 = vpop.eup %4196  ;;  %v3213_v13 = vadd.f32 1e-06, %v3209_v15 }
0x11be   : > { %v3235_v32 = vmul.f32 %v4197_v14, %v3212_v41  ;;  %vm3241_vm12 = vweird.f32 %v4197_v14 }
0x11bf   : > { %4198 = vrsqrt.f32 %v3213_v13  ;;  %vm3242_vm14 = vmor %vm3240_vm13, %vm3241_vm12  ;;  %vm3250_vm5 = vweird.f32 %v3213_v13 }
0x11c0   : > { %v3236_v36 = vmul.f32 %v4197_v14, %v3235_v32 }
0x11c2   : > { %v3237_v60 = vmul.f32 0.5, %v3236_v36 }
0x11c4   : > { %v3238_v59 = vsub.f32 1.5, %v3237_v60 }
0x11c5   : > { %v4199_v37 = vpop.eup %4198 }
0x11c6   : > { %v3239_v10 = vmul.f32 %v4197_v14, %v3238_v59  ;;  %v3245_v54 = vmul.f32 %v4199_v37, %v3213_v13  ;;  %vm3251_vm1 = vweird.f32 %v4199_v37  ;;  %v4021_v59 = vld [vmem:[%s5865_s20] ss:$0 sm:$0xff] }
0x11c7   : > { %vm3252_vm6 = vmor %vm3250_vm5, %vm3251_vm1 }
0x11c8   : > { %v3243_v19 = vsel %vm3242_vm14, %v4197_v14, %v3239_v10  ;;  %v3246_v24 = vmul.f32 %v4199_v37, %v3245_v54 }
0x11c9   : > { %v3256_v0 = vmul.f32 %v3243_v19, %v5723_v1  ;;  %v3539_v1 = vld [vmem:[%s5868_s23 + $0x18] sm:$0xff] }
0x11ca   : > { %v3247_v30 = vmul.f32 0.5, %v3246_v24  ;;  %3562 = vmatpush.msra.mxu0 %v3539_v1 }
0x11cb   : > { %v3263_v4 = vmul.f32 %v5627_v34, %v3256_v0 }
0x11cc   : > { %v3248_v11 = vsub.f32 1.5, %v3247_v30  ;;  %3563 = vmatpush.msra.mxu0 %v3538_v48 }
0x11cd   : > { %v3270_v20 = vadd.f32 %v5632_v16, %v3263_v4 }
0x11ce   : > { %v3249_v40 = vmul.f32 %v4199_v37, %v3248_v11  ;;  %3564 = vmatpush.msra.mxu0 %v3537_v63 }
0x11cf   : > { %3815 = vmatmul.msk.f32.gmra.mxu2 %vm849_vm0, %v3270_v20 }
0x11d0   : > { %v3253_v33 = vsel %vm3252_vm6, %v4199_v37, %v3249_v40  ;;  %3565 = vmatpush.msra.mxu0 %v3536_v12  ;;  %v4023_v37 = vld [vmem:[%s5957_s30] ss:$0 sm:$0xff]  ;;  %s4226_s30 = scalar_lea.hbm %s4225_s4, 16 }
0x11d1   : > { %v3257_v57 = vmul.f32 %v3253_v33, %v5729_v22  ;;  %p4227_p11 = scmp.ne.s32.totalorder %s4225_s4, %s4226_s30  ;;  %p4232_p1 = scmp.lt.s32.totalorder %s4230_s29, %s4226_s30 }
0x11d3   : > { %v3264_v27 = vmul.f32 %v5627_v34, %v3257_v57  ;;  %p4228_p12 = pnand %p4227_p11, %p4454_p5  ;;  %p4233_p2 = por %p4232_p1, %p4231_p0 }
0x11d5   : > { %v3271_v39 = vadd.f32 %v5632_v16, %v3264_v27  ;;  %p4229_p13 = pneg %p4228_p12 }
0x11d7   : > { %3816 = vmatmul.msk.f32.gmra.mxu2 %vm849_vm0, %v3271_v39  ;;  %p4234_p3 = pnand %p4233_p2, %p4229_p13 }
0x11db   : > { %v3429_v29 = vpop.xlane.xlu1 %3428 }
0x11dc   : > { %v3431_v52 = vmul.f32 %v3429_v29, %v4592_v62 }
0x11de   : > { %v3433_v8 = vadd.f32 1e-06, %v3431_v52 }
0x11e0   : > { %4200 = vrsqrt.f32 %v3433_v8  ;;  %vm3450_vm7 = vweird.f32 %v3433_v8 }
0x11e6   : > { %v4201_v26 = vpop.eup %4200 }
0x11e7   : > { %v3445_v56 = vmul.f32 %v4201_v26, %v3433_v8  ;;  %vm3451_vm15 = vweird.f32 %v4201_v26 }
0x11e8   : > { %vm3452_vm8 = vmor %vm3450_vm7, %vm3451_vm15 }
0x11e9   : > { %v3446_v31 = vmul.f32 %v4201_v26, %v3445_v56 }
0x11eb   : > { %v3447_v22 = vmul.f32 0.5, %v3446_v31 }
0x11ed   : > { %v3448_v7 = vsub.f32 1.5, %v3447_v22 }
0x11ef   : > { %v3449_v34 = vmul.f32 %v4201_v26, %v3448_v7 }
0x11f1   : > { %v3453_v16 = vsel %vm3452_vm8, %v4201_v26, %v3449_v34 }
0x11f2   : > { %v3455_v44 = vmul.f32 %v3453_v16, %v5735_v55  ;;  %v4022_v55 = vld [vmem:[%s5867_s22] ss:$0 sm:$0xff] }
0x11f4   : > { %v3460_v35 = vmul.f32 %v4019_v47, %v3455_v44 }
0x11f6   : > { %v3465_v62 = vadd.f32 %v4020_v53, %v3460_v35 }
0x11f8   : > { %3835 = vmatmul.msk.f32.gmra.mxu0 %vm849_vm0, %v3465_v62  ;;  %3837 = vmatmul.msk.f32.gmra.mxu1 %vm849_vm0, %v3465_v62 }
0x1214   : > { %v3528_v25 = vpop.f32.mrf.mxu1  ;;  %v3497_v36 = vpop.f32.mrf.mxu0 }
0x1215   : > { %v3529_v18 = vadd.f32 %v4022_v55, %v3528_v25  ;;  %v3498_v54 = vadd.f32 %v4021_v59, %v3497_v36 }
0x1217   : > { %v3534_v42 = vmax.f32 %v3529_v18, 0.0 }
0x1219   : > { %3838 = vmatmul.msk.f32.vlgmr.msra.gmra.mxu0 %vm849_vm0, %v3534_v42 }
0x1252   : > { %v3317_v17 = vpop.f32.mrf.mxu2 }
0x1253   : > { %v3318_v9 = vadd.f32 %v5697_v6, %v3317_v17 }
0x1255   : > { %v3325_v21 = vmul.f32 %v3318_v9, %v3318_v9 }
0x1257   : > { %v3329_v46 = vmul.f32 %v3325_v21, %v3318_v9 }
0x1259   : > { %v3333_v28 = vmul.f32 0.044715, %v3329_v46 }
0x125a   : > { %v3320_v38 = vpop.f32.mrf.mxu2 }
0x125b   : > { %v3337_v50 = vadd.f32 %v3333_v28, %v3318_v9  ;;  %v3321_v2 = vadd.f32 %v5697_v6, %v3320_v38 }
0x125d   : > { %v3326_v61 = vmul.f32 %v3321_v2, %v3321_v2  ;;  %v3341_v5 = vmul.f32 0.7978846, %v3337_v50 }
0x125f   : > { %v3330_v47 = vmul.f32 %v3326_v61, %v3321_v2  ;;  %4202 = vtanh.f32 %v3341_v5 }
0x1261   : > { %v3334_v49 = vmul.f32 0.044715, %v3330_v47 }
0x1263   : > { %v3338_v53 = vadd.f32 %v3334_v49, %v3321_v2 }
0x1265   : > { %v4203_v45 = vpop.eup %4202  ;;  %v3342_v43 = vmul.f32 0.7978846, %v3338_v53 }
0x1266   : > { %v3349_v3 = vadd.f32 1.0, %v4203_v45 }
0x1267   : > { %4204 = vtanh.f32 %v3342_v43 }
0x1268   : > { %v3353_v23 = vmul.f32 0.5, %v3349_v3 }
0x126a   : > { %v3357_v51 = vmul.f32 %v3353_v23, %v3318_v9 }
0x126c   : > { %3403 = vmatmul.f32.gmra.mxu3 %v3357_v51 }
0x126d   : > { %v4205_v41 = vpop.eup %4204 }
0x126e   : > { %v3350_v58 = vadd.f32 1.0, %v4205_v41 }
0x1270   : > { %v3354_v15 = vmul.f32 0.5, %v3350_v58 }
0x1272   : > { %v3358_v14 = vmul.f32 %v3354_v15, %v3321_v2 }
0x1274   : > { %3405 = vmatmul.f32.gmra.mxu3 %v3358_v14 }
0x1275   : > { %v3531_v6 = vpop.f32.mrf.mxu1  ;;  %v3500_v60 = vpop.f32.mrf.mxu0 }
0x1276   : > { %v3532_v13 = vadd.f32 %v4022_v55, %v3531_v6  ;;  %v3501_v11 = vadd.f32 %v4021_v59, %v3500_v60 }
0x1278   : > { %v3535_v32 = vmax.f32 %v3532_v13, 0.0 }
0x127a   : > { %3839 = vmatmul.msk.f32.gmra.mxu0 %vm849_vm0, %v3535_v32 }
0x1296   : > { %v3567_v10 = vpop.f32.mrf.mxu0 }
0x1297   : > { %v3568_v19 = vadd.f32 %v4023_v37, %v3567_v10 }
0x1299   : > { %v3573_v24 = vadd.f32 %v3568_v19, %v3498_v54 }
0x129b   : > { %3575 = vst [vmem:[%s757_s5] sm:$0xff] %v3573_v24 }
0x12ef   : > { %v3404_v0 = vpop.f32.mrf.mxu3 }
0x12f7   : > { %v3406_v30 = vpop.f32.mrf.mxu3  ;;  %v3570_v4 = vpop.f32.mrf.mxu0 }
0x12f8   : > { %v3571_v20 = vadd.f32 %v4023_v37, %v3570_v4 }
0x12fa   : > { %v3574_v40 = vadd.f32 %v3571_v20, %v3501_v11 }
0x12fc   : > { %3576 = vst [vmem:[%s757_s5 + $0x8] sm:$0xff] %v3574_v40 }
0x12fd   : > { %4237 = shalt.err (!%p4234_p3)
}
0x12fe   : > { %s4285_s9 = smov 128  }
0x12ff   : > { %3851 = dma.vmem_to_hbm [thread:$0]  (%p4454_p5), %s3591_s6, 256, %s3593_s3, %s3578_s24, %s4285_s9, %s4285_s9, %s5954_s8  }
0x1300 PF: > { %s5960_s5 = sld [smem:[#allocation9_spill]] }
0x1301   : > { %s5961_s0 = sld [smem:[#allocation7_spill]] }
0x1306   : > { %p3857_p4 = scmp.ge.s32.totalorder %s5960_s5, 2 }
0x1307   : > { %s3607_s7 = sand.u32 1, %s5961_s0  }
0x1308   : > { %p3854_p7 = pnand %p3857_p4, %p4458_p6  ;;  %s3608_s1 = scalar_lea.sflag [#allocation5], %s3607_s7 }
0x130a   : > { %p3855_p8 = pneg %p3854_p7 }
0x130c   : > { %4255 = dma.done.wait (%p3855_p8), %s3608_s1, 256  }
0x130d   : > { %4257 = vsyncadd (%p3855_p8), %s3608_s1, 4294967040  ;;  %s5963_s30 = sld [smem:[#allocation10_spill]]  ;;  %s5966_s29 = smov %s4264_s2 }
0x130e   : > { %s5964_s4 = sld [smem:[#allocation8_spill]] }
0x130f   : > { %s5965_s6 = sld [smem:[#allocation11_spill]] }
0x1313   : > { %p35_p9 = scmp.ge.s32.totalorder %s5963_s30, 4  }
0x1314   : > { %s5967_s2 = smov %s5964_s4 }
0x1315   :  { %37 = sbr.rel (!%p35_p9) target bundleno = 20 (0x14), region = 167 }
0x131a   :  { %3614 = vsyncpa [#allocation5], 1 }
0x131b   :  { %3616 = vsyncpa [#allocation5 + $0x1], 1 }

</bundles_post_ra>
